<compile_context>
chip_gen: v6e
topology: v6e:2x2x1
jax: 0.10.0
libtpu: 0.0.40
codegen_flags: <defaults>
</compile_context>

<pallas_src>
import numpy as np
import jax
import jax.numpy as jnp
from jax.experimental import pallas as pl
from jax.experimental.pallas import tpu as pltpu


# ----------------------------------------------------------------------------
# Fused U-Net forward kernel: one invocation, whole batch, all layers in VMEM
# ----------------------------------------------------------------------------
def _pix2pix_unet_kernel(
    x_ref,                                           # (B, 256) lane-dense input
    m1, b1, m2, b2, m3, b3,                          # encoder folded GEMMs
    mt3, bt3, mt2a, mt2b, bt2, mt1a, mt1b, bt1,      # decoder folded GEMMs (split skips)
    pavg16, q16, pavg8, q8,                          # InstanceNorm pool/broadcast mats
    o_ref,                                           # (B, 256) lane-dense output
):
    f32 = jnp.float32

    def gemm(a, m_ref):
        return jnp.dot(a, m_ref[...], preferred_element_type=f32)

    def inorm(y, pavg_ref, q_ref):
        # per-sample per-channel stats over spatial, all in the flat pixel-major
        # layout via tiny 0/1 pooling (Pavg) / broadcast (Q) matmuls.
        mu = jnp.dot(y, pavg_ref[...], preferred_element_type=f32)        # (B, C)
        d = y - jnp.dot(mu, q_ref[...], preferred_element_type=f32)       # centered
        var = jnp.dot(d * d, pavg_ref[...], preferred_element_type=f32)   # (B, C)
        scale = jax.lax.rsqrt(var + 1e-5)                                 # (B, C)
        return d * jnp.dot(scale, q_ref[...], preferred_element_type=f32)

    lrelu = lambda v: jnp.where(v > 0, v, 0.2 * v)
    relu = lambda v: jnp.maximum(v, 0.0)

    x = x_ref[...]                                                        # (B, 256)

    # --- encoder ---
    e1 = gemm(x, m1) + b1[...]                                            # (B, 512)
    e2 = inorm(gemm(lrelu(e1), m2) + b2[...], pavg16, q16)                # (B, 256)
    e3 = gemm(lrelu(e2), m3) + b3[...]                                    # (B, 128)

    # --- decoder; skip concat([enc, dec]) folded into split GEMMs ---
    d3 = inorm(gemm(relu(e3), mt3) + bt3[...], pavg16, q16)               # (B, 256)
    d2 = inorm(gemm(relu(e2), mt2a) + gemm(relu(d3), mt2b) + bt2[...],
               pavg8, q8)                                                 # (B, 512)
    y = gemm(relu(e1), mt1a) + gemm(relu(d2), mt1b) + bt1[...]            # (B, 256)

    o_ref[...] = jnp.tanh(y)


# ----------------------------------------------------------------------------
# One-time prep: gather matrices, weight taps, Kronecker-folded GEMM matrices
# ----------------------------------------------------------------------------
def _conv_gather_matrix(hin, win, hout, wout, stride, pad, k=4):
    """G[t, o, p] = 1 iff output pixel o reads input pixel p at kernel tap t."""
    g = np.zeros((k * k, hout * wout, hin * win), np.float32)
    for i in range(k):
        for j in range(k):
            t = i * k + j
            for oy in range(hout):
                iy = oy * stride + i - pad
                if not 0 <= iy < hin:
                    continue
                for ox in range(wout):
                    ix = ox * stride + j - pad
                    if 0 <= ix < win:
                        g[t, oy * wout + ox, iy * win + ix] = 1.0
    return g


def _convT_gather_matrix(hin, win, hout, wout, stride, pad, k=4):
    """ConvTranspose gather expressed directly on the UN-dilated input
    (phase decomposition: no structural zeros ever materialize)."""
    g = np.zeros((k * k, hout * wout, hin * win), np.float32)
    kp = k - 1 - pad
    for i in range(k):
        for j in range(k):
            t = i * k + j
            for oy in range(hout):
                dy = oy + i - kp
                if dy < 0 or dy > (hin - 1) * stride or dy % stride:
                    continue
                for ox in range(wout):
                    dx = ox + j - kp
                    if 0 <= dx <= (win - 1) * stride and dx % stride == 0:
                        g[t, oy * wout + ox,
                          (dy // stride) * win + (dx // stride)] = 1.0
    return g


def _conv_weight_taps(W):
    """torch Conv2d (Cout, Cin, k, k) -> per-tap (k*k, Cin, Cout)."""
    cout, cin, kh, kw = W.shape
    return np.transpose(W, (2, 3, 1, 0)).reshape(kh * kw, cin, cout)


def _convT_weight_taps(W):
    """torch ConvTranspose2d (Cin, Cout, k, k) -> equivalent-conv per-tap
    weights (k*k, Cin, Cout): spatial flip + channel swap, pre-folded."""
    cin, cout, kh, kw = W.shape
    return np.transpose(np.flip(W, (2, 3)), (2, 3, 0, 1)).reshape(kh * kw, cin, cout)


def _fold(G, Wt):
    """Kronecker fold: M[(p,ci),(o,co)] = sum_t G_t[o,p] * W_t[ci,co].
    Turns sum_t (G_t @ a) @ W_t into a single GEMM  a_flat @ M  with
    pixel-major flattening on both sides (so layers chain without reshapes)."""
    T, howo, P = G.shape
    _, cin, cout = Wt.shape
    M4 = np.einsum("top,tic->pioc", G, Wt)            # (P, Cin, HoWo, Cout)
    return np.ascontiguousarray(M4.reshape(P * cin, howo * cout), np.float32)


def _tile_bias(b, howo):
    """bias per output channel -> pixel-major flat row (1, HoWo*C)."""
    return np.tile(np.asarray(b, np.float32), howo).reshape(1, -1)


def _inorm_mats(howo, c):
    """Pooling (mean over spatial per channel) and broadcast matrices for the
    pixel-major (o*C + c) flat layout."""
    eye = np.eye(c, dtype=np.float32)
    pavg = np.tile(eye, (howo, 1)) / float(howo)      # (HoWo*C, C)
    q = np.tile(eye, (1, howo))                       # (C, HoWo*C)
    return pavg, q


def prepare_operators(params, H=16, W=16, ngf=8):
    p = {k: np.asarray(v, np.float32) for k, v in params.items()}
    s0, s1, s2, s3 = (H, W), (H // 2, W // 2), (H // 4, W // 4), (H // 8, W // 8)
    howo1 = s1[0] * s1[1]          # 64  (8x8)
    howo2 = s2[0] * s2[1]          # 16  (4x4)
    howo3 = s3[0] * s3[1]          # 4   (2x2)

    g1 = _conv_gather_matrix(*s0, *s1, 2, 1)
    g2 = _conv_gather_matrix(*s1, *s2, 2, 1)
    g3 = _conv_gather_matrix(*s2, *s3, 2, 1)
    gt3 = _convT_gather_matrix(*s3, *s2, 2, 1)
    gt2 = _convT_gather_matrix(*s2, *s1, 2, 1)
    gt1 = _convT_gather_matrix(*s1, *s0, 2, 1)

    w1 = _conv_weight_taps(p["W1"])
    w2 = _conv_weight_taps(p["W2"])
    w3 = _conv_weight_taps(p["W3"])
    wt3 = _convT_weight_taps(p["Wt3"])
    wt2 = _convT_weight_taps(p["Wt2"])                # (16, 4ngf, ngf)
    wt1 = _convT_weight_taps(p["Wt1"])                # (16, 2ngf, out_nc)

    pavg16, q16 = _inorm_mats(howo2, 2 * ngf)         # e2 / d3: 16 px, 16 ch
    pavg8, q8 = _inorm_mats(howo1, ngf)               # d2: 64 px, 8 ch

    ops = {
        "m1": _fold(g1, w1),   "b1": _tile_bias(p["b1"], howo1),
        "m2": _fold(g2, w2),   "b2": _tile_bias(p["b2"], howo2),
        "m3": _fold(g3, w3),   "b3": _tile_bias(p["b3"], howo3),
        "mt3": _fold(gt3, wt3), "bt3": _tile_bias(p["bt3"], howo2),
        "mt2a": _fold(gt2, wt2[:, : 2 * ngf, :]),     # acts on e2
        "mt2b": _fold(gt2, wt2[:, 2 * ngf:, :]),      # acts on d3
        "bt2": _tile_bias(p["bt2"], howo1),
        "mt1a": _fold(gt1, wt1[:, :ngf, :]),          # acts on e1
        "mt1b": _fold(gt1, wt1[:, ngf:, :]),          # acts on d2
        "bt1": _tile_bias(p["bt1"], H * W),
        "pavg16": pavg16, "q16": q16, "pavg8": pavg8, "q8": q8,
    }
    return {k: jnp.asarray(v) for k, v in ops.items()}


# ----------------------------------------------------------------------------
# Forward wrapper: single fused pallas_call, no grid (whole batch in one step)
# ----------------------------------------------------------------------------
_CONST_KEYS = ("m1", "b1", "m2", "b2", "m3", "b3",
               "mt3", "bt3", "mt2a", "mt2b", "bt2", "mt1a", "mt1b", "bt1",
               "pavg16", "q16", "pavg8", "q8")


def pix2pix_forward(x_nhwc, ops):
    """fake_T2 = netG(real_T1).  x_nhwc: (B, H, W, 1) -> (B, H, W, 1)."""
    B, H, W, C = x_nhwc.shape
    hw = H * W
    x_flat = x_nhwc.reshape(B, hw * C)                # lane-dense (B, 256)
    consts = [ops[k] for k in _CONST_KEYS]

    vmem = pl.BlockSpec(memory_space=pltpu.MemorySpace.VMEM)
    out = pl.pallas_call(
        _pix2pix_unet_kernel,
        out_shape=jax.ShapeDtypeStruct((B, hw), jnp.float32),
        in_specs=[vmem] * (1 + len(consts)),
        out_specs=vmem,
    )(x_flat, *consts)
    return out.reshape(B, H, W, 1)


# ----------------------------------------------------------------------------
# Parameters (torch layouts, as in the PyTorch module)
# ----------------------------------------------------------------------------
def init_params(key, input_nc=1, output_nc=1, ngf=8, init_gain=0.02):
    ks = jax.random.split(key, 12)
    norm = lambda k, s: init_gain * jax.random.normal(k, s, dtype=jnp.float32)
    return {
        # encoder (torch Conv2d layout (Cout, Cin, 4, 4))
        "W1": norm(ks[0], (ngf, input_nc, 4, 4)), "b1": norm(ks[1], (ngf,)),
        "W2": norm(ks[2], (ngf * 2, ngf, 4, 4)), "b2": norm(ks[3], (ngf * 2,)),
        "W3": norm(ks[4], (ngf * 4, ngf * 2, 4, 4)), "b3": norm(ks[5], (ngf * 4,)),
        # decoder (torch ConvTranspose2d layout (Cin, Cout, 4, 4))
        "Wt3": norm(ks[6], (ngf * 4, ngf * 2, 4, 4)), "bt3": norm(ks[7], (ngf * 2,)),
        "Wt2": norm(ks[8], (ngf * 4, ngf, 4, 4)), "bt2": norm(ks[9], (ngf,)),
        "Wt1": norm(ks[10], (ngf * 2, output_nc, 4, 4)), "bt1": norm(ks[11], (output_nc,)),
    }


# ----------------------------------------------------------------------------
# Pure-XLA reference (same math) for a runtime cross-check
# ----------------------------------------------------------------------------
def _ref_conv(x, W, b, stride=2, pad=1):
    w = jnp.transpose(W, (2, 3, 1, 0))
    y = jax.lax.conv_general_dilated(
        x, w, window_strides=(stride, stride),
        padding=((pad, pad), (pad, pad)),
        dimension_numbers=("NHWC", "HWIO", "NHWC"),
        precision=jax.lax.Precision.HIGHEST)
    return y + b.reshape(1, 1, 1, -1)


def _ref_convT(x, W, b, stride=2, pad=1):
    k = W.shape[2]
    kp = k - 1 - pad
    w = jnp.transpose(jnp.flip(W, (2, 3)), (2, 3, 0, 1))
    y = jax.lax.conv_general_dilated(
        x, w, window_strides=(1, 1),
        padding=((kp, kp), (kp, kp)),
        lhs_dilation=(stride, stride),
        dimension_numbers=("NHWC", "HWIO", "NHWC"),
        precision=jax.lax.Precision.HIGHEST)
    return y + b.reshape(1, 1, 1, -1)


def _ref_inorm(x):
    mu = jnp.mean(x, axis=(1, 2), keepdims=True)
    var = jnp.mean((x - mu) ** 2, axis=(1, 2), keepdims=True)
    return (x - mu) * jax.lax.rsqrt(var + 1e-5)


def reference_forward(x, p):
    lrelu = lambda v: jnp.where(v > 0, v, 0.2 * v)
    relu = lambda v: jnp.maximum(v, 0.0)
    e1 = _ref_conv(x, p["W1"], p["b1"])
    e2 = _ref_inorm(_ref_conv(lrelu(e1), p["W2"], p["b2"]))
    e3 = _ref_conv(lrelu(e2), p["W3"], p["b3"])
    d3 = _ref_inorm(_ref_convT(relu(e3), p["Wt3"], p["bt3"]))
    d3c = jnp.concatenate([e2, d3], axis=-1)
    d2 = _ref_inorm(_ref_convT(relu(d3c), p["Wt2"], p["bt2"]))
    d2c = jnp.concatenate([e1, d2], axis=-1)
    return jnp.tanh(_ref_convT(relu(d2c), p["Wt1"], p["bt1"]))


if __name__ == "__main__":
    key = jax.random.PRNGKey(0)
    k_x, k_p = jax.random.split(key)

    # PyTorch-convention NCHW input: real_T1 of shape (B=2, C=1, H=16, W=16)
    real_T1_nchw = jax.random.normal(k_x, (2, 1, 16, 16), dtype=jnp.float32)
    params = init_params(k_p, input_nc=1, output_nc=1, ngf=8)
    ops = prepare_operators(params, H=16, W=16, ngf=8)

    real_T1_nhwc = jnp.transpose(real_T1_nchw, (0, 2, 3, 1))
    fwd = jax.jit(pix2pix_forward)
    fake_T2_nhwc = fwd(real_T1_nhwc, ops)
    jax.block_until_ready(fake_T2_nhwc)
    fake_T2_nchw = jnp.transpose(fake_T2_nhwc, (0, 3, 1, 2))

    assert fake_T2_nchw.shape == (2, 1, 16, 16)
    assert bool(jnp.all(jnp.isfinite(fake_T2_nchw)))

    # Cross-check the fused kernel against a pure-XLA reference of the same net.
    ref_nhwc = reference_forward(real_T1_nhwc, params)
    assert float(jnp.max(jnp.abs(fake_T2_nhwc - ref_nhwc))) < 5e-3

    print("KERNEL_OK")
</pallas_src>

<mosaic_0001>
module attributes {stable_mosaic.version = 11 : i64} {
  func.func @_pix2pix_unet_kernel(%arg0: memref<2x256xf32, #tpu.memory_space<vmem>>, %arg1: memref<256x512xf32, #tpu.memory_space<vmem>>, %arg2: memref<1x512xf32, #tpu.memory_space<vmem>>, %arg3: memref<512x256xf32, #tpu.memory_space<vmem>>, %arg4: memref<1x256xf32, #tpu.memory_space<vmem>>, %arg5: memref<256x128xf32, #tpu.memory_space<vmem>>, %arg6: memref<1x128xf32, #tpu.memory_space<vmem>>, %arg7: memref<128x256xf32, #tpu.memory_space<vmem>>, %arg8: memref<1x256xf32, #tpu.memory_space<vmem>>, %arg9: memref<256x512xf32, #tpu.memory_space<vmem>>, %arg10: memref<256x512xf32, #tpu.memory_space<vmem>>, %arg11: memref<1x512xf32, #tpu.memory_space<vmem>>, %arg12: memref<512x256xf32, #tpu.memory_space<vmem>>, %arg13: memref<512x256xf32, #tpu.memory_space<vmem>>, %arg14: memref<1x256xf32, #tpu.memory_space<vmem>>, %arg15: memref<256x16xf32, #tpu.memory_space<vmem>>, %arg16: memref<16x256xf32, #tpu.memory_space<vmem>>, %arg17: memref<512x8xf32, #tpu.memory_space<vmem>>, %arg18: memref<8x512xf32, #tpu.memory_space<vmem>>, %arg19: memref<2x256xf32, #tpu.memory_space<vmem>>) attributes {dimension_semantics = [], scalar_prefetch = 0 : i64, scratch_operands = 0 : i64, tpu.core_type = #tpu.core_type<tc>} {
    %c0 = arith.constant 0 : index
    %c0_0 = arith.constant 0 : index
    %0 = vector.load %arg0[%c0, %c0_0] : memref<2x256xf32, #tpu.memory_space<vmem>>, vector<2x256xf32>
    %c0_1 = arith.constant 0 : index
    %c0_2 = arith.constant 0 : index
    %1 = vector.load %arg1[%c0_1, %c0_2] : memref<256x512xf32, #tpu.memory_space<vmem>>, vector<256x512xf32>
    %cst = arith.constant dense<0.000000e+00> : vector<2x512xf32>
    %2 = tpu.matmul %0, %1, %cst {dimension_numbers = #tpu.dot_dimension_numbers<[1], [0], [0], [1], [0, 0, 1, 1], [], []>} : vector<2x256xf32>, vector<256x512xf32>, vector<2x512xf32> -> vector<2x512xf32>
    %c0_3 = arith.constant 0 : index
    %c0_4 = arith.constant 0 : index
    %3 = vector.load %arg2[%c0_3, %c0_4] : memref<1x512xf32, #tpu.memory_space<vmem>>, vector<1x512xf32>
    %4 = vector.broadcast %3 : vector<1x512xf32> to vector<2x512xf32>
    %5 = arith.addf %2, %4 : vector<2x512xf32>
    %cst_5 = arith.constant 0.000000e+00 : f32
    %6 = vector.broadcast %cst_5 : f32 to vector<2x512xf32>
    %7 = arith.cmpf ogt, %5, %6 : vector<2x512xf32>
    %cst_6 = arith.constant 2.000000e-01 : f32
    %8 = vector.broadcast %cst_6 : f32 to vector<2x512xf32>
    %9 = arith.mulf %8, %5 : vector<2x512xf32>
    %10 = arith.select %7, %5, %9 : vector<2x512xi1>, vector<2x512xf32>
    %c0_7 = arith.constant 0 : index
    %c0_8 = arith.constant 0 : index
    %11 = vector.load %arg3[%c0_7, %c0_8] : memref<512x256xf32, #tpu.memory_space<vmem>>, vector<512x256xf32>
    %cst_9 = arith.constant dense<0.000000e+00> : vector<2x256xf32>
    %12 = tpu.matmul %10, %11, %cst_9 {dimension_numbers = #tpu.dot_dimension_numbers<[1], [0], [0], [1], [0, 0, 1, 1], [], []>} : vector<2x512xf32>, vector<512x256xf32>, vector<2x256xf32> -> vector<2x256xf32>
    %c0_10 = arith.constant 0 : index
    %c0_11 = arith.constant 0 : index
    %13 = vector.load %arg4[%c0_10, %c0_11] : memref<1x256xf32, #tpu.memory_space<vmem>>, vector<1x256xf32>
    %14 = vector.broadcast %13 : vector<1x256xf32> to vector<2x256xf32>
    %15 = arith.addf %12, %14 : vector<2x256xf32>
    %c0_12 = arith.constant 0 : index
    %c0_13 = arith.constant 0 : index
    %16 = vector.load %arg15[%c0_12, %c0_13] : memref<256x16xf32, #tpu.memory_space<vmem>>, vector<256x16xf32>
    %cst_14 = arith.constant dense<0.000000e+00> : vector<2x16xf32>
    %17 = tpu.matmul %15, %16, %cst_14 {dimension_numbers = #tpu.dot_dimension_numbers<[1], [0], [0], [1], [0, 0, 1, 1], [], []>} : vector<2x256xf32>, vector<256x16xf32>, vector<2x16xf32> -> vector<2x16xf32>
    %c0_15 = arith.constant 0 : index
    %c0_16 = arith.constant 0 : index
    %18 = vector.load %arg16[%c0_15, %c0_16] : memref<16x256xf32, #tpu.memory_space<vmem>>, vector<16x256xf32>
    %cst_17 = arith.constant dense<0.000000e+00> : vector<2x256xf32>
    %19 = tpu.matmul %17, %18, %cst_17 {dimension_numbers = #tpu.dot_dimension_numbers<[1], [0], [0], [1], [0, 0, 1, 1], [], []>} : vector<2x16xf32>, vector<16x256xf32>, vector<2x256xf32> -> vector<2x256xf32>
    %20 = arith.subf %15, %19 : vector<2x256xf32>
    %21 = arith.mulf %20, %20 : vector<2x256xf32>
    %c0_18 = arith.constant 0 : index
    %c0_19 = arith.constant 0 : index
    %22 = vector.load %arg15[%c0_18, %c0_19] : memref<256x16xf32, #tpu.memory_space<vmem>>, vector<256x16xf32>
    %cst_20 = arith.constant dense<0.000000e+00> : vector<2x16xf32>
    %23 = tpu.matmul %21, %22, %cst_20 {dimension_numbers = #tpu.dot_dimension_numbers<[1], [0], [0], [1], [0, 0, 1, 1], [], []>} : vector<2x256xf32>, vector<256x16xf32>, vector<2x16xf32> -> vector<2x16xf32>
    %cst_21 = arith.constant 9.99999974E-6 : f32
    %24 = vector.broadcast %cst_21 : f32 to vector<2x16xf32>
    %25 = arith.addf %23, %24 : vector<2x16xf32>
    %26 = math.rsqrt %25 : vector<2x16xf32>
    %c0_22 = arith.constant 0 : index
    %c0_23 = arith.constant 0 : index
    %27 = vector.load %arg16[%c0_22, %c0_23] : memref<16x256xf32, #tpu.memory_space<vmem>>, vector<16x256xf32>
    %cst_24 = arith.constant dense<0.000000e+00> : vector<2x256xf32>
    %28 = tpu.matmul %26, %27, %cst_24 {dimension_numbers = #tpu.dot_dimension_numbers<[1], [0], [0], [1], [0, 0, 1, 1], [], []>} : vector<2x16xf32>, vector<16x256xf32>, vector<2x256xf32> -> vector<2x256xf32>
    %29 = arith.mulf %20, %28 : vector<2x256xf32>
    %cst_25 = arith.constant 0.000000e+00 : f32
    %30 = vector.broadcast %cst_25 : f32 to vector<2x256xf32>
    %31 = arith.cmpf ogt, %29, %30 : vector<2x256xf32>
    %cst_26 = arith.constant 2.000000e-01 : f32
    %32 = vector.broadcast %cst_26 : f32 to vector<2x256xf32>
    %33 = arith.mulf %32, %29 : vector<2x256xf32>
    %34 = arith.select %31, %29, %33 : vector<2x256xi1>, vector<2x256xf32>
    %c0_27 = arith.constant 0 : index
    %c0_28 = arith.constant 0 : index
    %35 = vector.load %arg5[%c0_27, %c0_28] : memref<256x128xf32, #tpu.memory_space<vmem>>, vector<256x128xf32>
    %cst_29 = arith.constant dense<0.000000e+00> : vector<2x128xf32>
    %36 = tpu.matmul %34, %35, %cst_29 {dimension_numbers = #tpu.dot_dimension_numbers<[1], [0], [0], [1], [0, 0, 1, 1], [], []>} : vector<2x256xf32>, vector<256x128xf32>, vector<2x128xf32> -> vector<2x128xf32>
    %c0_30 = arith.constant 0 : index
    %c0_31 = arith.constant 0 : index
    %37 = vector.load %arg6[%c0_30, %c0_31] : memref<1x128xf32, #tpu.memory_space<vmem>>, vector<1x128xf32>
    %38 = vector.broadcast %37 : vector<1x128xf32> to vector<2x128xf32>
    %39 = arith.addf %36, %38 : vector<2x128xf32>
    %cst_32 = arith.constant 0.000000e+00 : f32
    %40 = vector.broadcast %cst_32 : f32 to vector<2x128xf32>
    %41 = arith.maximumf %39, %40 : vector<2x128xf32>
    %c0_33 = arith.constant 0 : index
    %c0_34 = arith.constant 0 : index
    %42 = vector.load %arg7[%c0_33, %c0_34] : memref<128x256xf32, #tpu.memory_space<vmem>>, vector<128x256xf32>
    %cst_35 = arith.constant dense<0.000000e+00> : vector<2x256xf32>
    %43 = tpu.matmul %41, %42, %cst_35 {dimension_numbers = #tpu.dot_dimension_numbers<[1], [0], [0], [1], [0, 0, 1, 1], [], []>} : vector<2x128xf32>, vector<128x256xf32>, vector<2x256xf32> -> vector<2x256xf32>
    %c0_36 = arith.constant 0 : index
    %c0_37 = arith.constant 0 : index
    %44 = vector.load %arg8[%c0_36, %c0_37] : memref<1x256xf32, #tpu.memory_space<vmem>>, vector<1x256xf32>
    %45 = vector.broadcast %44 : vector<1x256xf32> to vector<2x256xf32>
    %46 = arith.addf %43, %45 : vector<2x256xf32>
    %c0_38 = arith.constant 0 : index
    %c0_39 = arith.constant 0 : index
    %47 = vector.load %arg15[%c0_38, %c0_39] : memref<256x16xf32, #tpu.memory_space<vmem>>, vector<256x16xf32>
    %cst_40 = arith.constant dense<0.000000e+00> : vector<2x16xf32>
    %48 = tpu.matmul %46, %47, %cst_40 {dimension_numbers = #tpu.dot_dimension_numbers<[1], [0], [0], [1], [0, 0, 1, 1], [], []>} : vector<2x256xf32>, vector<256x16xf32>, vector<2x16xf32> -> vector<2x16xf32>
    %c0_41 = arith.constant 0 : index
    %c0_42 = arith.constant 0 : index
    %49 = vector.load %arg16[%c0_41, %c0_42] : memref<16x256xf32, #tpu.memory_space<vmem>>, vector<16x256xf32>
    %cst_43 = arith.constant dense<0.000000e+00> : vector<2x256xf32>
    %50 = tpu.matmul %48, %49, %cst_43 {dimension_numbers = #tpu.dot_dimension_numbers<[1], [0], [0], [1], [0, 0, 1, 1], [], []>} : vector<2x16xf32>, vector<16x256xf32>, vector<2x256xf32> -> vector<2x256xf32>
    %51 = arith.subf %46, %50 : vector<2x256xf32>
    %52 = arith.mulf %51, %51 : vector<2x256xf32>
    %c0_44 = arith.constant 0 : index
    %c0_45 = arith.constant 0 : index
    %53 = vector.load %arg15[%c0_44, %c0_45] : memref<256x16xf32, #tpu.memory_space<vmem>>, vector<256x16xf32>
    %cst_46 = arith.constant dense<0.000000e+00> : vector<2x16xf32>
    %54 = tpu.matmul %52, %53, %cst_46 {dimension_numbers = #tpu.dot_dimension_numbers<[1], [0], [0], [1], [0, 0, 1, 1], [], []>} : vector<2x256xf32>, vector<256x16xf32>, vector<2x16xf32> -> vector<2x16xf32>
    %cst_47 = arith.constant 9.99999974E-6 : f32
    %55 = vector.broadcast %cst_47 : f32 to vector<2x16xf32>
    %56 = arith.addf %54, %55 : vector<2x16xf32>
    %57 = math.rsqrt %56 : vector<2x16xf32>
    %c0_48 = arith.constant 0 : index
    %c0_49 = arith.constant 0 : index
    %58 = vector.load %arg16[%c0_48, %c0_49] : memref<16x256xf32, #tpu.memory_space<vmem>>, vector<16x256xf32>
    %cst_50 = arith.constant dense<0.000000e+00> : vector<2x256xf32>
    %59 = tpu.matmul %57, %58, %cst_50 {dimension_numbers = #tpu.dot_dimension_numbers<[1], [0], [0], [1], [0, 0, 1, 1], [], []>} : vector<2x16xf32>, vector<16x256xf32>, vector<2x256xf32> -> vector<2x256xf32>
    %60 = arith.mulf %51, %59 : vector<2x256xf32>
    %cst_51 = arith.constant 0.000000e+00 : f32
    %61 = vector.broadcast %cst_51 : f32 to vector<2x256xf32>
    %62 = arith.maximumf %29, %61 : vector<2x256xf32>
    %c0_52 = arith.constant 0 : index
    %c0_53 = arith.constant 0 : index
    %63 = vector.load %arg9[%c0_52, %c0_53] : memref<256x512xf32, #tpu.memory_space<vmem>>, vector<256x512xf32>
    %cst_54 = arith.constant dense<0.000000e+00> : vector<2x512xf32>
    %64 = tpu.matmul %62, %63, %cst_54 {dimension_numbers = #tpu.dot_dimension_numbers<[1], [0], [0], [1], [0, 0, 1, 1], [], []>} : vector<2x256xf32>, vector<256x512xf32>, vector<2x512xf32> -> vector<2x512xf32>
    %cst_55 = arith.constant 0.000000e+00 : f32
    %65 = vector.broadcast %cst_55 : f32 to vector<2x256xf32>
    %66 = arith.maximumf %60, %65 : vector<2x256xf32>
    %c0_56 = arith.constant 0 : index
    %c0_57 = arith.constant 0 : index
    %67 = vector.load %arg10[%c0_56, %c0_57] : memref<256x512xf32, #tpu.memory_space<vmem>>, vector<256x512xf32>
    %cst_58 = arith.constant dense<0.000000e+00> : vector<2x512xf32>
    %68 = tpu.matmul %66, %67, %cst_58 {dimension_numbers = #tpu.dot_dimension_numbers<[1], [0], [0], [1], [0, 0, 1, 1], [], []>} : vector<2x256xf32>, vector<256x512xf32>, vector<2x512xf32> -> vector<2x512xf32>
    %69 = arith.addf %64, %68 : vector<2x512xf32>
    %c0_59 = arith.constant 0 : index
    %c0_60 = arith.constant 0 : index
    %70 = vector.load %arg11[%c0_59, %c0_60] : memref<1x512xf32, #tpu.memory_space<vmem>>, vector<1x512xf32>
    %71 = vector.broadcast %70 : vector<1x512xf32> to vector<2x512xf32>
    %72 = arith.addf %69, %71 : vector<2x512xf32>
    %c0_61 = arith.constant 0 : index
    %c0_62 = arith.constant 0 : index
    %73 = vector.load %arg17[%c0_61, %c0_62] : memref<512x8xf32, #tpu.memory_space<vmem>>, vector<512x8xf32>
    %cst_63 = arith.constant dense<0.000000e+00> : vector<2x8xf32>
    %74 = tpu.matmul %72, %73, %cst_63 {dimension_numbers = #tpu.dot_dimension_numbers<[1], [0], [0], [1], [0, 0, 1, 1], [], []>} : vector<2x512xf32>, vector<512x8xf32>, vector<2x8xf32> -> vector<2x8xf32>
    %c0_64 = arith.constant 0 : index
    %c0_65 = arith.constant 0 : index
    %75 = vector.load %arg18[%c0_64, %c0_65] : memref<8x512xf32, #tpu.memory_space<vmem>>, vector<8x512xf32>
    %cst_66 = arith.constant dense<0.000000e+00> : vector<2x512xf32>
    %76 = tpu.matmul %74, %75, %cst_66 {dimension_numbers = #tpu.dot_dimension_numbers<[1], [0], [0], [1], [0, 0, 1, 1], [], []>} : vector<2x8xf32>, vector<8x512xf32>, vector<2x512xf32> -> vector<2x512xf32>
    %77 = arith.subf %72, %76 : vector<2x512xf32>
    %78 = arith.mulf %77, %77 : vector<2x512xf32>
    %c0_67 = arith.constant 0 : index
    %c0_68 = arith.constant 0 : index
    %79 = vector.load %arg17[%c0_67, %c0_68] : memref<512x8xf32, #tpu.memory_space<vmem>>, vector<512x8xf32>
    %cst_69 = arith.constant dense<0.000000e+00> : vector<2x8xf32>
    %80 = tpu.matmul %78, %79, %cst_69 {dimension_numbers = #tpu.dot_dimension_numbers<[1], [0], [0], [1], [0, 0, 1, 1], [], []>} : vector<2x512xf32>, vector<512x8xf32>, vector<2x8xf32> -> vector<2x8xf32>
    %cst_70 = arith.constant 9.99999974E-6 : f32
    %81 = vector.broadcast %cst_70 : f32 to vector<2x8xf32>
    %82 = arith.addf %80, %81 : vector<2x8xf32>
    %83 = math.rsqrt %82 : vector<2x8xf32>
    %c0_71 = arith.constant 0 : index
    %c0_72 = arith.constant 0 : index
    %84 = vector.load %arg18[%c0_71, %c0_72] : memref<8x512xf32, #tpu.memory_space<vmem>>, vector<8x512xf32>
    %cst_73 = arith.constant dense<0.000000e+00> : vector<2x512xf32>
    %85 = tpu.matmul %83, %84, %cst_73 {dimension_numbers = #tpu.dot_dimension_numbers<[1], [0], [0], [1], [0, 0, 1, 1], [], []>} : vector<2x8xf32>, vector<8x512xf32>, vector<2x512xf32> -> vector<2x512xf32>
    %86 = arith.mulf %77, %85 : vector<2x512xf32>
    %cst_74 = arith.constant 0.000000e+00 : f32
    %87 = vector.broadcast %cst_74 : f32 to vector<2x512xf32>
    %88 = arith.maximumf %5, %87 : vector<2x512xf32>
    %c0_75 = arith.constant 0 : index
    %c0_76 = arith.constant 0 : index
    %89 = vector.load %arg12[%c0_75, %c0_76] : memref<512x256xf32, #tpu.memory_space<vmem>>, vector<512x256xf32>
    %cst_77 = arith.constant dense<0.000000e+00> : vector<2x256xf32>
    %90 = tpu.matmul %88, %89, %cst_77 {dimension_numbers = #tpu.dot_dimension_numbers<[1], [0], [0], [1], [0, 0, 1, 1], [], []>} : vector<2x512xf32>, vector<512x256xf32>, vector<2x256xf32> -> vector<2x256xf32>
    %cst_78 = arith.constant 0.000000e+00 : f32
    %91 = vector.broadcast %cst_78 : f32 to vector<2x512xf32>
    %92 = arith.maximumf %86, %91 : vector<2x512xf32>
    %c0_79 = arith.constant 0 : index
    %c0_80 = arith.constant 0 : index
    %93 = vector.load %arg13[%c0_79, %c0_80] : memref<512x256xf32, #tpu.memory_space<vmem>>, vector<512x256xf32>
    %cst_81 = arith.constant dense<0.000000e+00> : vector<2x256xf32>
    %94 = tpu.matmul %92, %93, %cst_81 {dimension_numbers = #tpu.dot_dimension_numbers<[1], [0], [0], [1], [0, 0, 1, 1], [], []>} : vector<2x512xf32>, vector<512x256xf32>, vector<2x256xf32> -> vector<2x256xf32>
    %95 = arith.addf %90, %94 : vector<2x256xf32>
    %c0_82 = arith.constant 0 : index
    %c0_83 = arith.constant 0 : index
    %96 = vector.load %arg14[%c0_82, %c0_83] : memref<1x256xf32, #tpu.memory_space<vmem>>, vector<1x256xf32>
    %97 = vector.broadcast %96 : vector<1x256xf32> to vector<2x256xf32>
    %98 = arith.addf %95, %97 : vector<2x256xf32>
    %99 = math.tanh %98 : vector<2x256xf32>
    %c0_84 = arith.constant 0 : index
    %c0_85 = arith.constant 0 : index
    %100 = vector.load %arg19[%c0_84, %c0_85] : memref<2x256xf32, #tpu.memory_space<vmem>>, vector<2x256xf32>
    tpu.vector_store %arg19[%c0_84, %c0_85], %99 {strides = array<i32>} : memref<2x256xf32, #tpu.memory_space<vmem>>, vector<2x256xf32>,
    return
  }
}

</mosaic_0001>

<bundles_post_ra>
// kernel: pix2pix_forward.1
= control target key start
LH: loop header
LB: loop body
LE: loop exit
PB: predicated region body
PF: predicated region fallthrough
CT: control target
= control target key end

     0   :  { %s5172_s0 = inlined_call_operand.vmem [shape: f32[2,256], index: 0, kind: input, shape index: {}]   ;;  %s5173_s1 = inlined_call_operand.hbm [shape: f32[256,512], index: 1, kind: input, shape index: {}]   ;;  %s5174_s2 = inlined_call_operand.vmem [shape: f32[1,512], index: 2, kind: input, shape index: {}]   ;;  %s5175_s3 = inlined_call_operand.hbm [shape: f32[512,256], index: 3, kind: input, shape index: {}]   ;;  %s5176_s4 = inlined_call_operand.vmem [shape: f32[1,256], index: 4, kind: input, shape index: {}]   ;;  %s5177_s5 = inlined_call_operand.vmem [shape: f32[256,128], index: 5, kind: input, shape index: {}]   ;;  %s5178_s6 = inlined_call_operand.vmem [shape: f32[1,128], index: 6, kind: input, shape index: {}]   ;;  %s5179_s7 = inlined_call_operand.vmem [shape: f32[128,256], index: 7, kind: input, shape index: {}]   ;;  %s5180_s8 = inlined_call_operand.vmem [shape: f32[1,256], index: 8, kind: input, shape index: {}]   ;;  %s5181_s9 = inlined_call_operand.hbm [shape: f32[256,512], index: 9, kind: input, shape index: {}]   ;;  %s5182_s10 = inlined_call_operand.hbm [shape: f32[256,512], index: 10, kind: input, shape index: {}]   ;;  %s5183_s11 = inlined_call_operand.vmem [shape: f32[1,512], index: 11, kind: input, shape index: {}]   ;;  %s5184_s12 = inlined_call_operand.hbm [shape: f32[512,256], index: 12, kind: input, shape index: {}]   ;;  %s5185_s13 = inlined_call_operand.hbm [shape: f32[512,256], index: 13, kind: input, shape index: {}]   ;;  %s5186_s14 = inlined_call_operand.vmem [shape: f32[1,256], index: 14, kind: input, shape index: {}]   ;;  %s5187_s15 = inlined_call_operand.vmem [shape: f32[256,16], index: 15, kind: input, shape index: {}]   ;;  %s5188_s16 = inlined_call_operand.vmem [shape: f32[16,256], index: 16, kind: input, shape index: {}]   ;;  %s5189_s17 = inlined_call_operand.vmem [shape: f32[512,8], index: 17, kind: input, shape index: {}]   ;;  %s5190_s18 = inlined_call_operand.vmem [shape: f32[8,512], index: 18, kind: input, shape index: {}]   ;;  %s5191_s19 = inlined_call_operand.vmem [shape: f32[2,256], index: 19, kind: output, shape index: {}]  }
   0x1   :  { %5230 = sst [smem:[#allocation46_spill]] %s5172_s0 }
   0x2   :  { %5231 = sst [smem:[#allocation47_spill]] %s5173_s1 }
   0x3   :  { %5232 = sst [smem:[#allocation48_spill]] %s5174_s2 }
   0x4   :  { %5233 = sst [smem:[#allocation49_spill]] %s5175_s3 }
   0x5   :  { %24 = vsyncpa [#allocation3], 0 }
   0x6   :  { %25 = vsyncpa [#allocation5], 0 }
   0x7   :  { %26 = vsyncpa [#allocation8], 0 }
   0x8   :  { %27 = vsyncpa [#allocation11], 0  ;;  %s3881_s0 = smov [#allocation4]  }
   0x9   :  { %s49_s30 = sshll.u32 %s3881_s0, 4  ;;  %s50_s30 = int_to_ptr.vmem [resolvable:$true] %s49_s30 }
   0xa   :  { %s3761_s20 = scalar_lea.vmem %s50_s30, 16384  ;;  %p3766_p1 = scmp.lt.s32.totalorder %s50_s30, %s50_s30 }
   0xb   :  { %p3762_p0 = scmp.ne.s32.totalorder %s50_s30, %s3761_s20  ;;  %p3767_p2 = scmp.lt.s32.totalorder %s3761_s20, %s3761_s20 }
   0xd   :  { %p3768_p3 = por %p3767_p2, %p3766_p1 }
   0xf   :  { %p3769_p4 = pnand %p3768_p3, %p3762_p0 }
  0x11   :  { %3772 = shalt.err (!%p3769_p4)
}
  0x12   :  { %s5192_s21 = smov 256   ;;  %s5194_s1 = smov 16  }
  0x13   :  { %s5234_s23 = sld [smem:[#allocation49_spill]]  ;;  %s3884_s24 = smov [#allocation7]  }
  0x14   :  { %s83_s25 = sshll.u32 %s3884_s24, 4  ;;  %s3885_s3 = smov [#allocation2]   ;;  %s84_s25 = int_to_ptr.vmem [resolvable:$true] %s83_s25 }
  0x15   :  { %s35_s26 = sshll.u32 %s3885_s3, 4  ;;  %s3781_s27 = scalar_lea.vmem %s84_s25, 16384  ;;  %s36_s26 = int_to_ptr.vmem [resolvable:$true] %s35_s26 }
  0x16   :  { %p3782_p5 = scmp.ne.s32.totalorder %s84_s25, %s3781_s27  ;;  %p3786_p6 = scmp.lt.s32.totalorder %s84_s25, %s84_s25 }
  0x17   :  { %p3787_p7 = scmp.lt.s32.totalorder %s3781_s27, %s3781_s27 }
  0x19   :  { %55 = dma.hbm_to_vmem [thread:$0]  %s5234_s23, 16384, %s50_s30, [#allocation5], %s5192_s21, %s5192_s21, %s5194_s1  }
  0x1a   :  { %p3788_p8 = por %p3787_p7, %p3786_p6 }
  0x1c   :  { %p3789_p9 = pnand %p3788_p8, %p3782_p5 }
  0x1e   :  { %3792 = shalt.err (!%p3789_p9)
}
  0x1f   :  { %s3886_s28 = smov 512   ;;  %s3887_s29 = smov 32  }
  0x20   :  { %89 = dma.hbm_to_vmem [thread:$0]  %s5182_s10, 16384, %s84_s25, [#allocation8], %s3886_s28, %s3886_s28, %s3887_s29  }
  0x21   :  { %s3801_s30 = scalar_lea.vmem %s36_s26, 16384  ;;  %p3806_p11 = scmp.lt.s32.totalorder %s36_s26, %s36_s26 }
  0x22   :  { %p3802_p10 = scmp.ne.s32.totalorder %s36_s26, %s3801_s30  ;;  %p3807_p12 = scmp.lt.s32.totalorder %s3801_s30, %s3801_s30 }
  0x24   :  { %p3808_p13 = por %p3807_p12, %p3806_p11 }
  0x26   :  { %p3809_p0 = pnand %p3808_p13, %p3802_p10 }
  0x28   :  { %3812 = shalt.err (!%p3809_p0)
}
  0x29   :  { %s5235_s23 = sld [smem:[#allocation47_spill]]  ;;  %s3888_s24 = smov [#allocation6]  }
  0x2a   :  { %s71_s3 = sshll.u32 %s3888_s24, 4  ;;  %s3889_s27 = smov [#allocation9]   ;;  %s72_s3 = int_to_ptr.vmem [resolvable:$true] %s71_s3 }
  0x2b   :  { %s97_s21 = sshll.u32 %s3889_s27, 4  ;;  %s3821_s1 = scalar_lea.vmem %s72_s3, 16384  ;;  %s98_s21 = int_to_ptr.vmem [resolvable:$true] %s97_s21 }
  0x2c   :  { %p3822_p1 = scmp.ne.s32.totalorder %s72_s3, %s3821_s1  ;;  %p3826_p2 = scmp.lt.s32.totalorder %s72_s3, %s72_s3 }
  0x2d   :  { %p3827_p3 = scmp.lt.s32.totalorder %s3821_s1, %s3821_s1 }
  0x2f   :  { %41 = dma.hbm_to_vmem [thread:$0]  %s5235_s23, 16384, %s36_s26, [#allocation3], %s3886_s28, %s3886_s28, %s3887_s29  }
  0x30   :  { %p3828_p4 = por %p3827_p3, %p3826_p2 }
  0x32   :  { %p3829_p5 = pnand %p3828_p4, %p3822_p1 }
  0x34   :  { %3832 = shalt.err (!%p3829_p5)
}
  0x35   :  { %77 = dma.hbm_to_vmem [thread:$0]  %s5181_s9, 16384, %s72_s3, [#allocation5], %s3886_s28, %s3886_s28, %s3887_s29  }
  0x36   :  { %s3841_s0 = scalar_lea.vmem %s98_s21, 16384  ;;  %p3846_p7 = scmp.lt.s32.totalorder %s98_s21, %s98_s21 }
  0x37   :  { %p3842_p6 = scmp.ne.s32.totalorder %s98_s21, %s3841_s0  ;;  %p3847_p8 = scmp.lt.s32.totalorder %s3841_s0, %s3841_s0 }
  0x39   :  { %p3848_p9 = por %p3847_p8, %p3846_p7 }
  0x3b   :  { %p3849_p10 = pnand %p3848_p9, %p3842_p6 }
  0x3d   :  { %3852 = shalt.err (!%p3849_p10)
}
  0x3e   :  { %s5236_s26 = smov 16   ;;  %s5237_s20 = smov 256  }
  0x3f   :  { %103 = dma.hbm_to_vmem [thread:$0]  %s5184_s12, 16384, %s98_s21, [#allocation8], %s5237_s20, %s5237_s20, %s5236_s26  }
  0x40   :  { %s3890_s22 = smov [#allocation10]  }
  0x41   :  { %s109_s2 = sshll.u32 %s3890_s22, 4  ;;  %s110_s2 = int_to_ptr.vmem [resolvable:$true] %s109_s2 }
  0x42   :  { %s3861_s23 = scalar_lea.vmem %s110_s2, 16384  ;;  %p3866_p12 = scmp.lt.s32.totalorder %s110_s2, %s110_s2 }
  0x43   :  { %p3862_p11 = scmp.ne.s32.totalorder %s110_s2, %s3861_s23  ;;  %p3867_p13 = scmp.lt.s32.totalorder %s3861_s23, %s3861_s23 }
  0x45   :  { %p3868_p0 = por %p3867_p13, %p3866_p12 }
  0x47   :  { %p3869_p1 = pnand %p3868_p0, %p3862_p11 }
  0x49   :  { %3872 = shalt.err (!%p3869_p1)
}
  0x4a   :  { %115 = dma.hbm_to_vmem [thread:$0]  %s5185_s13, 16384, %s110_s2, [#allocation11], %s5237_s20, %s5237_s20, %s5236_s26  }
  0x4b   :  { %3873 = dma.done.wait [#allocation3], 16384  }
  0x4c   :  { %3874 = vsyncadd [#allocation3], 4294950912 }
  0x4d   :  { %3875 = dma.done.wait [#allocation5], 32768  }
  0x4e   :  { %3876 = vsyncadd [#allocation5], 4294934528 }
  0x4f   :  { %3877 = dma.done.wait [#allocation8], 32768  }
  0x50   :  { %3878 = vsyncadd [#allocation8], 4294934528 }
  0x51   :  { %3879 = dma.done.wait [#allocation11], 16384  }
  0x52   :  { %3880 = vsyncadd [#allocation11], 4294950912  ;;  %v206_v0 = vld [vmem:[#allocation2 + $0x1e8] sm:$0xff]  ;;  %v208_v1 = vld [vmem:[#allocation2 + $0x1f8] sm:$0xff]  ;;  %s5238_s21 = sld [smem:[#allocation46_spill]]  ;;  %vm848_vm4 = vcmask 130048  }
  0x53   :  { %v205_v2 = vld [vmem:[#allocation2 + $0x1e0] sm:$0xff]  ;;  %306 = vmatprep.subr.mxu0 %v206_v0  ;;  %377 = vmatprep.subr.mxu1 %v208_v1  ;;  %v207_v3 = vld [vmem:[#allocation2 + $0x1f0] sm:$0xff]  ;;  %v202_v4 = vld [vmem:[#allocation2 + $0x1c8] sm:$0xff]  ;;  %s5239_s10 = sld [smem:[#allocation48_spill]]  ;;  %vm2378_vm7 = vcmask 64512  }
  0x54   :  { %v204_v5 = vld [vmem:[#allocation2 + $0x1d8] sm:$0xff]  ;;  %307 = vmatpush1.msra.mxu0 %v205_v2  ;;  %378 = vmatpush1.msra.mxu1 %v207_v3  ;;  %v201_v6 = vld [vmem:[#allocation2 + $0x1c0] sm:$0xff]  ;;  %v203_v7 = vld [vmem:[#allocation2 + $0x1d0] sm:$0xff] }
  0x55   :  { %v198_v8 = vld [vmem:[#allocation2 + $0x1a8] sm:$0xff]  ;;  %308 = vmatprep.subr.mxu0 %v202_v4  ;;  %379 = vmatprep.subr.mxu1 %v204_v5  ;;  %v200_v9 = vld [vmem:[#allocation2 + $0x1b8] sm:$0xff]  ;;  %v197_v10 = vld [vmem:[#allocation2 + $0x1a0] sm:$0xff] }
  0x56   :  { %v199_v11 = vld [vmem:[#allocation2 + $0x1b0] sm:$0xff]  ;;  %309 = vmatpush1.msra.mxu0 %v201_v6  ;;  %380 = vmatpush1.msra.mxu1 %v203_v7  ;;  %v194_v12 = vld [vmem:[#allocation2 + $0x188] sm:$0xff]  ;;  %v196_v13 = vld [vmem:[#allocation2 + $0x198] sm:$0xff] }
  0x57   :  { %310 = vmatprep.subr.mxu0 %v198_v8  ;;  %381 = vmatprep.subr.mxu1 %v200_v9  ;;  %v193_v14 = vld [vmem:[#allocation2 + $0x180] sm:$0xff]  ;;  %v195_v15 = vld [vmem:[#allocation2 + $0x190] sm:$0xff]  ;;  %v190_v16 = vld [vmem:[#allocation2 + $0x168] sm:$0xff] }
  0x58   :  { %311 = vmatpush1.msra.mxu0 %v197_v10  ;;  %382 = vmatpush1.msra.mxu1 %v199_v11  ;;  %v192_v17 = vld [vmem:[#allocation2 + $0x178] sm:$0xff]  ;;  %v189_v18 = vld [vmem:[#allocation2 + $0x160] sm:$0xff]  ;;  %v191_v19 = vld [vmem:[#allocation2 + $0x170] sm:$0xff] }
  0x59   :  { %312 = vmatprep.subr.mxu0 %v194_v12  ;;  %383 = vmatprep.subr.mxu1 %v196_v13  ;;  %v186_v20 = vld [vmem:[#allocation2 + $0x148] sm:$0xff]  ;;  %v188_v21 = vld [vmem:[#allocation2 + $0x158] sm:$0xff]  ;;  %v185_v22 = vld [vmem:[#allocation2 + $0x140] sm:$0xff] }
  0x5a   :  { %313 = vmatpush1.msra.mxu0 %v193_v14  ;;  %384 = vmatpush1.msra.mxu1 %v195_v15  ;;  %v187_v23 = vld [vmem:[#allocation2 + $0x150] sm:$0xff]  ;;  %v182_v24 = vld [vmem:[#allocation2 + $0x128] sm:$0xff]  ;;  %v184_v25 = vld [vmem:[#allocation2 + $0x138] sm:$0xff] }
  0x5b   :  { %314 = vmatprep.subr.mxu0 %v190_v16  ;;  %385 = vmatprep.subr.mxu1 %v192_v17  ;;  %v181_v26 = vld [vmem:[#allocation2 + $0x120] sm:$0xff]  ;;  %v183_v27 = vld [vmem:[#allocation2 + $0x130] sm:$0xff]  ;;  %v178_v28 = vld [vmem:[#allocation2 + $0x108] sm:$0xff] }
  0x5c   :  { %315 = vmatpush1.msra.mxu0 %v189_v18  ;;  %386 = vmatpush1.msra.mxu1 %v191_v19  ;;  %v180_v29 = vld [vmem:[#allocation2 + $0x118] sm:$0xff]  ;;  %v177_v30 = vld [vmem:[#allocation2 + $0x100] sm:$0xff]  ;;  %v179_v31 = vld [vmem:[#allocation2 + $0x110] sm:$0xff] }
  0x5d   :  { %316 = vmatprep.subr.mxu0 %v186_v20  ;;  %387 = vmatprep.subr.mxu1 %v188_v21  ;;  %v174_v32 = vld [vmem:[#allocation2 + $0xe8] sm:$0xff]  ;;  %v176_v33 = vld [vmem:[#allocation2 + $0xf8] sm:$0xff]  ;;  %v173_v34 = vld [vmem:[#allocation2 + $0xe0] sm:$0xff] }
  0x5e   :  { %317 = vmatpush1.msra.mxu0 %v185_v22  ;;  %388 = vmatpush1.msra.mxu1 %v187_v23  ;;  %v175_v35 = vld [vmem:[#allocation2 + $0xf0] sm:$0xff]  ;;  %v170_v36 = vld [vmem:[#allocation2 + $0xc8] sm:$0xff]  ;;  %v172_v37 = vld [vmem:[#allocation2 + $0xd8] sm:$0xff] }
  0x5f   :  { %318 = vmatprep.subr.mxu0 %v182_v24  ;;  %389 = vmatprep.subr.mxu1 %v184_v25  ;;  %v169_v38 = vld [vmem:[#allocation2 + $0xc0] sm:$0xff]  ;;  %v171_v39 = vld [vmem:[#allocation2 + $0xd0] sm:$0xff]  ;;  %v166_v40 = vld [vmem:[#allocation2 + $0xa8] sm:$0xff] }
  0x60   :  { %319 = vmatpush1.msra.mxu0 %v181_v26  ;;  %390 = vmatpush1.msra.mxu1 %v183_v27  ;;  %v168_v41 = vld [vmem:[#allocation2 + $0xb8] sm:$0xff]  ;;  %v165_v42 = vld [vmem:[#allocation2 + $0xa0] sm:$0xff]  ;;  %v167_v43 = vld [vmem:[#allocation2 + $0xb0] sm:$0xff] }
  0x61   :  { %320 = vmatprep.subr.mxu0 %v178_v28  ;;  %391 = vmatprep.subr.mxu1 %v180_v29  ;;  %v162_v44 = vld [vmem:[#allocation2 + $0x88] sm:$0xff]  ;;  %v164_v45 = vld [vmem:[#allocation2 + $0x98] sm:$0xff]  ;;  %v161_v46 = vld [vmem:[#allocation2 + $0x80] sm:$0xff] }
  0x62   :  { %321 = vmatpush1.msra.mxu0 %v177_v30  ;;  %392 = vmatpush1.msra.mxu1 %v179_v31  ;;  %v163_v47 = vld [vmem:[#allocation2 + $0x90] sm:$0xff]  ;;  %v158_v48 = vld [vmem:[#allocation2 + $0x68] sm:$0xff]  ;;  %v160_v49 = vld [vmem:[#allocation2 + $0x78] sm:$0xff] }
  0x63   :  { %322 = vmatprep.subr.mxu0 %v174_v32  ;;  %393 = vmatprep.subr.mxu1 %v176_v33  ;;  %v157_v50 = vld [vmem:[#allocation2 + $0x60] sm:$0xff]  ;;  %v159_v51 = vld [vmem:[#allocation2 + $0x70] sm:$0xff]  ;;  %v154_v52 = vld [vmem:[#allocation2 + $0x48] sm:$0xff] }
  0x64   :  { %323 = vmatpush1.msra.mxu0 %v173_v34  ;;  %394 = vmatpush1.msra.mxu1 %v175_v35  ;;  %v156_v53 = vld [vmem:[#allocation2 + $0x58] sm:$0xff]  ;;  %v153_v54 = vld [vmem:[#allocation2 + $0x40] sm:$0xff]  ;;  %v155_v55 = vld [vmem:[#allocation2 + $0x50] sm:$0xff] }
  0x65   :  { %324 = vmatprep.subr.mxu0 %v170_v36  ;;  %395 = vmatprep.subr.mxu1 %v172_v37  ;;  %v150_v56 = vld [vmem:[#allocation2 + $0x28] sm:$0xff]  ;;  %v152_v57 = vld [vmem:[#allocation2 + $0x38] sm:$0xff]  ;;  %v149_v58 = vld [vmem:[#allocation2 + $0x20] sm:$0xff] }
  0x66   :  { %325 = vmatpush1.msra.mxu0 %v169_v38  ;;  %396 = vmatpush1.msra.mxu1 %v171_v39  ;;  %v151_v59 = vld [vmem:[#allocation2 + $0x30] sm:$0xff]  ;;  %v146_v60 = vld [vmem:[#allocation2 + $0x8] sm:$0xff]  ;;  %v148_v61 = vld [vmem:[#allocation2 + $0x18] sm:$0xff] }
  0x67   :  { %326 = vmatprep.subr.mxu0 %v166_v40  ;;  %397 = vmatprep.subr.mxu1 %v168_v41  ;;  %v145_v62 = vld [vmem:[#allocation2] sm:$0xff]  ;;  %v147_v63 = vld [vmem:[#allocation2 + $0x10] sm:$0xff]  ;;  %v270_v0 = vld [vmem:[#allocation2 + $0x3e8] sm:$0xff] }
  0x68   :  { %327 = vmatpush1.msra.mxu0 %v165_v42  ;;  %398 = vmatpush1.msra.mxu1 %v167_v43  ;;  %v272_v1 = vld [vmem:[#allocation2 + $0x3f8] sm:$0xff]  ;;  %v269_v2 = vld [vmem:[#allocation2 + $0x3e0] sm:$0xff]  ;;  %v271_v3 = vld [vmem:[#allocation2 + $0x3f0] sm:$0xff] }
  0x69   :  { %328 = vmatprep.subr.mxu0 %v162_v44  ;;  %399 = vmatprep.subr.mxu1 %v164_v45  ;;  %v266_v4 = vld [vmem:[#allocation2 + $0x3c8] sm:$0xff]  ;;  %v268_v5 = vld [vmem:[#allocation2 + $0x3d8] sm:$0xff]  ;;  %v265_v6 = vld [vmem:[#allocation2 + $0x3c0] sm:$0xff] }
  0x6a   :  { %329 = vmatpush1.msra.mxu0 %v161_v46  ;;  %400 = vmatpush1.msra.mxu1 %v163_v47  ;;  %v267_v7 = vld [vmem:[#allocation2 + $0x3d0] sm:$0xff]  ;;  %v262_v8 = vld [vmem:[#allocation2 + $0x3a8] sm:$0xff]  ;;  %v264_v9 = vld [vmem:[#allocation2 + $0x3b8] sm:$0xff] }
  0x6b   :  { %330 = vmatprep.subr.mxu0 %v158_v48  ;;  %401 = vmatprep.subr.mxu1 %v160_v49  ;;  %v261_v10 = vld [vmem:[#allocation2 + $0x3a0] sm:$0xff]  ;;  %v263_v11 = vld [vmem:[#allocation2 + $0x3b0] sm:$0xff]  ;;  %v258_v12 = vld [vmem:[#allocation2 + $0x388] sm:$0xff] }
  0x6c   :  { %331 = vmatpush1.msra.mxu0 %v157_v50  ;;  %402 = vmatpush1.msra.mxu1 %v159_v51  ;;  %v260_v13 = vld [vmem:[#allocation2 + $0x398] sm:$0xff]  ;;  %v257_v14 = vld [vmem:[#allocation2 + $0x380] sm:$0xff]  ;;  %v259_v15 = vld [vmem:[#allocation2 + $0x390] sm:$0xff] }
  0x6d   :  { %332 = vmatprep.subr.mxu0 %v154_v52  ;;  %403 = vmatprep.subr.mxu1 %v156_v53  ;;  %v254_v16 = vld [vmem:[#allocation2 + $0x368] sm:$0xff]  ;;  %v256_v17 = vld [vmem:[#allocation2 + $0x378] sm:$0xff]  ;;  %v253_v18 = vld [vmem:[#allocation2 + $0x360] sm:$0xff] }
  0x6e   :  { %333 = vmatpush1.msra.mxu0 %v153_v54  ;;  %404 = vmatpush1.msra.mxu1 %v155_v55  ;;  %v255_v19 = vld [vmem:[#allocation2 + $0x370] sm:$0xff]  ;;  %v250_v20 = vld [vmem:[#allocation2 + $0x348] sm:$0xff]  ;;  %v252_v21 = vld [vmem:[#allocation2 + $0x358] sm:$0xff] }
  0x6f   :  { %334 = vmatprep.subr.mxu0 %v150_v56  ;;  %405 = vmatprep.subr.mxu1 %v152_v57  ;;  %v249_v22 = vld [vmem:[#allocation2 + $0x340] sm:$0xff]  ;;  %v251_v23 = vld [vmem:[#allocation2 + $0x350] sm:$0xff]  ;;  %v246_v24 = vld [vmem:[#allocation2 + $0x328] sm:$0xff] }
  0x70   :  { %335 = vmatpush1.msra.mxu0 %v149_v58  ;;  %406 = vmatpush1.msra.mxu1 %v151_v59  ;;  %v248_v25 = vld [vmem:[#allocation2 + $0x338] sm:$0xff]  ;;  %v245_v26 = vld [vmem:[#allocation2 + $0x320] sm:$0xff]  ;;  %v247_v27 = vld [vmem:[#allocation2 + $0x330] sm:$0xff] }
  0x71   :  { %336 = vmatprep.subr.mxu0 %v146_v60  ;;  %407 = vmatprep.subr.mxu1 %v148_v61  ;;  %v242_v28 = vld [vmem:[#allocation2 + $0x308] sm:$0xff]  ;;  %v244_v29 = vld [vmem:[#allocation2 + $0x318] sm:$0xff]  ;;  %v241_v30 = vld [vmem:[#allocation2 + $0x300] sm:$0xff] }
  0x72   :  { %337 = vmatpush1.msra.mxu0 %v145_v62  ;;  %408 = vmatpush1.msra.mxu1 %v147_v63  ;;  %v243_v31 = vld [vmem:[#allocation2 + $0x310] sm:$0xff]  ;;  %v238_v32 = vld [vmem:[#allocation2 + $0x2e8] sm:$0xff]  ;;  %v240_v33 = vld [vmem:[#allocation2 + $0x2f8] sm:$0xff] }
  0x73   :  { %338 = vmatprep.subr.mxu0 %v270_v0  ;;  %409 = vmatprep.subr.mxu1 %v272_v1  ;;  %v237_v34 = vld [vmem:[#allocation2 + $0x2e0] sm:$0xff]  ;;  %v239_v35 = vld [vmem:[#allocation2 + $0x2f0] sm:$0xff]  ;;  %v234_v36 = vld [vmem:[#allocation2 + $0x2c8] sm:$0xff] }
  0x74   :  { %339 = vmatpush2.msra.mxu0 %v269_v2  ;;  %410 = vmatpush2.msra.mxu1 %v271_v3  ;;  %v236_v37 = vld [vmem:[#allocation2 + $0x2d8] sm:$0xff]  ;;  %v233_v38 = vld [vmem:[#allocation2 + $0x2c0] sm:$0xff]  ;;  %v235_v39 = vld [vmem:[#allocation2 + $0x2d0] sm:$0xff] }
  0x75   :  { %340 = vmatprep.subr.mxu0 %v266_v4  ;;  %411 = vmatprep.subr.mxu1 %v268_v5  ;;  %v230_v40 = vld [vmem:[#allocation2 + $0x2a8] sm:$0xff]  ;;  %v232_v41 = vld [vmem:[#allocation2 + $0x2b8] sm:$0xff]  ;;  %v229_v42 = vld [vmem:[#allocation2 + $0x2a0] sm:$0xff] }
  0x76   :  { %341 = vmatpush2.msra.mxu0 %v265_v6  ;;  %412 = vmatpush2.msra.mxu1 %v267_v7  ;;  %v231_v43 = vld [vmem:[#allocation2 + $0x2b0] sm:$0xff]  ;;  %v226_v44 = vld [vmem:[#allocation2 + $0x288] sm:$0xff]  ;;  %v228_v45 = vld [vmem:[#allocation2 + $0x298] sm:$0xff] }
  0x77   :  { %342 = vmatprep.subr.mxu0 %v262_v8  ;;  %413 = vmatprep.subr.mxu1 %v264_v9  ;;  %v225_v46 = vld [vmem:[#allocation2 + $0x280] sm:$0xff]  ;;  %v227_v47 = vld [vmem:[#allocation2 + $0x290] sm:$0xff]  ;;  %v222_v48 = vld [vmem:[#allocation2 + $0x268] sm:$0xff] }
  0x78   :  { %343 = vmatpush2.msra.mxu0 %v261_v10  ;;  %414 = vmatpush2.msra.mxu1 %v263_v11  ;;  %v224_v49 = vld [vmem:[#allocation2 + $0x278] sm:$0xff]  ;;  %v221_v50 = vld [vmem:[#allocation2 + $0x260] sm:$0xff]  ;;  %v223_v51 = vld [vmem:[#allocation2 + $0x270] sm:$0xff] }
  0x79   :  { %344 = vmatprep.subr.mxu0 %v258_v12  ;;  %415 = vmatprep.subr.mxu1 %v260_v13  ;;  %v218_v52 = vld [vmem:[#allocation2 + $0x248] sm:$0xff]  ;;  %v220_v53 = vld [vmem:[#allocation2 + $0x258] sm:$0xff]  ;;  %v217_v54 = vld [vmem:[#allocation2 + $0x240] sm:$0xff] }
  0x7a   :  { %345 = vmatpush2.msra.mxu0 %v257_v14  ;;  %416 = vmatpush2.msra.mxu1 %v259_v15  ;;  %v219_v55 = vld [vmem:[#allocation2 + $0x250] sm:$0xff]  ;;  %v3406_v56 = vld.sshfl [vmem:[%s5238_s21] sm:$0x33 pattern:$0x76325410]  ;;  %v214_v57 = vld [vmem:[#allocation2 + $0x228] sm:$0xff] }
  0x7b   :  { %346 = vmatprep.subr.mxu0 %v254_v16  ;;  %417 = vmatprep.subr.mxu1 %v256_v17  ;;  %v216_v58 = vld [vmem:[#allocation2 + $0x238] sm:$0xff]  ;;  %v213_v59 = vld [vmem:[#allocation2 + $0x220] sm:$0xff]  ;;  %v215_v60 = vld [vmem:[#allocation2 + $0x230] sm:$0xff]  ;;  %v303_v63 = vcombine.high %v3406_v56, %v3406_v56 }
  0x7c   :  { %347 = vmatpush2.msra.mxu0 %v253_v18  ;;  %418 = vmatpush2.msra.mxu1 %v255_v19  ;;  %v210_v61 = vld [vmem:[#allocation2 + $0x208] sm:$0xff]  ;;  %v212_v62 = vld [vmem:[#allocation2 + $0x218] sm:$0xff]  ;;  %v209_v0 = vld [vmem:[#allocation2 + $0x200] sm:$0xff] }
  0x7d   :  { %348 = vmatprep.subr.mxu0 %v250_v20  ;;  %419 = vmatprep.subr.mxu1 %v252_v21  ;;  %v211_v1 = vld [vmem:[#allocation2 + $0x210] sm:$0xff]  ;;  %v491_v2 = vld [vmem:[#allocation4 + $0xf8] sm:$0xff]  ;;  %v489_v6 = vld [vmem:[#allocation4 + $0xe8] sm:$0xff] }
  0x7e   :  { %349 = vmatpush2.msra.mxu0 %v249_v22  ;;  %420 = vmatpush2.msra.mxu1 %v251_v23  ;;  %v555_v3 = vld [vmem:[#allocation4 + $0x2f8] sm:$0xff]  ;;  %v490_v4 = vld [vmem:[#allocation4 + $0xf0] sm:$0xff]  ;;  %v553_v7 = vld [vmem:[#allocation4 + $0x2e8] sm:$0xff] }
  0x7f   :  { %350 = vmatprep.subr.mxu0 %v246_v24  ;;  %421 = vmatprep.subr.mxu1 %v248_v25  ;;  %v554_v5 = vld [vmem:[#allocation4 + $0x2f0] sm:$0xff]  ;;  %v488_v8 = vld [vmem:[#allocation4 + $0xe0] sm:$0xff]  ;;  %v487_v10 = vld [vmem:[#allocation4 + $0xd8] sm:$0xff] }
  0x80   :  { %351 = vmatpush2.msra.mxu0 %v245_v26  ;;  %422 = vmatpush2.msra.mxu1 %v247_v27  ;;  %v552_v9 = vld [vmem:[#allocation4 + $0x2e0] sm:$0xff]  ;;  %v551_v11 = vld [vmem:[#allocation4 + $0x2d8] sm:$0xff]  ;;  %v486_v12 = vld [vmem:[#allocation4 + $0xd0] sm:$0xff] }
  0x81   :  { %352 = vmatprep.subr.mxu0 %v242_v28  ;;  %423 = vmatprep.subr.mxu1 %v244_v29  ;;  %v550_v13 = vld [vmem:[#allocation4 + $0x2d0] sm:$0xff]  ;;  %v485_v14 = vld [vmem:[#allocation4 + $0xc8] sm:$0xff]  ;;  %v484_v16 = vld [vmem:[#allocation4 + $0xc0] sm:$0xff] }
  0x82   :  { %353 = vmatpush2.msra.mxu0 %v241_v30  ;;  %424 = vmatpush2.msra.mxu1 %v243_v31  ;;  %v549_v15 = vld [vmem:[#allocation4 + $0x2c8] sm:$0xff]  ;;  %v548_v17 = vld [vmem:[#allocation4 + $0x2c0] sm:$0xff]  ;;  %v483_v18 = vld [vmem:[#allocation4 + $0xb8] sm:$0xff] }
  0x83   :  { %354 = vmatprep.subr.mxu0 %v238_v32  ;;  %425 = vmatprep.subr.mxu1 %v240_v33  ;;  %v547_v19 = vld [vmem:[#allocation4 + $0x2b8] sm:$0xff]  ;;  %v482_v20 = vld [vmem:[#allocation4 + $0xb0] sm:$0xff]  ;;  %v481_v22 = vld [vmem:[#allocation4 + $0xa8] sm:$0xff] }
  0x84   :  { %355 = vmatpush2.msra.mxu0 %v237_v34  ;;  %426 = vmatpush2.msra.mxu1 %v239_v35  ;;  %v546_v21 = vld [vmem:[#allocation4 + $0x2b0] sm:$0xff]  ;;  %v545_v23 = vld [vmem:[#allocation4 + $0x2a8] sm:$0xff]  ;;  %v480_v24 = vld [vmem:[#allocation4 + $0xa0] sm:$0xff] }
  0x85   :  { %356 = vmatprep.subr.mxu0 %v234_v36  ;;  %427 = vmatprep.subr.mxu1 %v236_v37  ;;  %v544_v25 = vld [vmem:[#allocation4 + $0x2a0] sm:$0xff]  ;;  %v479_v26 = vld [vmem:[#allocation4 + $0x98] sm:$0xff]  ;;  %v478_v28 = vld [vmem:[#allocation4 + $0x90] sm:$0xff] }
  0x86   :  { %357 = vmatpush2.msra.mxu0 %v233_v38  ;;  %428 = vmatpush2.msra.mxu1 %v235_v39  ;;  %v543_v27 = vld [vmem:[#allocation4 + $0x298] sm:$0xff]  ;;  %v542_v29 = vld [vmem:[#allocation4 + $0x290] sm:$0xff]  ;;  %v477_v30 = vld [vmem:[#allocation4 + $0x88] sm:$0xff] }
  0x87   :  { %358 = vmatprep.subr.mxu0 %v230_v40  ;;  %429 = vmatprep.subr.mxu1 %v232_v41  ;;  %v541_v31 = vld [vmem:[#allocation4 + $0x288] sm:$0xff]  ;;  %v476_v32 = vld [vmem:[#allocation4 + $0x80] sm:$0xff]  ;;  %v475_v34 = vld [vmem:[#allocation4 + $0x78] sm:$0xff] }
  0x88   :  { %359 = vmatpush2.msra.mxu0 %v229_v42  ;;  %430 = vmatpush2.msra.mxu1 %v231_v43  ;;  %v540_v33 = vld [vmem:[#allocation4 + $0x280] sm:$0xff]  ;;  %v539_v35 = vld [vmem:[#allocation4 + $0x278] sm:$0xff]  ;;  %v474_v36 = vld [vmem:[#allocation4 + $0x70] sm:$0xff] }
  0x89   :  { %360 = vmatprep.subr.mxu0 %v226_v44  ;;  %431 = vmatprep.subr.mxu1 %v228_v45  ;;  %v538_v37 = vld [vmem:[#allocation4 + $0x270] sm:$0xff]  ;;  %v473_v38 = vld [vmem:[#allocation4 + $0x68] sm:$0xff]  ;;  %v472_v40 = vld [vmem:[#allocation4 + $0x60] sm:$0xff] }
  0x8a   :  { %361 = vmatpush2.msra.mxu0 %v225_v46  ;;  %432 = vmatpush2.msra.mxu1 %v227_v47  ;;  %v537_v39 = vld [vmem:[#allocation4 + $0x268] sm:$0xff]  ;;  %v536_v41 = vld [vmem:[#allocation4 + $0x260] sm:$0xff]  ;;  %v471_v42 = vld [vmem:[#allocation4 + $0x58] sm:$0xff] }
  0x8b   :  { %362 = vmatprep.subr.mxu0 %v222_v48  ;;  %433 = vmatprep.subr.mxu1 %v224_v49  ;;  %v535_v43 = vld [vmem:[#allocation4 + $0x258] sm:$0xff]  ;;  %v470_v44 = vld [vmem:[#allocation4 + $0x50] sm:$0xff]  ;;  %v469_v46 = vld [vmem:[#allocation4 + $0x48] sm:$0xff] }
  0x8c   :  { %363 = vmatpush2.msra.mxu0 %v221_v50  ;;  %434 = vmatpush2.msra.mxu1 %v223_v51  ;;  %v534_v45 = vld [vmem:[#allocation4 + $0x250] sm:$0xff]  ;;  %v533_v47 = vld [vmem:[#allocation4 + $0x248] sm:$0xff]  ;;  %v468_v48 = vld [vmem:[#allocation4 + $0x40] sm:$0xff] }
  0x8d   :  { %364 = vmatprep.subr.mxu0 %v218_v52  ;;  %435 = vmatprep.subr.mxu1 %v220_v53  ;;  %v532_v49 = vld [vmem:[#allocation4 + $0x240] sm:$0xff]  ;;  %v467_v50 = vld [vmem:[#allocation4 + $0x38] sm:$0xff]  ;;  %v466_v52 = vld [vmem:[#allocation4 + $0x30] sm:$0xff] }
  0x8e   :  { %365 = vmatpush2.msra.mxu0 %v217_v54  ;;  %436 = vmatpush2.msra.mxu1 %v219_v55  ;;  %v531_v51 = vld [vmem:[#allocation4 + $0x238] sm:$0xff]  ;;  %v530_v53 = vld [vmem:[#allocation4 + $0x230] sm:$0xff]  ;;  %v465_v54 = vld [vmem:[#allocation4 + $0x28] sm:$0xff] }
  0x8f   :  { %366 = vmatprep.subr.mxu0 %v214_v57  ;;  %437 = vmatprep.subr.mxu1 %v216_v58  ;;  %v529_v55 = vld [vmem:[#allocation4 + $0x228] sm:$0xff]  ;;  %v528_v57 = vld [vmem:[#allocation4 + $0x220] sm:$0xff]  ;;  %v463_v58 = vld [vmem:[#allocation4 + $0x18] sm:$0xff] }
  0x90   :  { %367 = vmatpush2.msra.mxu0 %v213_v59  ;;  %438 = vmatpush2.msra.mxu1 %v215_v60  ;;  %v527_v59 = vld [vmem:[#allocation4 + $0x218] sm:$0xff]  ;;  %v462_v60 = vld [vmem:[#allocation4 + $0x10] sm:$0xff] }
  0x91   :  { %368 = vmatprep.subr.mxu0 %v210_v61  ;;  %439 = vmatprep.subr.mxu1 %v212_v62  ;;  %v526_v61 = vld [vmem:[#allocation4 + $0x210] sm:$0xff]  ;;  %v461_v62 = vld [vmem:[#allocation4 + $0x8] sm:$0xff] }
  0x92   :  { %369 = vmatpush2.msra.mxu0 %v209_v0  ;;  %370 = vmatprep.mubr.f32.mxu0 %v303_v63  ;;  %v460_v0 = vld [vmem:[#allocation4] sm:$0xff] }
  0x93   :  { %440 = vmatpush2.msra.mxu1 %v211_v1  ;;  %441 = vmatprep.mubr.f32.mxu1 %v303_v63  ;;  %v525_v63 = vld [vmem:[#allocation4 + $0x208] sm:$0xff]  ;;  %v524_v1 = vld [vmem:[#allocation4 + $0x200] sm:$0xff] }
  0x94   :  { %371 = vmatmul.mubr.f32.vlgmr.msra.gmra.mxu0 %v3406_v56  ;;  %442 = vmatmul.mubr.f32.vlgmr.msra.gmra.mxu1 %v3406_v56  ;;  %v464_v56 = vld [vmem:[#allocation4 + $0x20] sm:$0xff] }
  0x95   :  { %600 = vmatprep.subr.mxu0 %v491_v2  ;;  %671 = vmatprep.subr.mxu1 %v555_v3  ;;  %v523_v2 = vld [vmem:[#allocation4 + $0x1f8] sm:$0xff] }
  0x96   :  { %601 = vmatpush1.msra.mxu0 %v490_v4  ;;  %672 = vmatpush1.msra.mxu1 %v554_v5  ;;  %v587_v3 = vld [vmem:[#allocation4 + $0x3f8] sm:$0xff]  ;;  %v522_v4 = vld [vmem:[#allocation4 + $0x1f0] sm:$0xff] }
  0x97   :  { %602 = vmatprep.subr.mxu0 %v489_v6  ;;  %673 = vmatprep.subr.mxu1 %v553_v7  ;;  %v586_v5 = vld [vmem:[#allocation4 + $0x3f0] sm:$0xff]  ;;  %v521_v6 = vld [vmem:[#allocation4 + $0x1e8] sm:$0xff] }
  0x98   :  { %603 = vmatpush1.msra.mxu0 %v488_v8  ;;  %674 = vmatpush1.msra.mxu1 %v552_v9  ;;  %v585_v7 = vld [vmem:[#allocation4 + $0x3e8] sm:$0xff]  ;;  %v520_v8 = vld [vmem:[#allocation4 + $0x1e0] sm:$0xff] }
  0x99   :  { %604 = vmatprep.subr.mxu0 %v487_v10  ;;  %675 = vmatprep.subr.mxu1 %v551_v11  ;;  %v584_v9 = vld [vmem:[#allocation4 + $0x3e0] sm:$0xff]  ;;  %v519_v10 = vld [vmem:[#allocation4 + $0x1d8] sm:$0xff] }
  0x9a   :  { %605 = vmatpush1.msra.mxu0 %v486_v12  ;;  %676 = vmatpush1.msra.mxu1 %v550_v13  ;;  %v583_v11 = vld [vmem:[#allocation4 + $0x3d8] sm:$0xff]  ;;  %v518_v12 = vld [vmem:[#allocation4 + $0x1d0] sm:$0xff] }
  0x9b   :  { %606 = vmatprep.subr.mxu0 %v485_v14  ;;  %677 = vmatprep.subr.mxu1 %v549_v15  ;;  %v582_v13 = vld [vmem:[#allocation4 + $0x3d0] sm:$0xff]  ;;  %v517_v14 = vld [vmem:[#allocation4 + $0x1c8] sm:$0xff] }
  0x9c   :  { %607 = vmatpush1.msra.mxu0 %v484_v16  ;;  %678 = vmatpush1.msra.mxu1 %v548_v17  ;;  %v581_v15 = vld [vmem:[#allocation4 + $0x3c8] sm:$0xff]  ;;  %v516_v16 = vld [vmem:[#allocation4 + $0x1c0] sm:$0xff] }
  0x9d   :  { %608 = vmatprep.subr.mxu0 %v483_v18  ;;  %679 = vmatprep.subr.mxu1 %v547_v19  ;;  %v580_v17 = vld [vmem:[#allocation4 + $0x3c0] sm:$0xff]  ;;  %v515_v18 = vld [vmem:[#allocation4 + $0x1b8] sm:$0xff] }
  0x9e   :  { %609 = vmatpush1.msra.mxu0 %v482_v20  ;;  %680 = vmatpush1.msra.mxu1 %v546_v21  ;;  %v579_v19 = vld [vmem:[#allocation4 + $0x3b8] sm:$0xff]  ;;  %v514_v20 = vld [vmem:[#allocation4 + $0x1b0] sm:$0xff] }
  0x9f   :  { %610 = vmatprep.subr.mxu0 %v481_v22  ;;  %681 = vmatprep.subr.mxu1 %v545_v23  ;;  %v578_v21 = vld [vmem:[#allocation4 + $0x3b0] sm:$0xff]  ;;  %v513_v22 = vld [vmem:[#allocation4 + $0x1a8] sm:$0xff] }
  0xa0   :  { %611 = vmatpush1.msra.mxu0 %v480_v24  ;;  %682 = vmatpush1.msra.mxu1 %v544_v25  ;;  %v577_v23 = vld [vmem:[#allocation4 + $0x3a8] sm:$0xff]  ;;  %v512_v24 = vld [vmem:[#allocation4 + $0x1a0] sm:$0xff] }
  0xa1   :  { %612 = vmatprep.subr.mxu0 %v479_v26  ;;  %683 = vmatprep.subr.mxu1 %v543_v27  ;;  %v576_v25 = vld [vmem:[#allocation4 + $0x3a0] sm:$0xff]  ;;  %v511_v26 = vld [vmem:[#allocation4 + $0x198] sm:$0xff] }
  0xa2   :  { %613 = vmatpush1.msra.mxu0 %v478_v28  ;;  %684 = vmatpush1.msra.mxu1 %v542_v29  ;;  %v575_v27 = vld [vmem:[#allocation4 + $0x398] sm:$0xff]  ;;  %v510_v28 = vld [vmem:[#allocation4 + $0x190] sm:$0xff] }
  0xa3   :  { %614 = vmatprep.subr.mxu0 %v477_v30  ;;  %685 = vmatprep.subr.mxu1 %v541_v31  ;;  %v574_v29 = vld [vmem:[#allocation4 + $0x390] sm:$0xff]  ;;  %v509_v30 = vld [vmem:[#allocation4 + $0x188] sm:$0xff] }
  0xa4   :  { %615 = vmatpush1.msra.mxu0 %v476_v32  ;;  %686 = vmatpush1.msra.mxu1 %v540_v33  ;;  %v573_v31 = vld [vmem:[#allocation4 + $0x388] sm:$0xff]  ;;  %v508_v32 = vld [vmem:[#allocation4 + $0x180] sm:$0xff] }
  0xa5   :  { %616 = vmatprep.subr.mxu0 %v475_v34  ;;  %687 = vmatprep.subr.mxu1 %v539_v35  ;;  %v572_v33 = vld [vmem:[#allocation4 + $0x380] sm:$0xff]  ;;  %v507_v34 = vld [vmem:[#allocation4 + $0x178] sm:$0xff] }
  0xa6   :  { %617 = vmatpush1.msra.mxu0 %v474_v36  ;;  %688 = vmatpush1.msra.mxu1 %v538_v37  ;;  %v571_v35 = vld [vmem:[#allocation4 + $0x378] sm:$0xff]  ;;  %v506_v36 = vld [vmem:[#allocation4 + $0x170] sm:$0xff] }
  0xa7   :  { %618 = vmatprep.subr.mxu0 %v473_v38  ;;  %689 = vmatprep.subr.mxu1 %v537_v39  ;;  %v570_v37 = vld [vmem:[#allocation4 + $0x370] sm:$0xff]  ;;  %v505_v38 = vld [vmem:[#allocation4 + $0x168] sm:$0xff] }
  0xa8   :  { %619 = vmatpush1.msra.mxu0 %v472_v40  ;;  %690 = vmatpush1.msra.mxu1 %v536_v41  ;;  %v569_v39 = vld [vmem:[#allocation4 + $0x368] sm:$0xff]  ;;  %v504_v40 = vld [vmem:[#allocation4 + $0x160] sm:$0xff] }
  0xa9   :  { %620 = vmatprep.subr.mxu0 %v471_v42  ;;  %691 = vmatprep.subr.mxu1 %v535_v43  ;;  %v568_v41 = vld [vmem:[#allocation4 + $0x360] sm:$0xff]  ;;  %v503_v42 = vld [vmem:[#allocation4 + $0x158] sm:$0xff] }
  0xaa   :  { %621 = vmatpush1.msra.mxu0 %v470_v44  ;;  %692 = vmatpush1.msra.mxu1 %v534_v45  ;;  %v567_v43 = vld [vmem:[#allocation4 + $0x358] sm:$0xff]  ;;  %v502_v44 = vld [vmem:[#allocation4 + $0x150] sm:$0xff] }
  0xab   :  { %622 = vmatprep.subr.mxu0 %v469_v46  ;;  %693 = vmatprep.subr.mxu1 %v533_v47  ;;  %v566_v45 = vld [vmem:[#allocation4 + $0x350] sm:$0xff]  ;;  %v501_v46 = vld [vmem:[#allocation4 + $0x148] sm:$0xff] }
  0xac   :  { %623 = vmatpush1.msra.mxu0 %v468_v48  ;;  %694 = vmatpush1.msra.mxu1 %v532_v49  ;;  %v565_v47 = vld [vmem:[#allocation4 + $0x348] sm:$0xff]  ;;  %v500_v48 = vld [vmem:[#allocation4 + $0x140] sm:$0xff] }
  0xad   :  { %624 = vmatprep.subr.mxu0 %v467_v50  ;;  %695 = vmatprep.subr.mxu1 %v531_v51  ;;  %v564_v49 = vld [vmem:[#allocation4 + $0x340] sm:$0xff]  ;;  %v499_v50 = vld [vmem:[#allocation4 + $0x138] sm:$0xff] }
  0xae   :  { %625 = vmatpush1.msra.mxu0 %v466_v52  ;;  %696 = vmatpush1.msra.mxu1 %v530_v53  ;;  %v563_v51 = vld [vmem:[#allocation4 + $0x338] sm:$0xff]  ;;  %v498_v52 = vld [vmem:[#allocation4 + $0x130] sm:$0xff] }
  0xaf   :  { %626 = vmatprep.subr.mxu0 %v465_v54  ;;  %697 = vmatprep.subr.mxu1 %v529_v55  ;;  %v562_v53 = vld [vmem:[#allocation4 + $0x330] sm:$0xff]  ;;  %v497_v54 = vld [vmem:[#allocation4 + $0x128] sm:$0xff] }
  0xb0   :  { %627 = vmatpush1.msra.mxu0 %v464_v56  ;;  %698 = vmatpush1.msra.mxu1 %v528_v57  ;;  %v561_v55 = vld [vmem:[#allocation4 + $0x328] sm:$0xff]  ;;  %v496_v56 = vld [vmem:[#allocation4 + $0x120] sm:$0xff] }
  0xb1   :  { %628 = vmatprep.subr.mxu0 %v463_v58  ;;  %699 = vmatprep.subr.mxu1 %v527_v59  ;;  %v560_v57 = vld [vmem:[#allocation4 + $0x320] sm:$0xff]  ;;  %v495_v58 = vld [vmem:[#allocation4 + $0x118] sm:$0xff] }
  0xb2   :  { %629 = vmatpush1.msra.mxu0 %v462_v60  ;;  %700 = vmatpush1.msra.mxu1 %v526_v61  ;;  %v559_v59 = vld [vmem:[#allocation4 + $0x318] sm:$0xff]  ;;  %v494_v60 = vld [vmem:[#allocation4 + $0x110] sm:$0xff] }
  0xb3   :  { %630 = vmatprep.subr.mxu0 %v461_v62  ;;  %701 = vmatprep.subr.mxu1 %v525_v63  ;;  %v558_v61 = vld [vmem:[#allocation4 + $0x310] sm:$0xff]  ;;  %v493_v62 = vld [vmem:[#allocation4 + $0x108] sm:$0xff] }
  0xb4   :  { %631 = vmatpush1.msra.mxu0 %v460_v0  ;;  %702 = vmatpush1.msra.mxu1 %v524_v1  ;;  %v557_v63 = vld [vmem:[#allocation4 + $0x308] sm:$0xff]  ;;  %v492_v0 = vld [vmem:[#allocation4 + $0x100] sm:$0xff] }
  0xb5   :  { %632 = vmatprep.subr.mxu0 %v523_v2  ;;  %703 = vmatprep.subr.mxu1 %v587_v3  ;;  %v556_v1 = vld [vmem:[#allocation4 + $0x300] sm:$0xff]  ;;  %v4025_v2 = vld [vmem:[%s5187_s15 + $0xf8] sm:$0xff]  ;;  %v275_v3 = vlaneseq }
  0xb6   :  { %633 = vmatpush2.msra.mxu0 %v522_v4  ;;  %704 = vmatpush2.msra.mxu1 %v586_v5 }
  0xb7   :  { %634 = vmatprep.subr.mxu0 %v521_v6  ;;  %705 = vmatprep.subr.mxu1 %v585_v7  ;;  %v4028_v4 = vshrl.u32 %v275_v3, 7  ;;  %v273_v7 = vld [vmem:[%s5239_s10] sm:$0xf] }
  0xb8   :  { %635 = vmatpush2.msra.mxu0 %v520_v8  ;;  %706 = vmatpush2.msra.mxu1 %v584_v9 }
  0xb9   :  { %636 = vmatprep.subr.mxu0 %v519_v10  ;;  %707 = vmatprep.subr.mxu1 %v583_v11  ;;  %v4031_v5 = vsub.s32 0, %v4028_v4  ;;  %v5198_v6 = vsub.s32 2, %v4028_v4  ;;  %v4038_v8 = vsub.s32 1, %v4028_v4  ;;  %v5199_v9 = vsub.s32 3, %v4028_v4 }
  0xba   :  { %637 = vmatpush2.msra.mxu0 %v518_v12  ;;  %708 = vmatpush2.msra.mxu1 %v582_v13 }
  0xbb   :  { %638 = vmatprep.subr.mxu0 %v517_v14  ;;  %709 = vmatprep.subr.mxu1 %v581_v15  ;;  %5240 = vst [vmem:[#allocation16_spill] sm:$0xff] %v4038_v8  ;;  %v278_v10 = vrot.slane %v273_v7, %v4031_v5  ;;  %v286_v11 = vrot.slane %v273_v7, %v5198_v6  ;;  %v4963_v6 = vld [vmem:[%s5189_s17 + $0x110] sm:$0xff] }
  0xbc   :  { %639 = vmatpush2.msra.mxu0 %v516_v16  ;;  %710 = vmatpush2.msra.mxu1 %v580_v17  ;;  %v282_v12 = vrot.slane %v273_v7, %v4038_v8  ;;  %v290_v13 = vrot.slane %v273_v7, %v5199_v9  ;;  %5261 = vst [vmem:[#allocation37_spill] sm:$0xff] %v4963_v6  ;;  %v4970_v9 = vld [vmem:[%s5189_s17 + $0x88] sm:$0xff] }
  0xbd   :  { %640 = vmatprep.subr.mxu0 %v515_v18  ;;  %711 = vmatprep.subr.mxu1 %v579_v19  ;;  %5262 = vst [vmem:[#allocation38_spill] sm:$0xff] %v4970_v9 }
  0xbe   :  { %641 = vmatpush2.msra.mxu0 %v514_v20  ;;  %712 = vmatpush2.msra.mxu1 %v578_v21 }
  0xbf   :  { %642 = vmatprep.subr.mxu0 %v513_v22  ;;  %713 = vmatprep.subr.mxu1 %v577_v23 }
  0xc0   :  { %643 = vmatpush2.msra.mxu0 %v512_v24  ;;  %714 = vmatpush2.msra.mxu1 %v576_v25 }
  0xc1   :  { %644 = vmatprep.subr.mxu0 %v511_v26  ;;  %715 = vmatprep.subr.mxu1 %v575_v27 }
  0xc2   :  { %645 = vmatpush2.msra.mxu0 %v510_v28  ;;  %716 = vmatpush2.msra.mxu1 %v574_v29  ;;  %v4068_v28 = vld [vmem:[%s5187_s15 + $0x78] sm:$0xff] }
  0xc3   :  { %646 = vmatprep.subr.mxu0 %v509_v30  ;;  %717 = vmatprep.subr.mxu1 %v573_v31  ;;  %v4075_v31 = vld [vmem:[%s5187_s15 + $0xf0] sm:$0xff] }
  0xc4   :  { %647 = vmatpush2.msra.mxu0 %v508_v32  ;;  %718 = vmatpush2.msra.mxu1 %v572_v33  ;;  %v4080_v32 = vld [vmem:[%s5187_s15 + $0x70] sm:$0xff]  ;;  %v4086_v33 = vld [vmem:[%s5187_s15 + $0xe8] sm:$0xff] }
  0xc5   :  { %648 = vmatprep.subr.mxu0 %v507_v34  ;;  %719 = vmatprep.subr.mxu1 %v571_v35  ;;  %v4092_v34 = vld [vmem:[%s5187_s15 + $0x68] sm:$0xff]  ;;  %v4098_v35 = vld [vmem:[%s5187_s15 + $0xe0] sm:$0xff] }
  0xc6   :  { %649 = vmatpush2.msra.mxu0 %v506_v36  ;;  %720 = vmatpush2.msra.mxu1 %v570_v37  ;;  %v4104_v36 = vld [vmem:[%s5187_s15 + $0x60] sm:$0xff]  ;;  %v4110_v37 = vld [vmem:[%s5187_s15 + $0xd8] sm:$0xff] }
  0xc7   :  { %650 = vmatprep.subr.mxu0 %v505_v38  ;;  %721 = vmatprep.subr.mxu1 %v569_v39  ;;  %v4116_v38 = vld [vmem:[%s5187_s15 + $0x58] sm:$0xff]  ;;  %v4122_v39 = vld [vmem:[%s5187_s15 + $0xd0] sm:$0xff] }
  0xc8   :  { %651 = vmatpush2.msra.mxu0 %v504_v40  ;;  %722 = vmatpush2.msra.mxu1 %v568_v41  ;;  %v4128_v40 = vld [vmem:[%s5187_s15 + $0x50] sm:$0xff]  ;;  %v4134_v41 = vld [vmem:[%s5187_s15 + $0xc8] sm:$0xff] }
  0xc9   :  { %652 = vmatprep.subr.mxu0 %v503_v42  ;;  %723 = vmatprep.subr.mxu1 %v567_v43  ;;  %v4140_v42 = vld [vmem:[%s5187_s15 + $0x48] sm:$0xff]  ;;  %v4146_v43 = vld [vmem:[%s5187_s15 + $0xc0] sm:$0xff] }
  0xca   :  { %653 = vmatpush2.msra.mxu0 %v502_v44  ;;  %724 = vmatpush2.msra.mxu1 %v566_v45  ;;  %v4152_v44 = vld [vmem:[%s5187_s15 + $0x40] sm:$0xff]  ;;  %v4158_v45 = vld [vmem:[%s5187_s15 + $0xb8] sm:$0xff] }
  0xcb   :  { %654 = vmatprep.subr.mxu0 %v501_v46  ;;  %725 = vmatprep.subr.mxu1 %v565_v47  ;;  %v4164_v46 = vld [vmem:[%s5187_s15 + $0x38] sm:$0xff]  ;;  %v4170_v47 = vld [vmem:[%s5187_s15 + $0xb0] sm:$0xff] }
  0xcc   :  { %655 = vmatpush2.msra.mxu0 %v500_v48  ;;  %726 = vmatpush2.msra.mxu1 %v564_v49  ;;  %v4176_v48 = vld [vmem:[%s5187_s15 + $0x30] sm:$0xff]  ;;  %v4182_v49 = vld [vmem:[%s5187_s15 + $0xa8] sm:$0xff] }
  0xcd   :  { %656 = vmatprep.subr.mxu0 %v499_v50  ;;  %727 = vmatprep.subr.mxu1 %v563_v51  ;;  %v4188_v50 = vld [vmem:[%s5187_s15 + $0x28] sm:$0xff]  ;;  %v4194_v51 = vld [vmem:[%s5187_s15 + $0xa0] sm:$0xff] }
  0xce   :  { %657 = vmatpush2.msra.mxu0 %v498_v52  ;;  %728 = vmatpush2.msra.mxu1 %v562_v53  ;;  %v4200_v52 = vld [vmem:[%s5187_s15 + $0x20] sm:$0xff]  ;;  %v4208_v53 = vld [vmem:[%s5187_s15 + $0x98] sm:$0xff] }
  0xcf   :  { %658 = vmatprep.subr.mxu0 %v497_v54  ;;  %729 = vmatprep.subr.mxu1 %v561_v55  ;;  %v4214_v54 = vld [vmem:[%s5187_s15 + $0x18] sm:$0xff]  ;;  %v4220_v55 = vld [vmem:[%s5187_s15 + $0x90] sm:$0xff] }
  0xd0   :  { %659 = vmatpush2.msra.mxu0 %v496_v56  ;;  %730 = vmatpush2.msra.mxu1 %v560_v57  ;;  %v4226_v56 = vld [vmem:[%s5187_s15 + $0x10] sm:$0xff]  ;;  %v4232_v57 = vld [vmem:[%s5187_s15 + $0x88] sm:$0xff] }
  0xd1   :  { %660 = vmatprep.subr.mxu0 %v495_v58  ;;  %731 = vmatprep.subr.mxu1 %v559_v59  ;;  %v4238_v58 = vld [vmem:[%s5187_s15 + $0x8] sm:$0xff]  ;;  %v4243_v59 = vld [vmem:[%s5187_s15 + $0x80] sm:$0xff] }
  0xd2   :  { %661 = vmatpush2.msra.mxu0 %v494_v60  ;;  %732 = vmatpush2.msra.mxu1 %v558_v61  ;;  %v4248_v60 = vld [vmem:[%s5187_s15] sm:$0xff] }
  0xd3   :  { %662 = vmatprep.subr.mxu0 %v493_v62  ;;  %733 = vmatprep.subr.mxu1 %v557_v63  ;;  %v588_v61 = vld [vmem:[%s5176_s4] sm:$0x3] }
  0xd4   :  { %663 = vmatpush2.msra.mxu0 %v492_v0  ;;  %734 = vmatpush2.msra.mxu1 %v556_v1  ;;  %v593_v62 = vrot.slane %v588_v61, %v4031_v5  ;;  %v597_v63 = vrot.slane %v588_v61, %v4038_v8 }
  0xd5   :  { %3417 = vmatprep.subr.mxu0 %v4025_v2 }
 0x154   :  { %v372_v14 = vpop.f32.mrf.mxu0  ;;  %v443_v15 = vpop.f32.mrf.mxu1 }
 0x155   :  { %v4047_v16 = vadd.f32 %v372_v14, %v278_v10  ;;  %v4049_v17 = vadd.f32 %v443_v15, %v286_v11  ;;  %v4261_v14 = vld [vmem:[%s5188_s16 + $0x18] sm:$0xff]  ;;  %v4266_v15 = vld [vmem:[%s5188_s16 + $0x10] sm:$0xff] }
 0x156   :  { %v374_v18 = vpop.f32.mrf.mxu0  ;;  %v445_v19 = vpop.f32.mrf.mxu1  ;;  %880 = vmatprep.subr.mxu1 %v4261_v14 }
 0x157   :  { %5241 = vst [vmem:[#allocation17_spill] sm:$0xff] %v4047_v16  ;;  %5242 = vst [vmem:[#allocation18_spill] sm:$0xff] %v4049_v17  ;;  %v4051_v20 = vadd.f32 %v374_v18, %v282_v12  ;;  %v4053_v21 = vadd.f32 %v445_v19, %v290_v13  ;;  %vm448_vm0 = vcmp.gt.f32.partialorder %v4047_v16, 0.0  ;;  %v452_v22 = vmul.f32 0.2, %v4047_v16  ;;  %v4275_v18 = vld [vmem:[%s5188_s16 + $0x8] sm:$0xff] }
 0x158   :  { %vm450_vm1 = vcmp.gt.f32.partialorder %v4049_v17, 0.0  ;;  %v454_v23 = vmul.f32 0.2, %v4049_v17  ;;  %v4280_v19 = vld [vmem:[%s5188_s16] sm:$0xff] }
 0x159   :  { %5243 = vst [vmem:[#allocation19_spill] sm:$0xff] %v4051_v20  ;;  %5244 = vst [vmem:[#allocation20_spill] sm:$0xff] %v4053_v21  ;;  %vm449_vm2 = vcmp.gt.f32.partialorder %v4051_v20, 0.0  ;;  %v453_v24 = vmul.f32 0.2, %v4051_v20  ;;  %vm451_vm3 = vcmp.gt.f32.partialorder %v4053_v21, 0.0  ;;  %v456_v29 = vsel %vm448_vm0, %v4047_v16, %v452_v22 }
 0x15a   :  { %v455_v25 = vmul.f32 0.2, %v4053_v21  ;;  %v458_v30 = vsel %vm450_vm1, %v4049_v17, %v454_v23  ;;  %v5196_v22 = vmov 0.0   ;;  %v4975_v17 = vld [vmem:[%s5189_s17 + $0x188] sm:$0xff] }
 0x15b   :  { %v457_v26 = vsel %vm449_vm2, %v4051_v20, %v453_v24  ;;  %5263 = vst [vmem:[#allocation39_spill] sm:$0xff] %v4975_v17  ;;  %v4982_v16 = vld [vmem:[%s5189_s17 + $0x8] sm:$0xff]  ;;  %v4994_v20 = vld [vmem:[%s5189_s17 + $0x80] sm:$0xff] }
 0x15c   :  { %v459_v27 = vsel %vm451_vm3, %v4053_v21, %v455_v25  ;;  %664 = vmatprep.mubr.f32.mxu0 %v457_v26  ;;  %5264 = vst [vmem:[#allocation40_spill] sm:$0xff] %v4982_v16  ;;  %v4987_v21 = vld [vmem:[%s5189_s17 + $0x108] sm:$0xff]  ;;  %5266 = vst [vmem:[#allocation42_spill] sm:$0xff] %v4994_v20 }
 0x15d   :  { %735 = vmatprep.mubr.f32.mxu1 %v459_v27  ;;  %665 = vmatmul.mubr.f32.vlgmr.msra.gmra.mxu0 %v456_v29  ;;  %5265 = vst [vmem:[#allocation41_spill] sm:$0xff] %v4987_v21 }
 0x15e   :  { %736 = vmatmul.mubr.f32.vlgmr.msra.gmra.mxu1 %v458_v30  ;;  %3418 = vmatpush3.msra.mxu0 %v4068_v28 }
 0x15f   :  { %3419 = vmatprep.subr.mxu0 %v4075_v31  ;;  %881 = vmatpush1.msra.mxu1 %v4266_v15 }
 0x160   :  { %3420 = vmatpush3.msra.mxu0 %v4080_v32  ;;  %882 = vmatprep.subr.mxu1 %v4275_v18 }
 0x161   :  { %3421 = vmatprep.subr.mxu0 %v4086_v33  ;;  %916 = vmatprep.mubr.f32.mxu1 %v5196_v22 }
 0x162   :  { %3422 = vmatpush3.msra.mxu0 %v4092_v34  ;;  %883 = vmatpush1.msra.mxu1 %v4280_v19 }
 0x163   :  { %3423 = vmatprep.subr.mxu0 %v4098_v35  ;;  %3452 = vmatprep.subr.mxu1 %v4025_v2 }
 0x164   :  { %3424 = vmatpush3.msra.mxu0 %v4104_v36 }
 0x165   :  { %3425 = vmatprep.subr.mxu0 %v4110_v37 }
 0x166   :  { %3426 = vmatpush3.msra.mxu0 %v4116_v38 }
 0x167   :  { %3427 = vmatprep.subr.mxu0 %v4122_v39 }
 0x168   :  { %3428 = vmatpush3.msra.mxu0 %v4128_v40 }
 0x169   :  { %3429 = vmatprep.subr.mxu0 %v4134_v41 }
 0x16a   :  { %3430 = vmatpush3.msra.mxu0 %v4140_v42 }
 0x16b   :  { %3431 = vmatprep.subr.mxu0 %v4146_v43 }
 0x16c   :  { %3432 = vmatpush3.msra.mxu0 %v4152_v44 }
 0x16d   :  { %3433 = vmatprep.subr.mxu0 %v4158_v45 }
 0x16e   :  { %3434 = vmatpush3.msra.mxu0 %v4164_v46 }
 0x16f   :  { %3435 = vmatprep.subr.mxu0 %v4170_v47 }
 0x170   :  { %3436 = vmatpush3.msra.mxu0 %v4176_v48 }
 0x171   :  { %3437 = vmatprep.subr.mxu0 %v4182_v49 }
 0x172   :  { %3438 = vmatpush3.msra.mxu0 %v4188_v50 }
 0x173   :  { %3439 = vmatprep.subr.mxu0 %v4194_v51 }
 0x174   :  { %3440 = vmatpush3.msra.mxu0 %v4200_v52 }
 0x175   :  { %3441 = vmatprep.subr.mxu0 %v4208_v53 }
 0x176   :  { %3442 = vmatpush3.msra.mxu0 %v4214_v54 }
 0x177   :  { %3443 = vmatprep.subr.mxu0 %v4220_v55 }
 0x178   :  { %3444 = vmatpush3.msra.mxu0 %v4226_v56 }
 0x179   :  { %3445 = vmatprep.subr.mxu0 %v4232_v57 }
 0x17a   :  { %3446 = vmatpush3.msra.mxu0 %v4238_v58 }
 0x17b   :  { %3447 = vmatprep.subr.mxu0 %v4243_v59 }
 0x17c   :  { %3448 = vmatpush3.msra.mxu0 %v4248_v60 }
 0x17d   :  { %1029 = vmatprep.subr.mxu0 %v4261_v14 }
 0x21d   :  { %v666_v0 = vpop.f32.mrf.mxu0 }
 0x21e   :  { %v737_v1 = vpop.f32.mrf.mxu1  ;;  %v667_v3 = vadd.f32 %v666_v0, %v593_v62 }
 0x21f   :  { %v668_v7 = vpop.f32.mrf.mxu0 }
 0x220   :  { %v669_v10 = vadd.f32 %v668_v7, %v597_v63  ;;  %v739_v11 = vpop.f32.mrf.mxu1  ;;  %v738_v13 = vadd.f32 %v737_v1, %v667_v3  ;;  %v1111_v63 = vld [vmem:[%s5177_s5 + $0xf8] sm:$0xff] }
 0x222   :  { %v740_v12 = vadd.f32 %v739_v11, %v669_v10  ;;  %v1095_v10 = vld [vmem:[%s5177_s5 + $0x78] sm:$0xff] }
 0x224   :  { %838 = vmatprep.mubr.f32.mxu0 %v740_v12 }
 0x225   :  { %839 = vmatmul.mubr.f32.vlgmr.msra.gmra.mxu0 %v738_v13 }
 0x226   :  { %1030 = vmatpush1.msra.mxu0 %v4266_v15  ;;  %1065 = vmatprep.mubr.f32.mxu0 %v5196_v22 }
 0x227   :  { %1031 = vmatprep.subr.mxu0 %v4275_v18 }
 0x228   :  { %1032 = vmatpush1.msra.mxu0 %v4280_v19 }
 0x229   :  { %3487 = vmatprep.subr.mxu0 %v1111_v63  ;;  %v1090_v63 = vld [vmem:[%s5177_s5 + $0x50] sm:$0xff] }
 0x2e5   :  { %v3449_v23 = vpop.f32.mrf.mxu0 }
 0x2e7   :  { %v3450_v24 = vpop.f32.mrf.mxu0 }
 0x2e8   :  { %v3451_v25 = vadd.f32 %v3450_v24, %v3449_v23  ;;  %v1109_v23 = vld [vmem:[%s5177_s5 + $0xe8] sm:$0xff] }
 0x2e9   :  { %v1093_v24 = vld [vmem:[%s5177_s5 + $0x68] sm:$0xff] }
 0x2ea   :  { %3407 = vmatmul.mubr.msk.f32.vlgmr.msra.gmra.mxu1 %vm848_vm4, %v3451_v25  ;;  %v1108_v25 = vld [vmem:[%s5177_s5 + $0xe0] sm:$0xff] }
 0x2eb   :  { %3453 = vmatpush3.msra.mxu1 %v4068_v28 }
 0x2ec   :  { %3454 = vmatprep.subr.mxu1 %v4075_v31 }
 0x2ed   :  { %3455 = vmatpush3.msra.mxu1 %v4080_v32 }
 0x2ee   :  { %3456 = vmatprep.subr.mxu1 %v4086_v33 }
 0x2ef   :  { %3457 = vmatpush3.msra.mxu1 %v4092_v34 }
 0x2f0   :  { %3458 = vmatprep.subr.mxu1 %v4098_v35 }
 0x2f1   :  { %3459 = vmatpush3.msra.mxu1 %v4104_v36 }
 0x2f2   :  { %3460 = vmatprep.subr.mxu1 %v4110_v37 }
 0x2f3   :  { %3461 = vmatpush3.msra.mxu1 %v4116_v38 }
 0x2f4   :  { %3462 = vmatprep.subr.mxu1 %v4122_v39 }
 0x2f5   :  { %3463 = vmatpush3.msra.mxu1 %v4128_v40 }
 0x2f6   :  { %3464 = vmatprep.subr.mxu1 %v4134_v41 }
 0x2f7   :  { %3465 = vmatpush3.msra.mxu1 %v4140_v42 }
 0x2f8   :  { %3466 = vmatprep.subr.mxu1 %v4146_v43 }
 0x2f9   :  { %3467 = vmatpush3.msra.mxu1 %v4152_v44 }
 0x2fa   :  { %3468 = vmatprep.subr.mxu1 %v4158_v45 }
 0x2fb   :  { %3469 = vmatpush3.msra.mxu1 %v4164_v46 }
 0x2fc   :  { %3470 = vmatprep.subr.mxu1 %v4170_v47 }
 0x2fd   :  { %3471 = vmatpush3.msra.mxu1 %v4176_v48 }
 0x2fe   :  { %3472 = vmatprep.subr.mxu1 %v4182_v49 }
 0x2ff   :  { %3473 = vmatpush3.msra.mxu1 %v4188_v50 }
 0x300   :  { %3474 = vmatprep.subr.mxu1 %v4194_v51 }
 0x301   :  { %3475 = vmatpush3.msra.mxu1 %v4200_v52 }
 0x302   :  { %3476 = vmatprep.subr.mxu1 %v4208_v53 }
 0x303   :  { %3477 = vmatpush3.msra.mxu1 %v4214_v54 }
 0x304   :  { %3478 = vmatprep.subr.mxu1 %v4220_v55 }
 0x305   :  { %3479 = vmatpush3.msra.mxu1 %v4226_v56 }
 0x306   :  { %3480 = vmatprep.subr.mxu1 %v4232_v57 }
 0x307   :  { %3481 = vmatpush3.msra.mxu1 %v4238_v58 }
 0x308   :  { %3482 = vmatprep.subr.mxu1 %v4243_v59 }
 0x309   :  { %3483 = vmatpush3.msra.mxu1 %v4248_v60 }
 0x3aa   :  { %v918_v26 = vpop.f32.mrf.mxu1 }
 0x3ab   :  { %v4321_v27 = vsub.f32 %v738_v13, %v918_v26  ;;  %v1094_v13 = vld [vmem:[%s5177_s5 + $0x70] sm:$0xff]  ;;  %v1092_v26 = vld [vmem:[%s5177_s5 + $0x60] sm:$0xff] }
 0x3ac   :  { %v920_v29 = vpop.f32.mrf.mxu1 }
 0x3ad   :  { %v4323_v30 = vsub.f32 %v740_v12, %v920_v29  ;;  %v925_v62 = vmul.f32 %v4321_v27, %v4321_v27  ;;  %v1110_v12 = vld [vmem:[%s5177_s5 + $0xf0] sm:$0xff]  ;;  %v1107_v29 = vld [vmem:[%s5177_s5 + $0xd8] sm:$0xff] }
 0x3af   :  { %v926_v61 = vmul.f32 %v4323_v30, %v4323_v30 }
 0x3b1   :  { %991 = vmatprep.mubr.f32.mxu1 %v926_v61  ;;  %v1091_v61 = vld [vmem:[%s5177_s5 + $0x58] sm:$0xff] }
 0x3b2   :  { %992 = vmatmul.mubr.f32.vlgmr.msra.gmra.mxu1 %v925_v62  ;;  %v1106_v62 = vld [vmem:[%s5177_s5 + $0xd0] sm:$0xff] }
 0x3b3   :  { %1298 = vmatprep.mubr.f32.mxu1 %v5196_v22 }
 0x472   :  { %v3484_v0 = vpop.f32.mrf.mxu1 }
 0x474   :  { %v3485_v1 = vpop.f32.mrf.mxu1 }
 0x475   :  { %v3486_v3 = vadd.f32 %v3485_v1, %v3484_v0  ;;  %v1105_v0 = vld [vmem:[%s5177_s5 + $0xc8] sm:$0xff] }
 0x476   :  { %v1089_v1 = vld [vmem:[%s5177_s5 + $0x48] sm:$0xff] }
 0x477   :  { %v994_v7 = vadd.f32 1e-05, %v3486_v3  ;;  %v1104_v3 = vld [vmem:[%s5177_s5 + $0xc0] sm:$0xff] }
 0x479   :  { %3743 = vrsqrt.f32 %v994_v7  ;;  %v1088_v7 = vld [vmem:[%s5177_s5 + $0x40] sm:$0xff] }
 0x486   :  { %v3744_v11 = vpop.eup %3743 }
 0x487   :  { %3408 = vmatmul.mubr.msk.f32.vlgmr.msra.gmra.mxu0 %vm848_vm4, %v3744_v11  ;;  %v1087_v11 = vld [vmem:[%s5177_s5 + $0x38] sm:$0xff] }
 0x488   :  { %3488 = vmatpush3.msra.mxu0 %v1095_v10  ;;  %v1103_v10 = vld [vmem:[%s5177_s5 + $0xb8] sm:$0xff] }
 0x489   :  { %3489 = vmatprep.subr.mxu0 %v1110_v12  ;;  %v1102_v12 = vld [vmem:[%s5177_s5 + $0xb0] sm:$0xff] }
 0x48a   :  { %3490 = vmatpush3.msra.mxu0 %v1094_v13  ;;  %v1086_v13 = vld [vmem:[%s5177_s5 + $0x30] sm:$0xff] }
 0x48b   :  { %3491 = vmatprep.subr.mxu0 %v1109_v23  ;;  %v1101_v23 = vld [vmem:[%s5177_s5 + $0xa8] sm:$0xff] }
 0x48c   :  { %3492 = vmatpush3.msra.mxu0 %v1093_v24  ;;  %v1085_v24 = vld [vmem:[%s5177_s5 + $0x28] sm:$0xff] }
 0x48d   :  { %3493 = vmatprep.subr.mxu0 %v1108_v25  ;;  %v1100_v25 = vld [vmem:[%s5177_s5 + $0xa0] sm:$0xff] }
 0x48e   :  { %3494 = vmatpush3.msra.mxu0 %v1092_v26  ;;  %v1084_v26 = vld [vmem:[%s5177_s5 + $0x20] sm:$0xff] }
 0x48f   :  { %3495 = vmatprep.subr.mxu0 %v1107_v29  ;;  %v1099_v29 = vld [vmem:[%s5177_s5 + $0x98] sm:$0xff] }
 0x490   :  { %3496 = vmatpush3.msra.mxu0 %v1091_v61  ;;  %v1083_v61 = vld [vmem:[%s5177_s5 + $0x18] sm:$0xff] }
 0x491   :  { %3497 = vmatprep.subr.mxu0 %v1106_v62  ;;  %v1098_v62 = vld [vmem:[%s5177_s5 + $0x90] sm:$0xff] }
 0x492   :  { %3498 = vmatpush3.msra.mxu0 %v1090_v63  ;;  %v1082_v63 = vld [vmem:[%s5177_s5 + $0x10] sm:$0xff] }
 0x493   :  { %3499 = vmatprep.subr.mxu0 %v1105_v0  ;;  %v1097_v0 = vld [vmem:[%s5177_s5 + $0x88] sm:$0xff] }
 0x494   :  { %3500 = vmatpush3.msra.mxu0 %v1089_v1  ;;  %v1081_v1 = vld [vmem:[%s5177_s5 + $0x8] sm:$0xff] }
 0x495   :  { %3501 = vmatprep.subr.mxu0 %v1104_v3  ;;  %v1096_v3 = vld [vmem:[%s5177_s5 + $0x80] sm:$0xff] }
 0x496   :  { %3502 = vmatpush3.msra.mxu0 %v1088_v7  ;;  %v1080_v7 = vld [vmem:[%s5177_s5] sm:$0xff] }
 0x497   :  { %3503 = vmatprep.subr.mxu0 %v1103_v10  ;;  %v1221_v10 = vld [vmem:[%s5179_s7 + $0xf8] sm:$0xff] }
 0x498   :  { %3504 = vmatpush3.msra.mxu0 %v1087_v11  ;;  %v1220_v11 = vld [vmem:[%s5179_s7 + $0xf0] sm:$0xff]  ;;  %1234 = vmatprep.subr.mxu1 %v1221_v10  ;;  %v1205_v10 = vld [vmem:[%s5179_s7 + $0x78] sm:$0xff] }
 0x499   :  { %3505 = vmatprep.subr.mxu0 %v1102_v12  ;;  %v1219_v12 = vld [vmem:[%s5179_s7 + $0xe8] sm:$0xff]  ;;  %1235 = vmatpush1.msra.mxu1 %v1220_v11  ;;  %v1204_v11 = vld [vmem:[%s5179_s7 + $0x70] sm:$0xff] }
 0x49a   :  { %3506 = vmatpush3.msra.mxu0 %v1086_v13  ;;  %v1218_v13 = vld [vmem:[%s5179_s7 + $0xe0] sm:$0xff]  ;;  %1236 = vmatprep.subr.mxu1 %v1219_v12  ;;  %v1203_v12 = vld [vmem:[%s5179_s7 + $0x68] sm:$0xff] }
 0x49b   :  { %3507 = vmatprep.subr.mxu0 %v1101_v23  ;;  %v1217_v23 = vld [vmem:[%s5179_s7 + $0xd8] sm:$0xff]  ;;  %1237 = vmatpush1.msra.mxu1 %v1218_v13  ;;  %v1202_v13 = vld [vmem:[%s5179_s7 + $0x60] sm:$0xff] }
 0x49c   :  { %3508 = vmatpush3.msra.mxu0 %v1085_v24  ;;  %v1216_v24 = vld [vmem:[%s5179_s7 + $0xd0] sm:$0xff]  ;;  %1238 = vmatprep.subr.mxu1 %v1217_v23  ;;  %v1201_v23 = vld [vmem:[%s5179_s7 + $0x58] sm:$0xff] }
 0x49d   :  { %3509 = vmatprep.subr.mxu0 %v1100_v25  ;;  %v1215_v25 = vld [vmem:[%s5179_s7 + $0xc8] sm:$0xff]  ;;  %1239 = vmatpush1.msra.mxu1 %v1216_v24  ;;  %v1200_v24 = vld [vmem:[%s5179_s7 + $0x50] sm:$0xff] }
 0x49e   :  { %3510 = vmatpush3.msra.mxu0 %v1084_v26  ;;  %v1214_v26 = vld [vmem:[%s5179_s7 + $0xc0] sm:$0xff]  ;;  %1240 = vmatprep.subr.mxu1 %v1215_v25  ;;  %v1199_v25 = vld [vmem:[%s5179_s7 + $0x48] sm:$0xff] }
 0x49f   :  { %3511 = vmatprep.subr.mxu0 %v1099_v29  ;;  %v1213_v29 = vld [vmem:[%s5179_s7 + $0xb8] sm:$0xff]  ;;  %1241 = vmatpush1.msra.mxu1 %v1214_v26 }
 0x4a0   :  { %3512 = vmatpush3.msra.mxu0 %v1083_v61  ;;  %v1212_v61 = vld [vmem:[%s5179_s7 + $0xb0] sm:$0xff]  ;;  %1242 = vmatprep.subr.mxu1 %v1213_v29 }
 0x4a1   :  { %3513 = vmatprep.subr.mxu0 %v1098_v62  ;;  %v1211_v62 = vld [vmem:[%s5179_s7 + $0xa8] sm:$0xff]  ;;  %1243 = vmatpush1.msra.mxu1 %v1212_v61 }
 0x4a2   :  { %3514 = vmatpush3.msra.mxu0 %v1082_v63  ;;  %v1210_v63 = vld [vmem:[%s5179_s7 + $0xa0] sm:$0xff]  ;;  %1244 = vmatprep.subr.mxu1 %v1211_v62 }
 0x4a3   :  { %3515 = vmatprep.subr.mxu0 %v1097_v0  ;;  %v1209_v0 = vld [vmem:[%s5179_s7 + $0x98] sm:$0xff]  ;;  %1245 = vmatpush1.msra.mxu1 %v1210_v63 }
 0x4a4   :  { %3516 = vmatpush3.msra.mxu0 %v1081_v1  ;;  %v1208_v1 = vld [vmem:[%s5179_s7 + $0x90] sm:$0xff]  ;;  %1246 = vmatprep.subr.mxu1 %v1209_v0 }
 0x4a5   :  { %3517 = vmatprep.subr.mxu0 %v1096_v3  ;;  %v1207_v3 = vld [vmem:[%s5179_s7 + $0x88] sm:$0xff]  ;;  %1247 = vmatpush1.msra.mxu1 %v1208_v1 }
 0x4a6   :  { %3518 = vmatpush3.msra.mxu0 %v1080_v7  ;;  %v1206_v7 = vld [vmem:[%s5179_s7 + $0x80] sm:$0xff]  ;;  %1248 = vmatprep.subr.mxu1 %v1207_v3 }
 0x4a7   :  { %3522 = vmatprep.subr.mxu0 %v4025_v2  ;;  %1249 = vmatpush1.msra.mxu1 %v1206_v7  ;;  %v1196_v7 = vld [vmem:[%s5179_s7 + $0x30] sm:$0xff] }
 0x4a8   :  { %1250 = vmatprep.subr.mxu1 %v1205_v10  ;;  %v1195_v10 = vld [vmem:[%s5179_s7 + $0x28] sm:$0xff] }
 0x4a9   :  { %1251 = vmatpush1.msra.mxu1 %v1204_v11  ;;  %v1194_v11 = vld [vmem:[%s5179_s7 + $0x20] sm:$0xff] }
 0x4aa   :  { %1252 = vmatprep.subr.mxu1 %v1203_v12  ;;  %v1193_v12 = vld [vmem:[%s5179_s7 + $0x18] sm:$0xff] }
 0x4ab   :  { %1253 = vmatpush1.msra.mxu1 %v1202_v13  ;;  %v1192_v13 = vld [vmem:[%s5179_s7 + $0x10] sm:$0xff] }
 0x4ac   :  { %1254 = vmatprep.subr.mxu1 %v1201_v23  ;;  %v1191_v23 = vld [vmem:[%s5179_s7 + $0x8] sm:$0xff] }
 0x4ad   :  { %1255 = vmatpush1.msra.mxu1 %v1200_v24  ;;  %v1190_v24 = vld [vmem:[%s5179_s7] sm:$0xff] }
 0x4ae   :  { %1256 = vmatprep.subr.mxu1 %v1199_v25 }
 0x547   :  { %v1067_v26 = vpop.f32.mrf.mxu0 }
 0x548   :  { %v4498_v29 = vmul.f32 %v1067_v26, %v4321_v27  ;;  %v1198_v27 = vld [vmem:[%s5179_s7 + $0x40] sm:$0xff] }
 0x549   :  { %v1069_v61 = vpop.f32.mrf.mxu0  ;;  %1257 = vmatpush1.msra.mxu1 %v1198_v27  ;;  %v3409_v26 = vld [vmem:[%s5178_s6] ss:$0 sm:$0xff] }
 0x54a   :  { %v4501_v62 = vmul.f32 %v1069_v61, %v4323_v30  ;;  %v1076_v63 = vmul.f32 0.2, %v4498_v29  ;;  %vm1074_vm6 = vcmp.gt.f32.partialorder %v4498_v29, 0.0  ;;  %v1197_v30 = vld [vmem:[%s5179_s7 + $0x38] sm:$0xff] }
 0x54b   :  { %1258 = vmatprep.subr.mxu1 %v1197_v30 }
 0x54c   :  { %vm1075_vm5 = vcmp.gt.f32.partialorder %v4501_v62, 0.0  ;;  %v1077_v0 = vmul.f32 0.2, %v4501_v62  ;;  %v1078_v3 = vsel %vm1074_vm6, %v4498_v29, %v1076_v63  ;;  %1259 = vmatpush1.msra.mxu1 %v1196_v7 }
 0x54d   :  { %1260 = vmatprep.subr.mxu1 %v1195_v10 }
 0x54e   :  { %v1079_v1 = vsel %vm1075_vm5, %v4501_v62, %v1077_v0  ;;  %1261 = vmatpush1.msra.mxu1 %v1194_v11 }
 0x54f   :  { %1183 = vmatprep.mubr.f32.mxu0 %v1079_v1  ;;  %1262 = vmatprep.subr.mxu1 %v1193_v12 }
 0x550   :  { %1184 = vmatmul.mubr.f32.vlgmr.msra.gmra.mxu0 %v1078_v3  ;;  %1263 = vmatpush1.msra.mxu1 %v1192_v13 }
 0x551   :  { %3523 = vmatpush3.msra.mxu0 %v4068_v28  ;;  %1264 = vmatprep.subr.mxu1 %v1191_v23  ;;  %v1742_v23 = vld [vmem:[#allocation7 + $0x50] sm:$0xff] }
 0x552   :  { %3524 = vmatprep.subr.mxu0 %v4075_v31  ;;  %1265 = vmatpush1.msra.mxu1 %v1190_v24  ;;  %v1739_v24 = vld [vmem:[#allocation7 + $0x38] sm:$0xff] }
 0x553   :  { %3525 = vmatpush3.msra.mxu0 %v4080_v32  ;;  %1406 = vmatprep.subr.mxu1 %v4261_v14 }
 0x554   :  { %3526 = vmatprep.subr.mxu0 %v4086_v33 }
 0x555   :  { %3527 = vmatpush3.msra.mxu0 %v4092_v34 }
 0x556   :  { %3528 = vmatprep.subr.mxu0 %v4098_v35 }
 0x557   :  { %3529 = vmatpush3.msra.mxu0 %v4104_v36 }
 0x558   :  { %3530 = vmatprep.subr.mxu0 %v4110_v37 }
 0x559   :  { %3531 = vmatpush3.msra.mxu0 %v4116_v38 }
 0x55a   :  { %3532 = vmatprep.subr.mxu0 %v4122_v39 }
 0x55b   :  { %3533 = vmatpush3.msra.mxu0 %v4128_v40 }
 0x55c   :  { %3534 = vmatprep.subr.mxu0 %v4134_v41 }
 0x55d   :  { %3535 = vmatpush3.msra.mxu0 %v4140_v42 }
 0x55e   :  { %3536 = vmatprep.subr.mxu0 %v4146_v43 }
 0x55f   :  { %3537 = vmatpush3.msra.mxu0 %v4152_v44 }
 0x560   :  { %3538 = vmatprep.subr.mxu0 %v4158_v45 }
 0x561   :  { %3539 = vmatpush3.msra.mxu0 %v4164_v46 }
 0x562   :  { %3540 = vmatprep.subr.mxu0 %v4170_v47 }
 0x563   :  { %3541 = vmatpush3.msra.mxu0 %v4176_v48 }
 0x564   :  { %3542 = vmatprep.subr.mxu0 %v4182_v49 }
 0x565   :  { %3543 = vmatpush3.msra.mxu0 %v4188_v50 }
 0x566   :  { %3544 = vmatprep.subr.mxu0 %v4194_v51 }
 0x567   :  { %3545 = vmatpush3.msra.mxu0 %v4200_v52 }
 0x568   :  { %3546 = vmatprep.subr.mxu0 %v4208_v53 }
 0x569   :  { %3547 = vmatpush3.msra.mxu0 %v4214_v54 }
 0x56a   :  { %3548 = vmatprep.subr.mxu0 %v4220_v55 }
 0x56b   :  { %3549 = vmatpush3.msra.mxu0 %v4226_v56 }
 0x56c   :  { %3550 = vmatprep.subr.mxu0 %v4232_v57 }
 0x56d   :  { %3551 = vmatpush3.msra.mxu0 %v4238_v58 }
 0x56e   :  { %3552 = vmatprep.subr.mxu0 %v4243_v59 }
 0x56f   :  { %3553 = vmatpush3.msra.mxu0 %v4248_v60 }
 0x570   :  { %1555 = vmatprep.subr.mxu0 %v4261_v14  ;;  %v1222_v14 = vld [vmem:[%s5180_s8] sm:$0x3] }
 0x571   :  { %v1231_v3 = vrot.slane %v1222_v14, %v4038_v8  ;;  %v1227_v27 = vrot.slane %v1222_v14, %v4031_v5  ;;  %v1854_v14 = vld [vmem:[#allocation7 + $0x3d0] sm:$0xff] }
 0x610   :  { %v3519_v25 = vpop.f32.mrf.mxu0 }
 0x612   :  { %v3520_v61 = vpop.f32.mrf.mxu0 }
 0x613   :  { %v3521_v63 = vadd.f32 %v3520_v61, %v3519_v25  ;;  %v1738_v25 = vld [vmem:[#allocation7 + $0x30] sm:$0xff] }
 0x614   :  { %v1734_v61 = vld [vmem:[#allocation7 + $0x10] sm:$0xff] }
 0x615   :  { %v1186_v0 = vadd.f32 %v3521_v63, %v3409_v26  ;;  %v1735_v26 = vld [vmem:[#allocation7 + $0x18] sm:$0xff] }
 0x616   :  { %v1859_v63 = vld [vmem:[#allocation7 + $0x3f8] sm:$0xff] }
 0x617   :  { %v1189_v1 = vmax.f32 %v1186_v0, 0.0  ;;  %v1858_v0 = vld [vmem:[#allocation7 + $0x3f0] sm:$0xff] }
 0x619   :  { %1299 = vmatmul.mubr.f32.vlgmr.msra.gmra.mxu1 %v1189_v1  ;;  %v1855_v1 = vld [vmem:[#allocation7 + $0x3d8] sm:$0xff] }
 0x61a   :  { %1407 = vmatpush1.msra.mxu1 %v4266_v15  ;;  %1442 = vmatprep.mubr.f32.mxu1 %v5196_v22 }
 0x61b   :  { %1408 = vmatprep.subr.mxu1 %v4275_v18 }
 0x61c   :  { %1409 = vmatpush1.msra.mxu1 %v4280_v19 }
 0x61d   :  { %3557 = vmatprep.subr.mxu1 %v4025_v2 }
 0x6d9   :  { %v1300_v30 = vpop.f32.mrf.mxu1 }
 0x6da   :  { %v1301_v11 = vadd.f32 %v1300_v30, %v1227_v27  ;;  %v1850_v27 = vld [vmem:[#allocation7 + $0x3b0] sm:$0xff]  ;;  %v1847_v30 = vld [vmem:[#allocation7 + $0x398] sm:$0xff] }
 0x6db   :  { %v1302_v7 = vpop.f32.mrf.mxu1 }
 0x6dc   :  { %v1303_v10 = vadd.f32 %v1302_v7, %v1231_v3  ;;  %v1851_v3 = vld [vmem:[#allocation7 + $0x3b8] sm:$0xff]  ;;  %v1846_v7 = vld [vmem:[#allocation7 + $0x390] sm:$0xff] }
 0x6de   :  { %1369 = vmatprep.mubr.f32.mxu0 %v1303_v10 }
 0x6df   :  { %1370 = vmatmul.mubr.f32.vlgmr.msra.gmra.mxu0 %v1301_v11 }
 0x6e0   :  { %1556 = vmatpush1.msra.mxu0 %v4266_v15  ;;  %1591 = vmatprep.mubr.f32.mxu0 %v5196_v22  ;;  %v1747_v15 = vld [vmem:[#allocation7 + $0x78] sm:$0xff]  ;;  %v4958_v22 = vld [vmem:[%s5189_s17 + $0x10] sm:$0xff] }
 0x6e1   :  { %1557 = vmatprep.subr.mxu0 %v4275_v18  ;;  %v1746_v18 = vld [vmem:[#allocation7 + $0x70] sm:$0xff]  ;;  %5260 = vst [vmem:[#allocation36_spill] sm:$0xff] %v4958_v22 }
 0x6e2   :  { %1558 = vmatpush1.msra.mxu0 %v4280_v19  ;;  %v1743_v19 = vld [vmem:[#allocation7 + $0x58] sm:$0xff] }
 0x79f   :  { %v3554_v2 = vpop.f32.mrf.mxu0 }
 0x7a1   :  { %v3555_v12 = vpop.f32.mrf.mxu0 }
 0x7a2   :  { %v3556_v13 = vadd.f32 %v3555_v12, %v3554_v2  ;;  %v1839_v2 = vld [vmem:[#allocation7 + $0x358] sm:$0xff]  ;;  %v1838_v12 = vld [vmem:[#allocation7 + $0x350] sm:$0xff] }
 0x7a4   :  { %3410 = vmatmul.mubr.msk.f32.vlgmr.msra.gmra.mxu1 %vm848_vm4, %v3556_v13  ;;  %v1835_v13 = vld [vmem:[#allocation7 + $0x338] sm:$0xff] }
 0x7a5   :  { %3558 = vmatpush3.msra.mxu1 %v4068_v28 }
 0x7a6   :  { %3559 = vmatprep.subr.mxu1 %v4075_v31 }
 0x7a7   :  { %3560 = vmatpush3.msra.mxu1 %v4080_v32 }
 0x7a8   :  { %3561 = vmatprep.subr.mxu1 %v4086_v33 }
 0x7a9   :  { %3562 = vmatpush3.msra.mxu1 %v4092_v34 }
 0x7aa   :  { %3563 = vmatprep.subr.mxu1 %v4098_v35 }
 0x7ab   :  { %3564 = vmatpush3.msra.mxu1 %v4104_v36  ;;  %v1793_v36 = vld [vmem:[#allocation7 + $0x1e8] sm:$0xff] }
 0x7ac   :  { %3565 = vmatprep.subr.mxu1 %v4110_v37  ;;  %v1795_v37 = vld [vmem:[#allocation7 + $0x1f8] sm:$0xff]  ;;  %1860 = vmatprep.subr.mxu0 %v1793_v36  ;;  %v1826_v36 = vld [vmem:[#allocation7 + $0x2f0] sm:$0xff] }
 0x7ad   :  { %3566 = vmatpush3.msra.mxu1 %v4116_v38  ;;  %v1794_v38 = vld [vmem:[#allocation7 + $0x1f0] sm:$0xff] }
 0x7ae   :  { %3567 = vmatprep.subr.mxu1 %v4122_v39  ;;  %v1791_v39 = vld [vmem:[#allocation7 + $0x1d8] sm:$0xff] }
 0x7af   :  { %3568 = vmatpush3.msra.mxu1 %v4128_v40  ;;  %v1790_v40 = vld [vmem:[#allocation7 + $0x1d0] sm:$0xff] }
 0x7b0   :  { %3569 = vmatprep.subr.mxu1 %v4134_v41  ;;  %v1787_v41 = vld [vmem:[#allocation7 + $0x1b8] sm:$0xff] }
 0x7b1   :  { %3570 = vmatpush3.msra.mxu1 %v4140_v42  ;;  %v1786_v42 = vld [vmem:[#allocation7 + $0x1b0] sm:$0xff] }
 0x7b2   :  { %3571 = vmatprep.subr.mxu1 %v4146_v43  ;;  %v1783_v43 = vld [vmem:[#allocation7 + $0x198] sm:$0xff] }
 0x7b3   :  { %3572 = vmatpush3.msra.mxu1 %v4152_v44  ;;  %v1782_v44 = vld [vmem:[#allocation7 + $0x190] sm:$0xff] }
 0x7b4   :  { %3573 = vmatprep.subr.mxu1 %v4158_v45  ;;  %v1779_v45 = vld [vmem:[#allocation7 + $0x178] sm:$0xff] }
 0x7b5   :  { %3574 = vmatpush3.msra.mxu1 %v4164_v46  ;;  %v1778_v46 = vld [vmem:[#allocation7 + $0x170] sm:$0xff] }
 0x7b6   :  { %3575 = vmatprep.subr.mxu1 %v4170_v47  ;;  %v1775_v47 = vld [vmem:[#allocation7 + $0x158] sm:$0xff] }
 0x7b7   :  { %3576 = vmatpush3.msra.mxu1 %v4176_v48  ;;  %v1774_v48 = vld [vmem:[#allocation7 + $0x150] sm:$0xff] }
 0x7b8   :  { %3577 = vmatprep.subr.mxu1 %v4182_v49  ;;  %v1771_v49 = vld [vmem:[#allocation7 + $0x138] sm:$0xff] }
 0x7b9   :  { %3578 = vmatpush3.msra.mxu1 %v4188_v50  ;;  %v1770_v50 = vld [vmem:[#allocation7 + $0x130] sm:$0xff] }
 0x7ba   :  { %3579 = vmatprep.subr.mxu1 %v4194_v51  ;;  %v1767_v51 = vld [vmem:[#allocation7 + $0x118] sm:$0xff] }
 0x7bb   :  { %3580 = vmatpush3.msra.mxu1 %v4200_v52  ;;  %v1766_v52 = vld [vmem:[#allocation7 + $0x110] sm:$0xff] }
 0x7bc   :  { %3581 = vmatprep.subr.mxu1 %v4208_v53  ;;  %v1763_v53 = vld [vmem:[#allocation7 + $0xf8] sm:$0xff] }
 0x7bd   :  { %3582 = vmatpush3.msra.mxu1 %v4214_v54  ;;  %v1762_v54 = vld [vmem:[#allocation7 + $0xf0] sm:$0xff] }
 0x7be   :  { %3583 = vmatprep.subr.mxu1 %v4220_v55  ;;  %v1759_v55 = vld [vmem:[#allocation7 + $0xd8] sm:$0xff] }
 0x7bf   :  { %3584 = vmatpush3.msra.mxu1 %v4226_v56  ;;  %v1758_v56 = vld [vmem:[#allocation7 + $0xd0] sm:$0xff] }
 0x7c0   :  { %3585 = vmatprep.subr.mxu1 %v4232_v57  ;;  %v1755_v57 = vld [vmem:[#allocation7 + $0xb8] sm:$0xff] }
 0x7c1   :  { %3586 = vmatpush3.msra.mxu1 %v4238_v58  ;;  %v1754_v58 = vld [vmem:[#allocation7 + $0xb0] sm:$0xff] }
 0x7c2   :  { %3587 = vmatprep.subr.mxu1 %v4243_v59  ;;  %v1751_v59 = vld [vmem:[#allocation7 + $0x98] sm:$0xff] }
 0x7c3   :  { %3588 = vmatpush3.msra.mxu1 %v4248_v60  ;;  %v1750_v60 = vld [vmem:[#allocation7 + $0x90] sm:$0xff] }
 0x7c4   :  { %1931 = vmatprep.subr.mxu1 %v1795_v37  ;;  %v1823_v37 = vld [vmem:[#allocation7 + $0x2d8] sm:$0xff] }
 0x864   :  { %v1444_v28 = vpop.f32.mrf.mxu1 }
 0x865   :  { %v4618_v31 = vsub.f32 %v1301_v11, %v1444_v28  ;;  %v1842_v11 = vld [vmem:[#allocation7 + $0x370] sm:$0xff] }
 0x866   :  { %v1446_v32 = vpop.f32.mrf.mxu1  ;;  %v1834_v28 = vld [vmem:[#allocation7 + $0x330] sm:$0xff] }
 0x867   :  { %v4620_v33 = vsub.f32 %v1303_v10, %v1446_v32  ;;  %v1451_v35 = vmul.f32 %v4618_v31, %v4618_v31  ;;  %v1843_v10 = vld [vmem:[#allocation7 + $0x378] sm:$0xff] }
 0x868   :  { %v1831_v32 = vld [vmem:[#allocation7 + $0x318] sm:$0xff] }
 0x869   :  { %v1452_v34 = vmul.f32 %v4620_v33, %v4620_v33 }
 0x86b   :  { %1517 = vmatprep.mubr.f32.mxu1 %v1452_v34  ;;  %v1830_v34 = vld [vmem:[#allocation7 + $0x310] sm:$0xff] }
 0x86c   :  { %1518 = vmatmul.mubr.f32.vlgmr.msra.gmra.mxu1 %v1451_v35  ;;  %v1827_v35 = vld [vmem:[#allocation7 + $0x2f8] sm:$0xff] }
 0x86d   :  { %1932 = vmatpush1.msra.mxu1 %v1794_v38  ;;  %v1822_v38 = vld [vmem:[#allocation7 + $0x2d0] sm:$0xff] }
 0x86e   :  { %1933 = vmatprep.subr.mxu1 %v1791_v39  ;;  %v1819_v39 = vld [vmem:[#allocation7 + $0x2b8] sm:$0xff] }
 0x86f   :  { %1934 = vmatpush1.msra.mxu1 %v1790_v40  ;;  %v1818_v40 = vld [vmem:[#allocation7 + $0x2b0] sm:$0xff] }
 0x870   :  { %1935 = vmatprep.subr.mxu1 %v1787_v41  ;;  %v1815_v41 = vld [vmem:[#allocation7 + $0x298] sm:$0xff] }
 0x871   :  { %1936 = vmatpush1.msra.mxu1 %v1786_v42  ;;  %v1814_v42 = vld [vmem:[#allocation7 + $0x290] sm:$0xff] }
 0x872   :  { %1937 = vmatprep.subr.mxu1 %v1783_v43  ;;  %v1811_v43 = vld [vmem:[#allocation7 + $0x278] sm:$0xff] }
 0x873   :  { %1938 = vmatpush1.msra.mxu1 %v1782_v44 }
 0x874   :  { %1939 = vmatprep.subr.mxu1 %v1779_v45 }
 0x875   :  { %1940 = vmatpush1.msra.mxu1 %v1778_v46 }
 0x876   :  { %1941 = vmatprep.subr.mxu1 %v1775_v47 }
 0x877   :  { %1942 = vmatpush1.msra.mxu1 %v1774_v48  ;;  %v1792_v48 = vld [vmem:[#allocation7 + $0x1e0] sm:$0xff] }
 0x878   :  { %1943 = vmatprep.subr.mxu1 %v1771_v49 }
 0x879   :  { %1944 = vmatpush1.msra.mxu1 %v1770_v50  ;;  %v1789_v50 = vld [vmem:[#allocation7 + $0x1c8] sm:$0xff] }
 0x87a   :  { %1945 = vmatprep.subr.mxu1 %v1767_v51  ;;  %v1788_v51 = vld [vmem:[#allocation7 + $0x1c0] sm:$0xff] }
 0x87b   :  { %1946 = vmatpush1.msra.mxu1 %v1766_v52  ;;  %v1785_v52 = vld [vmem:[#allocation7 + $0x1a8] sm:$0xff] }
 0x87c   :  { %1947 = vmatprep.subr.mxu1 %v1763_v53  ;;  %v1784_v53 = vld [vmem:[#allocation7 + $0x1a0] sm:$0xff] }
 0x87d   :  { %1948 = vmatpush1.msra.mxu1 %v1762_v54  ;;  %v1781_v54 = vld [vmem:[#allocation7 + $0x188] sm:$0xff] }
 0x87e   :  { %1949 = vmatprep.subr.mxu1 %v1759_v55  ;;  %v1780_v55 = vld [vmem:[#allocation7 + $0x180] sm:$0xff] }
 0x87f   :  { %1950 = vmatpush1.msra.mxu1 %v1758_v56  ;;  %v1777_v56 = vld [vmem:[#allocation7 + $0x168] sm:$0xff] }
 0x880   :  { %1951 = vmatprep.subr.mxu1 %v1755_v57  ;;  %v1776_v57 = vld [vmem:[#allocation7 + $0x160] sm:$0xff] }
 0x881   :  { %1952 = vmatpush1.msra.mxu1 %v1754_v58  ;;  %v1773_v58 = vld [vmem:[#allocation7 + $0x148] sm:$0xff] }
 0x882   :  { %1953 = vmatprep.subr.mxu1 %v1751_v59  ;;  %v1772_v59 = vld [vmem:[#allocation7 + $0x140] sm:$0xff] }
 0x883   :  { %1954 = vmatpush1.msra.mxu1 %v1750_v60  ;;  %v1769_v60 = vld [vmem:[#allocation7 + $0x128] sm:$0xff] }
 0x884   :  { %1955 = vmatprep.subr.mxu1 %v1747_v15  ;;  %v1768_v15 = vld [vmem:[#allocation7 + $0x120] sm:$0xff] }
 0x885   :  { %1956 = vmatpush1.msra.mxu1 %v1746_v18  ;;  %v1765_v18 = vld [vmem:[#allocation7 + $0x108] sm:$0xff] }
 0x886   :  { %1957 = vmatprep.subr.mxu1 %v1743_v19  ;;  %v1764_v19 = vld [vmem:[#allocation7 + $0x100] sm:$0xff] }
 0x887   :  { %1958 = vmatpush1.msra.mxu1 %v1742_v23  ;;  %v1761_v23 = vld [vmem:[#allocation7 + $0xe8] sm:$0xff] }
 0x888   :  { %1959 = vmatprep.subr.mxu1 %v1739_v24  ;;  %v1760_v24 = vld [vmem:[#allocation7 + $0xe0] sm:$0xff] }
 0x889   :  { %1960 = vmatpush1.msra.mxu1 %v1738_v25  ;;  %v1757_v25 = vld [vmem:[#allocation7 + $0xc8] sm:$0xff] }
 0x88a   :  { %1961 = vmatprep.subr.mxu1 %v1735_v26  ;;  %v1756_v26 = vld [vmem:[#allocation7 + $0xc0] sm:$0xff] }
 0x88b   :  { %1962 = vmatpush1.msra.mxu1 %v1734_v61  ;;  %v1753_v61 = vld [vmem:[#allocation7 + $0xa8] sm:$0xff] }
 0x88c   :  { %1963 = vmatprep.subr.mxu1 %v1859_v63  ;;  %v1752_v63 = vld [vmem:[#allocation7 + $0xa0] sm:$0xff] }
 0x88d   :  { %1964 = vmatpush2.msra.mxu1 %v1858_v0  ;;  %v1749_v0 = vld [vmem:[#allocation7 + $0x88] sm:$0xff] }
 0x88e   :  { %1965 = vmatprep.subr.mxu1 %v1855_v1  ;;  %v1748_v1 = vld [vmem:[#allocation7 + $0x80] sm:$0xff] }
 0x88f   :  { %1966 = vmatpush2.msra.mxu1 %v1854_v14  ;;  %v1745_v14 = vld [vmem:[#allocation7 + $0x68] sm:$0xff] }
 0x890   :  { %1967 = vmatprep.subr.mxu1 %v1851_v3  ;;  %v1744_v3 = vld [vmem:[#allocation7 + $0x60] sm:$0xff] }
 0x891   :  { %1968 = vmatpush2.msra.mxu1 %v1850_v27  ;;  %v1741_v27 = vld [vmem:[#allocation7 + $0x48] sm:$0xff] }
 0x892   :  { %1969 = vmatprep.subr.mxu1 %v1847_v30  ;;  %v1740_v30 = vld [vmem:[#allocation7 + $0x40] sm:$0xff] }
 0x893   :  { %1970 = vmatpush2.msra.mxu1 %v1846_v7  ;;  %v1737_v7 = vld [vmem:[#allocation7 + $0x28] sm:$0xff] }
 0x894   :  { %1971 = vmatprep.subr.mxu1 %v1843_v10  ;;  %v1736_v10 = vld [vmem:[#allocation7 + $0x20] sm:$0xff] }
 0x895   :  { %1972 = vmatpush2.msra.mxu1 %v1842_v11  ;;  %v1733_v11 = vld [vmem:[#allocation7 + $0x8] sm:$0xff] }
 0x896   :  { %1973 = vmatprep.subr.mxu1 %v1839_v2  ;;  %v1732_v2 = vld [vmem:[#allocation7] sm:$0xff] }
 0x897   :  { %1974 = vmatpush2.msra.mxu1 %v1838_v12  ;;  %v1857_v12 = vld [vmem:[#allocation7 + $0x3e8] sm:$0xff] }
 0x898   :  { %1975 = vmatprep.subr.mxu1 %v1835_v13  ;;  %v1856_v13 = vld [vmem:[#allocation7 + $0x3e0] sm:$0xff] }
 0x899   :  { %1976 = vmatpush2.msra.mxu1 %v1834_v28  ;;  %v1853_v28 = vld [vmem:[#allocation7 + $0x3c8] sm:$0xff] }
 0x89a   :  { %1977 = vmatprep.subr.mxu1 %v1831_v32  ;;  %v1852_v32 = vld [vmem:[#allocation7 + $0x3c0] sm:$0xff] }
 0x89b   :  { %1978 = vmatpush2.msra.mxu1 %v1830_v34  ;;  %v1849_v34 = vld [vmem:[#allocation7 + $0x3a8] sm:$0xff] }
 0x89c   :  { %1979 = vmatprep.subr.mxu1 %v1827_v35  ;;  %v1848_v35 = vld [vmem:[#allocation7 + $0x3a0] sm:$0xff] }
 0x89d   :  { %1980 = vmatpush2.msra.mxu1 %v1826_v36  ;;  %v1845_v36 = vld [vmem:[#allocation7 + $0x388] sm:$0xff] }
 0x89e   :  { %1981 = vmatprep.subr.mxu1 %v1823_v37  ;;  %v1844_v37 = vld [vmem:[#allocation7 + $0x380] sm:$0xff] }
 0x89f   :  { %1982 = vmatpush2.msra.mxu1 %v1822_v38  ;;  %v1841_v38 = vld [vmem:[#allocation7 + $0x368] sm:$0xff] }
 0x8a0   :  { %1983 = vmatprep.subr.mxu1 %v1819_v39  ;;  %v1840_v39 = vld [vmem:[#allocation7 + $0x360] sm:$0xff] }
 0x8a1   :  { %1984 = vmatpush2.msra.mxu1 %v1818_v40  ;;  %v1837_v40 = vld [vmem:[#allocation7 + $0x348] sm:$0xff] }
 0x8a2   :  { %1985 = vmatprep.subr.mxu1 %v1815_v41  ;;  %v1836_v41 = vld [vmem:[#allocation7 + $0x340] sm:$0xff] }
 0x8a3   :  { %1986 = vmatpush2.msra.mxu1 %v1814_v42  ;;  %v1833_v42 = vld [vmem:[#allocation7 + $0x328] sm:$0xff] }
 0x8a4   :  { %1987 = vmatprep.subr.mxu1 %v1811_v43  ;;  %v1832_v43 = vld [vmem:[#allocation7 + $0x320] sm:$0xff] }
 0x92c   :  { %v3589_v44 = vpop.f32.mrf.mxu1 }
 0x92e   :  { %v3590_v45 = vpop.f32.mrf.mxu1 }
 0x92f   :  { %v3591_v46 = vadd.f32 %v3590_v45, %v3589_v44  ;;  %v1829_v44 = vld [vmem:[#allocation7 + $0x308] sm:$0xff]  ;;  %v1828_v45 = vld [vmem:[#allocation7 + $0x300] sm:$0xff] }
 0x931   :  { %v1520_v47 = vadd.f32 1e-05, %v3591_v46  ;;  %v1825_v46 = vld [vmem:[#allocation7 + $0x2e8] sm:$0xff] }
 0x933   :  { %3745 = vrsqrt.f32 %v1520_v47  ;;  %v1824_v47 = vld [vmem:[#allocation7 + $0x2e0] sm:$0xff] }
 0x940   :  { %v3746_v49 = vpop.eup %3745 }
 0x941   :  { %3411 = vmatmul.mubr.msk.f32.vlgmr.msra.gmra.mxu0 %vm848_vm4, %v3746_v49  ;;  %v1820_v49 = vld [vmem:[#allocation7 + $0x2c0] sm:$0xff] }
 0x942   :  { %1861 = vmatpush1.msra.mxu0 %v1792_v48  ;;  %v1821_v48 = vld [vmem:[#allocation7 + $0x2c8] sm:$0xff] }
 0x943   :  { %1862 = vmatprep.subr.mxu0 %v1789_v50  ;;  %v1817_v50 = vld [vmem:[#allocation7 + $0x2a8] sm:$0xff] }
 0x944   :  { %1863 = vmatpush1.msra.mxu0 %v1788_v51  ;;  %v1816_v51 = vld [vmem:[#allocation7 + $0x2a0] sm:$0xff] }
 0x945   :  { %1864 = vmatprep.subr.mxu0 %v1785_v52  ;;  %v1813_v52 = vld [vmem:[#allocation7 + $0x288] sm:$0xff] }
 0x946   :  { %1865 = vmatpush1.msra.mxu0 %v1784_v53  ;;  %v1812_v53 = vld [vmem:[#allocation7 + $0x280] sm:$0xff] }
 0x947   :  { %1866 = vmatprep.subr.mxu0 %v1781_v54  ;;  %v1809_v54 = vld [vmem:[#allocation7 + $0x268] sm:$0xff] }
 0x948   :  { %1867 = vmatpush1.msra.mxu0 %v1780_v55  ;;  %v1808_v55 = vld [vmem:[#allocation7 + $0x260] sm:$0xff] }
 0x949   :  { %1868 = vmatprep.subr.mxu0 %v1777_v56  ;;  %v1810_v56 = vld [vmem:[#allocation7 + $0x270] sm:$0xff] }
 0x94a   :  { %1869 = vmatpush1.msra.mxu0 %v1776_v57  ;;  %1988 = vmatpush2.msra.mxu1 %v1810_v56  ;;  %v1805_v57 = vld [vmem:[#allocation7 + $0x248] sm:$0xff]  ;;  %v1633_v56 = vld [vmem:[#allocation6 + $0xf8] sm:$0xff] }
 0x94b   :  { %1870 = vmatprep.subr.mxu0 %v1773_v58  ;;  %v1807_v58 = vld [vmem:[#allocation7 + $0x258] sm:$0xff] }
 0x94c   :  { %1871 = vmatpush1.msra.mxu0 %v1772_v59  ;;  %1989 = vmatprep.subr.mxu1 %v1807_v58  ;;  %v1804_v59 = vld [vmem:[#allocation7 + $0x240] sm:$0xff]  ;;  %v1632_v58 = vld [vmem:[#allocation6 + $0xf0] sm:$0xff] }
 0x94d   :  { %1872 = vmatprep.subr.mxu0 %v1769_v60  ;;  %v1806_v60 = vld [vmem:[#allocation7 + $0x250] sm:$0xff] }
 0x94e   :  { %1873 = vmatpush1.msra.mxu0 %v1768_v15  ;;  %1990 = vmatpush2.msra.mxu1 %v1806_v60  ;;  %v1801_v15 = vld [vmem:[#allocation7 + $0x228] sm:$0xff]  ;;  %v1629_v60 = vld [vmem:[#allocation6 + $0xd8] sm:$0xff] }
 0x94f   :  { %1874 = vmatprep.subr.mxu0 %v1765_v18  ;;  %v1803_v18 = vld [vmem:[#allocation7 + $0x238] sm:$0xff] }
 0x950   :  { %1875 = vmatpush1.msra.mxu0 %v1764_v19  ;;  %1991 = vmatprep.subr.mxu1 %v1803_v18  ;;  %v1800_v19 = vld [vmem:[#allocation7 + $0x220] sm:$0xff]  ;;  %v1628_v18 = vld [vmem:[#allocation6 + $0xd0] sm:$0xff] }
 0x951   :  { %1876 = vmatprep.subr.mxu0 %v1761_v23  ;;  %v1802_v23 = vld [vmem:[#allocation7 + $0x230] sm:$0xff] }
 0x952   :  { %1877 = vmatpush1.msra.mxu0 %v1760_v24  ;;  %1992 = vmatpush2.msra.mxu1 %v1802_v23  ;;  %v1797_v24 = vld [vmem:[#allocation7 + $0x208] sm:$0xff]  ;;  %v1625_v23 = vld [vmem:[#allocation6 + $0xb8] sm:$0xff] }
 0x953   :  { %1878 = vmatprep.subr.mxu0 %v1757_v25  ;;  %v1799_v25 = vld [vmem:[#allocation7 + $0x218] sm:$0xff] }
 0x954   :  { %1879 = vmatpush1.msra.mxu0 %v1756_v26  ;;  %v1796_v26 = vld [vmem:[#allocation7 + $0x200] sm:$0xff]  ;;  %1993 = vmatprep.subr.mxu1 %v1799_v25  ;;  %v1624_v25 = vld [vmem:[#allocation6 + $0xb0] sm:$0xff] }
 0x955   :  { %1880 = vmatprep.subr.mxu0 %v1753_v61  ;;  %v1798_v61 = vld [vmem:[#allocation7 + $0x210] sm:$0xff] }
 0x956   :  { %1881 = vmatpush1.msra.mxu0 %v1752_v63  ;;  %1994 = vmatpush2.msra.mxu1 %v1798_v61  ;;  %v1663_v63 = vld [vmem:[#allocation6 + $0x1e8] sm:$0xff]  ;;  %v1621_v61 = vld [vmem:[#allocation6 + $0x98] sm:$0xff] }
 0x957   :  { %1882 = vmatprep.subr.mxu0 %v1749_v0  ;;  %v1665_v0 = vld [vmem:[#allocation6 + $0x1f8] sm:$0xff] }
 0x958   :  { %1883 = vmatpush1.msra.mxu0 %v1748_v1  ;;  %2073 = vmatprep.subr.mxu1 %v1665_v0  ;;  %v1620_v0 = vld [vmem:[#allocation6 + $0x90] sm:$0xff] }
 0x959   :  { %1884 = vmatprep.subr.mxu0 %v1745_v14 }
 0x95a   :  { %1885 = vmatpush1.msra.mxu0 %v1744_v3 }
 0x95b   :  { %1886 = vmatprep.subr.mxu0 %v1741_v27 }
 0x95c   :  { %1887 = vmatpush1.msra.mxu0 %v1740_v30 }
 0x95d   :  { %1888 = vmatprep.subr.mxu0 %v1737_v7 }
 0x95e   :  { %1889 = vmatpush1.msra.mxu0 %v1736_v10  ;;  %v1662_v10 = vld [vmem:[#allocation6 + $0x1e0] sm:$0xff] }
 0x95f   :  { %1890 = vmatprep.subr.mxu0 %v1733_v11  ;;  %v1664_v11 = vld [vmem:[#allocation6 + $0x1f0] sm:$0xff] }
 0x960   :  { %1891 = vmatpush1.msra.mxu0 %v1732_v2  ;;  %v1659_v2 = vld [vmem:[#allocation6 + $0x1c8] sm:$0xff] }
 0x961   :  { %1892 = vmatprep.subr.mxu0 %v1857_v12  ;;  %v1601_v12 = vmax.f32 %v4501_v62, 0.0  ;;  %v1650_v62 = vld [vmem:[#allocation6 + $0x180] sm:$0xff] }
 0x962   :  { %1893 = vmatpush2.msra.mxu0 %v1856_v13  ;;  %v1661_v13 = vld [vmem:[#allocation6 + $0x1d8] sm:$0xff] }
 0x963   :  { %1894 = vmatprep.subr.mxu0 %v1853_v28  ;;  %v1658_v28 = vld [vmem:[#allocation6 + $0x1c0] sm:$0xff] }
 0x964   :  { %1895 = vmatpush2.msra.mxu0 %v1852_v32  ;;  %v1660_v32 = vld [vmem:[#allocation6 + $0x1d0] sm:$0xff] }
 0x965   :  { %1896 = vmatprep.subr.mxu0 %v1849_v34  ;;  %v1654_v34 = vld [vmem:[#allocation6 + $0x1a0] sm:$0xff] }
 0x966   :  { %1897 = vmatpush2.msra.mxu0 %v1848_v35  ;;  %v1656_v35 = vld [vmem:[#allocation6 + $0x1b0] sm:$0xff] }
 0x967   :  { %1898 = vmatprep.subr.mxu0 %v1845_v36  ;;  %v1651_v36 = vld [vmem:[#allocation6 + $0x188] sm:$0xff] }
 0x968   :  { %1899 = vmatpush2.msra.mxu0 %v1844_v37  ;;  %v1653_v37 = vld [vmem:[#allocation6 + $0x198] sm:$0xff] }
 0x969   :  { %1900 = vmatprep.subr.mxu0 %v1841_v38  ;;  %v1652_v38 = vld [vmem:[#allocation6 + $0x190] sm:$0xff] }
 0x96a   :  { %1901 = vmatpush2.msra.mxu0 %v1840_v39  ;;  %v1647_v39 = vld [vmem:[#allocation6 + $0x168] sm:$0xff] }
 0x96b   :  { %1902 = vmatprep.subr.mxu0 %v1837_v40  ;;  %v1649_v40 = vld [vmem:[#allocation6 + $0x178] sm:$0xff] }
 0x96c   :  { %1903 = vmatpush2.msra.mxu0 %v1836_v41  ;;  %v1646_v41 = vld [vmem:[#allocation6 + $0x160] sm:$0xff] }
 0x96d   :  { %1904 = vmatprep.subr.mxu0 %v1833_v42  ;;  %v1648_v42 = vld [vmem:[#allocation6 + $0x170] sm:$0xff] }
 0x96e   :  { %1905 = vmatpush2.msra.mxu0 %v1832_v43  ;;  %v1643_v43 = vld [vmem:[#allocation6 + $0x148] sm:$0xff] }
 0x96f   :  { %1906 = vmatprep.subr.mxu0 %v1829_v44  ;;  %v1645_v44 = vld [vmem:[#allocation6 + $0x158] sm:$0xff] }
 0x970   :  { %1907 = vmatpush2.msra.mxu0 %v1828_v45  ;;  %v1642_v45 = vld [vmem:[#allocation6 + $0x140] sm:$0xff] }
 0x971   :  { %1908 = vmatprep.subr.mxu0 %v1825_v46  ;;  %v1644_v46 = vld [vmem:[#allocation6 + $0x150] sm:$0xff] }
 0x972   :  { %1909 = vmatpush2.msra.mxu0 %v1824_v47  ;;  %v1639_v47 = vld [vmem:[#allocation6 + $0x128] sm:$0xff] }
 0x973   :  { %1910 = vmatprep.subr.mxu0 %v1821_v48  ;;  %v1641_v48 = vld [vmem:[#allocation6 + $0x138] sm:$0xff] }
 0x974   :  { %1911 = vmatpush2.msra.mxu0 %v1820_v49  ;;  %v1638_v49 = vld [vmem:[#allocation6 + $0x120] sm:$0xff] }
 0x975   :  { %1912 = vmatprep.subr.mxu0 %v1817_v50  ;;  %v1640_v50 = vld [vmem:[#allocation6 + $0x130] sm:$0xff] }
 0x976   :  { %1913 = vmatpush2.msra.mxu0 %v1816_v51  ;;  %v1635_v51 = vld [vmem:[#allocation6 + $0x108] sm:$0xff] }
 0x977   :  { %1914 = vmatprep.subr.mxu0 %v1813_v52  ;;  %v1637_v52 = vld [vmem:[#allocation6 + $0x118] sm:$0xff] }
 0x978   :  { %1915 = vmatpush2.msra.mxu0 %v1812_v53  ;;  %v1634_v53 = vld [vmem:[#allocation6 + $0x100] sm:$0xff] }
 0x979   :  { %1916 = vmatprep.subr.mxu0 %v1809_v54  ;;  %v1636_v54 = vld [vmem:[#allocation6 + $0x110] sm:$0xff] }
 0x97a   :  { %1917 = vmatpush2.msra.mxu0 %v1808_v55  ;;  %v1631_v55 = vld [vmem:[#allocation6 + $0xe8] sm:$0xff] }
 0x97b   :  { %1918 = vmatprep.subr.mxu0 %v1805_v57  ;;  %v1630_v57 = vld [vmem:[#allocation6 + $0xe0] sm:$0xff] }
 0x97c   :  { %1919 = vmatpush2.msra.mxu0 %v1804_v59  ;;  %v1627_v59 = vld [vmem:[#allocation6 + $0xc8] sm:$0xff] }
 0x97d   :  { %1920 = vmatprep.subr.mxu0 %v1801_v15  ;;  %v1626_v15 = vld [vmem:[#allocation6 + $0xc0] sm:$0xff] }
 0x97e   :  { %1921 = vmatpush2.msra.mxu0 %v1800_v19  ;;  %v1623_v19 = vld [vmem:[#allocation6 + $0xa8] sm:$0xff] }
 0x97f   :  { %1922 = vmatprep.subr.mxu0 %v1797_v24  ;;  %v1622_v24 = vld [vmem:[#allocation6 + $0xa0] sm:$0xff] }
 0x980   :  { %1923 = vmatpush2.msra.mxu0 %v1796_v26  ;;  %v1619_v26 = vld [vmem:[#allocation6 + $0x88] sm:$0xff] }
 0x981   :  { %2002 = vmatprep.subr.mxu0 %v1663_v63  ;;  %v1618_v63 = vld [vmem:[#allocation6 + $0x80] sm:$0xff] }
 0xa01   :  { %v1593_v1 = vpop.f32.mrf.mxu0 }
 0xa02   :  { %v1598_v14 = vmul.f32 %v1593_v1, %v4618_v31  ;;  %v1655_v31 = vld [vmem:[#allocation6 + $0x1a8] sm:$0xff] }
 0xa03   :  { %v1595_v3 = vpop.f32.mrf.mxu0  ;;  %v1615_v1 = vld [vmem:[#allocation6 + $0x68] sm:$0xff] }
 0xa04   :  { %v1599_v27 = vmul.f32 %v1595_v3, %v4620_v33  ;;  %v1730_v7 = vmax.f32 %v1598_v14, 0.0  ;;  %v1657_v33 = vld [vmem:[#allocation6 + $0x1b8] sm:$0xff]  ;;  %v1614_v3 = vld [vmem:[#allocation6 + $0x60] sm:$0xff] }
 0xa05   :  { %v1617_v14 = vld [vmem:[#allocation6 + $0x78] sm:$0xff] }
 0xa06   :  { %v1731_v30 = vmax.f32 %v1599_v27, 0.0  ;;  %v1616_v27 = vld [vmem:[#allocation6 + $0x70] sm:$0xff] }
 0xa08   :  { %1924 = vmatprep.mubr.f32.mxu0 %v1731_v30  ;;  %1995 = vmatprep.mubr.f32.mxu1 %v1731_v30  ;;  %v1611_v30 = vld [vmem:[#allocation6 + $0x48] sm:$0xff] }
 0xa09   :  { %1925 = vmatmul.mubr.f32.vlgmr.msra.gmra.mxu0 %v1730_v7  ;;  %1996 = vmatmul.mubr.f32.vlgmr.msra.gmra.mxu1 %v1730_v7  ;;  %v1613_v7 = vld [vmem:[#allocation6 + $0x58] sm:$0xff] }
 0xa0a   :  { %2003 = vmatpush1.msra.mxu0 %v1662_v10  ;;  %2074 = vmatpush1.msra.mxu1 %v1664_v11  ;;  %v1610_v10 = vld [vmem:[#allocation6 + $0x40] sm:$0xff]  ;;  %v1612_v11 = vld [vmem:[#allocation6 + $0x50] sm:$0xff] }
 0xa0b   :  { %2004 = vmatprep.subr.mxu0 %v1659_v2  ;;  %2066 = vmatprep.mubr.f32.mxu0 %v1601_v12  ;;  %v1607_v2 = vld [vmem:[#allocation6 + $0x28] sm:$0xff] }
 0xa0c   :  { %2075 = vmatprep.subr.mxu1 %v1661_v13  ;;  %2137 = vmatprep.mubr.f32.mxu1 %v1601_v12  ;;  %v1609_v12 = vld [vmem:[#allocation6 + $0x38] sm:$0xff]  ;;  %v1606_v13 = vld [vmem:[#allocation6 + $0x20] sm:$0xff] }
 0xa0d   :  { %2005 = vmatpush1.msra.mxu0 %v1658_v28  ;;  %2076 = vmatpush1.msra.mxu1 %v1660_v32  ;;  %v1608_v28 = vld [vmem:[#allocation6 + $0x30] sm:$0xff]  ;;  %v1603_v32 = vld [vmem:[#allocation6 + $0x8] sm:$0xff] }
 0xa0e   :  { %2006 = vmatprep.subr.mxu0 %v1655_v31  ;;  %2077 = vmatprep.subr.mxu1 %v1657_v33  ;;  %v1605_v31 = vld [vmem:[#allocation6 + $0x18] sm:$0xff]  ;;  %v1602_v33 = vld [vmem:[#allocation6] sm:$0xff] }
 0xa0f   :  { %2007 = vmatpush1.msra.mxu0 %v1654_v34  ;;  %2078 = vmatpush1.msra.mxu1 %v1656_v35  ;;  %v1604_v34 = vld [vmem:[#allocation6 + $0x10] sm:$0xff]  ;;  %v1727_v35 = vld [vmem:[#allocation6 + $0x3e8] sm:$0xff] }
 0xa10   :  { %2008 = vmatprep.subr.mxu0 %v1651_v36  ;;  %2079 = vmatprep.subr.mxu1 %v1653_v37  ;;  %v1729_v36 = vld [vmem:[#allocation6 + $0x3f8] sm:$0xff]  ;;  %v1726_v37 = vld [vmem:[#allocation6 + $0x3e0] sm:$0xff] }
 0xa11   :  { %2009 = vmatpush1.msra.mxu0 %v1650_v62  ;;  %2080 = vmatpush1.msra.mxu1 %v1652_v38  ;;  %v1728_v62 = vld [vmem:[#allocation6 + $0x3f0] sm:$0xff]  ;;  %v1723_v38 = vld [vmem:[#allocation6 + $0x3c8] sm:$0xff] }
 0xa12   :  { %2010 = vmatprep.subr.mxu0 %v1647_v39  ;;  %2081 = vmatprep.subr.mxu1 %v1649_v40  ;;  %v1725_v39 = vld [vmem:[#allocation6 + $0x3d8] sm:$0xff]  ;;  %v1722_v40 = vld [vmem:[#allocation6 + $0x3c0] sm:$0xff] }
 0xa13   :  { %2011 = vmatpush1.msra.mxu0 %v1646_v41  ;;  %2082 = vmatpush1.msra.mxu1 %v1648_v42  ;;  %v1724_v41 = vld [vmem:[#allocation6 + $0x3d0] sm:$0xff]  ;;  %v1719_v42 = vld [vmem:[#allocation6 + $0x3a8] sm:$0xff] }
 0xa14   :  { %2012 = vmatprep.subr.mxu0 %v1643_v43  ;;  %2083 = vmatprep.subr.mxu1 %v1645_v44  ;;  %v1721_v43 = vld [vmem:[#allocation6 + $0x3b8] sm:$0xff]  ;;  %v1718_v44 = vld [vmem:[#allocation6 + $0x3a0] sm:$0xff] }
 0xa15   :  { %2013 = vmatpush1.msra.mxu0 %v1642_v45  ;;  %2084 = vmatpush1.msra.mxu1 %v1644_v46  ;;  %v1720_v45 = vld [vmem:[#allocation6 + $0x3b0] sm:$0xff]  ;;  %v1715_v46 = vld [vmem:[#allocation6 + $0x388] sm:$0xff] }
 0xa16   :  { %2014 = vmatprep.subr.mxu0 %v1639_v47  ;;  %2085 = vmatprep.subr.mxu1 %v1641_v48  ;;  %v1717_v47 = vld [vmem:[#allocation6 + $0x398] sm:$0xff]  ;;  %v1714_v48 = vld [vmem:[#allocation6 + $0x380] sm:$0xff] }
 0xa17   :  { %2015 = vmatpush1.msra.mxu0 %v1638_v49  ;;  %2086 = vmatpush1.msra.mxu1 %v1640_v50  ;;  %v1716_v49 = vld [vmem:[#allocation6 + $0x390] sm:$0xff]  ;;  %v1711_v50 = vld [vmem:[#allocation6 + $0x368] sm:$0xff] }
 0xa18   :  { %2016 = vmatprep.subr.mxu0 %v1635_v51  ;;  %2087 = vmatprep.subr.mxu1 %v1637_v52  ;;  %v1713_v51 = vld [vmem:[#allocation6 + $0x378] sm:$0xff]  ;;  %v1710_v52 = vld [vmem:[#allocation6 + $0x360] sm:$0xff] }
 0xa19   :  { %2017 = vmatpush1.msra.mxu0 %v1634_v53  ;;  %2088 = vmatpush1.msra.mxu1 %v1636_v54  ;;  %v1712_v53 = vld [vmem:[#allocation6 + $0x370] sm:$0xff]  ;;  %v1707_v54 = vld [vmem:[#allocation6 + $0x348] sm:$0xff] }
 0xa1a   :  { %2018 = vmatprep.subr.mxu0 %v1631_v55  ;;  %2089 = vmatprep.subr.mxu1 %v1633_v56  ;;  %v1709_v55 = vld [vmem:[#allocation6 + $0x358] sm:$0xff]  ;;  %v1706_v56 = vld [vmem:[#allocation6 + $0x340] sm:$0xff] }
 0xa1b   :  { %2019 = vmatpush1.msra.mxu0 %v1630_v57  ;;  %2090 = vmatpush1.msra.mxu1 %v1632_v58  ;;  %v1708_v57 = vld [vmem:[#allocation6 + $0x350] sm:$0xff]  ;;  %v1703_v58 = vld [vmem:[#allocation6 + $0x328] sm:$0xff] }
 0xa1c   :  { %2020 = vmatprep.subr.mxu0 %v1627_v59  ;;  %2091 = vmatprep.subr.mxu1 %v1629_v60  ;;  %v1705_v59 = vld [vmem:[#allocation6 + $0x338] sm:$0xff]  ;;  %v1702_v60 = vld [vmem:[#allocation6 + $0x320] sm:$0xff] }
 0xa1d   :  { %2021 = vmatpush1.msra.mxu0 %v1626_v15  ;;  %2092 = vmatpush1.msra.mxu1 %v1628_v18  ;;  %v1704_v15 = vld [vmem:[#allocation6 + $0x330] sm:$0xff]  ;;  %v1699_v18 = vld [vmem:[#allocation6 + $0x308] sm:$0xff] }
 0xa1e   :  { %2022 = vmatprep.subr.mxu0 %v1623_v19  ;;  %2093 = vmatprep.subr.mxu1 %v1625_v23  ;;  %v1701_v19 = vld [vmem:[#allocation6 + $0x318] sm:$0xff]  ;;  %v1698_v23 = vld [vmem:[#allocation6 + $0x300] sm:$0xff] }
 0xa1f   :  { %2023 = vmatpush1.msra.mxu0 %v1622_v24  ;;  %2094 = vmatpush1.msra.mxu1 %v1624_v25  ;;  %v1700_v24 = vld [vmem:[#allocation6 + $0x310] sm:$0xff]  ;;  %v1695_v25 = vld [vmem:[#allocation6 + $0x2e8] sm:$0xff] }
 0xa20   :  { %2024 = vmatprep.subr.mxu0 %v1619_v26  ;;  %2095 = vmatprep.subr.mxu1 %v1621_v61  ;;  %v1697_v26 = vld [vmem:[#allocation6 + $0x2f8] sm:$0xff]  ;;  %v1694_v61 = vld [vmem:[#allocation6 + $0x2e0] sm:$0xff] }
 0xa21   :  { %2025 = vmatpush1.msra.mxu0 %v1618_v63  ;;  %2096 = vmatpush1.msra.mxu1 %v1620_v0  ;;  %v1696_v63 = vld [vmem:[#allocation6 + $0x2f0] sm:$0xff]  ;;  %v1691_v0 = vld [vmem:[#allocation6 + $0x2c8] sm:$0xff] }
 0xa22   :  { %2026 = vmatprep.subr.mxu0 %v1615_v1  ;;  %2097 = vmatprep.subr.mxu1 %v1617_v14  ;;  %v1693_v1 = vld [vmem:[#allocation6 + $0x2d8] sm:$0xff]  ;;  %v1690_v14 = vld [vmem:[#allocation6 + $0x2c0] sm:$0xff] }
 0xa23   :  { %2027 = vmatpush1.msra.mxu0 %v1614_v3  ;;  %2098 = vmatpush1.msra.mxu1 %v1616_v27  ;;  %v1692_v3 = vld [vmem:[#allocation6 + $0x2d0] sm:$0xff]  ;;  %v1687_v27 = vld [vmem:[#allocation6 + $0x2a8] sm:$0xff] }
 0xa24   :  { %2028 = vmatprep.subr.mxu0 %v1611_v30  ;;  %2099 = vmatprep.subr.mxu1 %v1613_v7  ;;  %v1689_v30 = vld [vmem:[#allocation6 + $0x2b8] sm:$0xff]  ;;  %v1686_v7 = vld [vmem:[#allocation6 + $0x2a0] sm:$0xff] }
 0xa25   :  { %2029 = vmatpush1.msra.mxu0 %v1610_v10  ;;  %2100 = vmatpush1.msra.mxu1 %v1612_v11  ;;  %v1688_v10 = vld [vmem:[#allocation6 + $0x2b0] sm:$0xff]  ;;  %v1683_v11 = vld [vmem:[#allocation6 + $0x288] sm:$0xff] }
 0xa26   :  { %2030 = vmatprep.subr.mxu0 %v1607_v2  ;;  %2101 = vmatprep.subr.mxu1 %v1609_v12  ;;  %v1685_v2 = vld [vmem:[#allocation6 + $0x298] sm:$0xff]  ;;  %v1682_v12 = vld [vmem:[#allocation6 + $0x280] sm:$0xff] }
 0xa27   :  { %2031 = vmatpush1.msra.mxu0 %v1606_v13  ;;  %2102 = vmatpush1.msra.mxu1 %v1608_v28  ;;  %v1684_v13 = vld [vmem:[#allocation6 + $0x290] sm:$0xff]  ;;  %v1679_v28 = vld [vmem:[#allocation6 + $0x268] sm:$0xff] }
 0xa28   :  { %2032 = vmatprep.subr.mxu0 %v1603_v32  ;;  %2103 = vmatprep.subr.mxu1 %v1605_v31  ;;  %v1681_v32 = vld [vmem:[#allocation6 + $0x278] sm:$0xff]  ;;  %v1678_v31 = vld [vmem:[#allocation6 + $0x260] sm:$0xff] }
 0xa29   :  { %2033 = vmatpush1.msra.mxu0 %v1602_v33  ;;  %2104 = vmatpush1.msra.mxu1 %v1604_v34  ;;  %v1680_v33 = vld [vmem:[#allocation6 + $0x270] sm:$0xff]  ;;  %v1675_v34 = vld [vmem:[#allocation6 + $0x248] sm:$0xff] }
 0xa2a   :  { %2034 = vmatprep.subr.mxu0 %v1727_v35  ;;  %2105 = vmatprep.subr.mxu1 %v1729_v36  ;;  %v1677_v35 = vld [vmem:[#allocation6 + $0x258] sm:$0xff]  ;;  %v1674_v36 = vld [vmem:[#allocation6 + $0x240] sm:$0xff] }
 0xa2b   :  { %2035 = vmatpush2.msra.mxu0 %v1726_v37  ;;  %2106 = vmatpush2.msra.mxu1 %v1728_v62  ;;  %v1676_v37 = vld [vmem:[#allocation6 + $0x250] sm:$0xff]  ;;  %v1671_v62 = vld [vmem:[#allocation6 + $0x228] sm:$0xff] }
 0xa2c   :  { %2036 = vmatprep.subr.mxu0 %v1723_v38  ;;  %2107 = vmatprep.subr.mxu1 %v1725_v39  ;;  %v1673_v38 = vld [vmem:[#allocation6 + $0x238] sm:$0xff]  ;;  %v1670_v39 = vld [vmem:[#allocation6 + $0x220] sm:$0xff] }
 0xa2d   :  { %2037 = vmatpush2.msra.mxu0 %v1722_v40  ;;  %2108 = vmatpush2.msra.mxu1 %v1724_v41  ;;  %v1672_v40 = vld [vmem:[#allocation6 + $0x230] sm:$0xff]  ;;  %v1667_v41 = vld [vmem:[#allocation6 + $0x208] sm:$0xff] }
 0xa2e   :  { %2038 = vmatprep.subr.mxu0 %v1719_v42  ;;  %2109 = vmatprep.subr.mxu1 %v1721_v43  ;;  %v1669_v42 = vld [vmem:[#allocation6 + $0x218] sm:$0xff]  ;;  %v1666_v43 = vld [vmem:[#allocation6 + $0x200] sm:$0xff] }
 0xa2f   :  { %2039 = vmatpush2.msra.mxu0 %v1718_v44  ;;  %2110 = vmatpush2.msra.mxu1 %v1720_v45  ;;  %v1668_v44 = vld [vmem:[#allocation6 + $0x210] sm:$0xff]  ;;  %v1600_v45 = vmax.f32 %v4498_v29, 0.0  ;;  %v4651_v29 = vld [vmem:[%s5189_s17 + $0x178] sm:$0xff] }
 0xa30   :  { %2040 = vmatprep.subr.mxu0 %v1715_v46  ;;  %2111 = vmatprep.subr.mxu1 %v1717_v47  ;;  %v4634_v46 = vld [vmem:[%s5189_s17 + $0xf8] sm:$0xff] }
 0xa31   :  { %2041 = vmatpush2.msra.mxu0 %v1714_v48  ;;  %2112 = vmatpush2.msra.mxu1 %v1716_v49  ;;  %v4639_v47 = vld [vmem:[%s5189_s17 + $0x1f8] sm:$0xff]  ;;  %v4656_v49 = vld [vmem:[%s5189_s17 + $0xf0] sm:$0xff] }
 0xa32   :  { %2042 = vmatprep.subr.mxu0 %v1711_v50  ;;  %2113 = vmatprep.subr.mxu1 %v1713_v51  ;;  %v4644_v48 = vld [vmem:[%s5189_s17 + $0x78] sm:$0xff]  ;;  %v4661_v50 = vld [vmem:[%s5189_s17 + $0x1f0] sm:$0xff] }
 0xa33   :  { %2043 = vmatpush2.msra.mxu0 %v1710_v52  ;;  %2114 = vmatpush2.msra.mxu1 %v1712_v53  ;;  %v4668_v51 = vld [vmem:[%s5189_s17 + $0x70] sm:$0xff]  ;;  %v4678_v53 = vld [vmem:[%s5189_s17 + $0xe8] sm:$0xff] }
 0xa34   :  { %2044 = vmatprep.subr.mxu0 %v1707_v54  ;;  %2115 = vmatprep.subr.mxu1 %v1709_v55  ;;  %v4673_v52 = vld [vmem:[%s5189_s17 + $0x170] sm:$0xff]  ;;  %v4685_v54 = vld [vmem:[%s5189_s17 + $0x1e8] sm:$0xff] }
 0xa35   :  { %2045 = vmatpush2.msra.mxu0 %v1706_v56  ;;  %2116 = vmatpush2.msra.mxu1 %v1708_v57  ;;  %v4690_v55 = vld [vmem:[%s5189_s17 + $0x68] sm:$0xff]  ;;  %v4702_v57 = vld [vmem:[%s5189_s17 + $0xe0] sm:$0xff] }
 0xa36   :  { %2046 = vmatprep.subr.mxu0 %v1703_v58  ;;  %2117 = vmatprep.subr.mxu1 %v1705_v59  ;;  %v4695_v56 = vld [vmem:[%s5189_s17 + $0x168] sm:$0xff]  ;;  %v4707_v58 = vld [vmem:[%s5189_s17 + $0x1e0] sm:$0xff] }
 0xa37   :  { %2047 = vmatpush2.msra.mxu0 %v1702_v60  ;;  %2118 = vmatpush2.msra.mxu1 %v1704_v15  ;;  %v4714_v59 = vld [vmem:[%s5189_s17 + $0x60] sm:$0xff]  ;;  %v4726_v15 = vld [vmem:[%s5189_s17 + $0xd8] sm:$0xff] }
 0xa38   :  { %2048 = vmatprep.subr.mxu0 %v1699_v18  ;;  %2119 = vmatprep.subr.mxu1 %v1701_v19  ;;  %v4719_v60 = vld [vmem:[%s5189_s17 + $0x160] sm:$0xff]  ;;  %v4731_v18 = vld [vmem:[%s5189_s17 + $0x1d8] sm:$0xff] }
 0xa39   :  { %2049 = vmatpush2.msra.mxu0 %v1698_v23  ;;  %2120 = vmatpush2.msra.mxu1 %v1700_v24  ;;  %v4738_v19 = vld [vmem:[%s5189_s17 + $0x58] sm:$0xff]  ;;  %v4750_v24 = vld [vmem:[%s5189_s17 + $0xd0] sm:$0xff] }
 0xa3a   :  { %2050 = vmatprep.subr.mxu0 %v1695_v25  ;;  %2121 = vmatprep.subr.mxu1 %v1697_v26  ;;  %v4743_v23 = vld [vmem:[%s5189_s17 + $0x158] sm:$0xff]  ;;  %v4755_v25 = vld [vmem:[%s5189_s17 + $0x1d0] sm:$0xff] }
 0xa3b   :  { %2051 = vmatpush2.msra.mxu0 %v1694_v61  ;;  %2122 = vmatpush2.msra.mxu1 %v1696_v63  ;;  %v4762_v26 = vld [vmem:[%s5189_s17 + $0x50] sm:$0xff]  ;;  %v4774_v63 = vld [vmem:[%s5189_s17 + $0xc8] sm:$0xff] }
 0xa3c   :  { %2052 = vmatprep.subr.mxu0 %v1691_v0  ;;  %2123 = vmatprep.subr.mxu1 %v1693_v1  ;;  %v4767_v61 = vld [vmem:[%s5189_s17 + $0x150] sm:$0xff]  ;;  %v4779_v0 = vld [vmem:[%s5189_s17 + $0x1c8] sm:$0xff] }
 0xa3d   :  { %2053 = vmatpush2.msra.mxu0 %v1690_v14  ;;  %2124 = vmatpush2.msra.mxu1 %v1692_v3  ;;  %v4786_v1 = vld [vmem:[%s5189_s17 + $0x48] sm:$0xff]  ;;  %v4798_v3 = vld [vmem:[%s5189_s17 + $0xc0] sm:$0xff] }
 0xa3e   :  { %2054 = vmatprep.subr.mxu0 %v1687_v27  ;;  %2125 = vmatprep.subr.mxu1 %v1689_v30  ;;  %v4791_v14 = vld [vmem:[%s5189_s17 + $0x148] sm:$0xff]  ;;  %v4803_v27 = vld [vmem:[%s5189_s17 + $0x1c0] sm:$0xff] }
 0xa3f   :  { %2055 = vmatpush2.msra.mxu0 %v1686_v7  ;;  %2126 = vmatpush2.msra.mxu1 %v1688_v10  ;;  %v4810_v30 = vld [vmem:[%s5189_s17 + $0x40] sm:$0xff]  ;;  %v4822_v10 = vld [vmem:[%s5189_s17 + $0xb8] sm:$0xff] }
 0xa40   :  { %2056 = vmatprep.subr.mxu0 %v1683_v11  ;;  %2127 = vmatprep.subr.mxu1 %v1685_v2  ;;  %v4815_v7 = vld [vmem:[%s5189_s17 + $0x140] sm:$0xff]  ;;  %v4827_v11 = vld [vmem:[%s5189_s17 + $0x1b8] sm:$0xff] }
 0xa41   :  { %2057 = vmatpush2.msra.mxu0 %v1682_v12  ;;  %2128 = vmatpush2.msra.mxu1 %v1684_v13  ;;  %v4834_v2 = vld [vmem:[%s5189_s17 + $0x38] sm:$0xff]  ;;  %v4846_v13 = vld [vmem:[%s5189_s17 + $0xb0] sm:$0xff] }
 0xa42   :  { %2058 = vmatprep.subr.mxu0 %v1679_v28  ;;  %2129 = vmatprep.subr.mxu1 %v1681_v32  ;;  %v4839_v12 = vld [vmem:[%s5189_s17 + $0x138] sm:$0xff]  ;;  %v4851_v28 = vld [vmem:[%s5189_s17 + $0x1b0] sm:$0xff] }
 0xa43   :  { %2059 = vmatpush2.msra.mxu0 %v1678_v31  ;;  %2130 = vmatpush2.msra.mxu1 %v1680_v33  ;;  %v4858_v32 = vld [vmem:[%s5189_s17 + $0x30] sm:$0xff]  ;;  %v4870_v33 = vld [vmem:[%s5189_s17 + $0xa8] sm:$0xff] }
 0xa44   :  { %2060 = vmatprep.subr.mxu0 %v1675_v34  ;;  %2131 = vmatprep.subr.mxu1 %v1677_v35  ;;  %v4863_v31 = vld [vmem:[%s5189_s17 + $0x130] sm:$0xff]  ;;  %5246 = vst [vmem:[#allocation22_spill] sm:$0xff] %v4870_v33  ;;  %v4875_v34 = vld [vmem:[%s5189_s17 + $0x1a8] sm:$0xff] }
 0xa45   :  { %2061 = vmatpush2.msra.mxu0 %v1674_v36  ;;  %2132 = vmatpush2.msra.mxu1 %v1676_v37  ;;  %5245 = vst [vmem:[#allocation21_spill] sm:$0xff] %v4863_v31  ;;  %5247 = vst [vmem:[#allocation23_spill] sm:$0xff] %v4875_v34  ;;  %v4882_v35 = vld [vmem:[%s5189_s17 + $0x28] sm:$0xff]  ;;  %v4894_v37 = vld [vmem:[%s5189_s17 + $0xa0] sm:$0xff] }
 0xa46   :  { %2062 = vmatprep.subr.mxu0 %v1671_v62  ;;  %2133 = vmatprep.subr.mxu1 %v1673_v38  ;;  %5248 = vst [vmem:[#allocation24_spill] sm:$0xff] %v4882_v35  ;;  %v4887_v36 = vld [vmem:[%s5189_s17 + $0x128] sm:$0xff]  ;;  %5250 = vst [vmem:[#allocation26_spill] sm:$0xff] %v4894_v37  ;;  %v4899_v62 = vld [vmem:[%s5189_s17 + $0x1a0] sm:$0xff] }
 0xa47   :  { %2063 = vmatpush2.msra.mxu0 %v1670_v39  ;;  %2134 = vmatpush2.msra.mxu1 %v1672_v40  ;;  %5249 = vst [vmem:[#allocation25_spill] sm:$0xff] %v4887_v36  ;;  %5251 = vst [vmem:[#allocation27_spill] sm:$0xff] %v4899_v62  ;;  %v4906_v38 = vld [vmem:[%s5189_s17 + $0x20] sm:$0xff]  ;;  %v4922_v40 = vld [vmem:[%s5189_s17 + $0x98] sm:$0xff] }
 0xa48   :  { %2064 = vmatprep.subr.mxu0 %v1667_v41  ;;  %2135 = vmatprep.subr.mxu1 %v1669_v42  ;;  %5252 = vst [vmem:[#allocation28_spill] sm:$0xff] %v4906_v38  ;;  %v4911_v39 = vld [vmem:[%s5189_s17 + $0x120] sm:$0xff]  ;;  %5254 = vst [vmem:[#allocation30_spill] sm:$0xff] %v4922_v40  ;;  %v4927_v41 = vld [vmem:[%s5189_s17 + $0x198] sm:$0xff] }
 0xa49   :  { %2065 = vmatpush2.msra.mxu0 %v1666_v43  ;;  %2136 = vmatpush2.msra.mxu1 %v1668_v44  ;;  %5253 = vst [vmem:[#allocation29_spill] sm:$0xff] %v4911_v39  ;;  %5255 = vst [vmem:[#allocation31_spill] sm:$0xff] %v4927_v41  ;;  %v4934_v42 = vld [vmem:[%s5189_s17 + $0x18] sm:$0xff]  ;;  %v4946_v44 = vld [vmem:[%s5189_s17 + $0x90] sm:$0xff] }
 0xa4a   :  { %2067 = vmatmul.mubr.f32.vlgmr.msra.gmra.mxu0 %v1600_v45  ;;  %2138 = vmatmul.mubr.f32.vlgmr.msra.gmra.mxu1 %v1600_v45  ;;  %5256 = vst [vmem:[#allocation32_spill] sm:$0xff] %v4934_v42  ;;  %v4939_v43 = vld [vmem:[%s5189_s17 + $0x118] sm:$0xff]  ;;  %5258 = vst [vmem:[#allocation34_spill] sm:$0xff] %v4946_v44  ;;  %v4951_v45 = vld [vmem:[%s5189_s17 + $0x190] sm:$0xff] }
 0xa4b   :  { %3592 = vmatprep.subr.mxu0 %v4634_v46  ;;  %3627 = vmatprep.subr.mxu1 %v4639_v47  ;;  %5257 = vst [vmem:[#allocation33_spill] sm:$0xff] %v4939_v43  ;;  %5259 = vst [vmem:[#allocation35_spill] sm:$0xff] %v4951_v45 }
 0xa4c   :  { %3593 = vmatpush3.msra.mxu0 %v4644_v48  ;;  %3628 = vmatpush3.msra.mxu1 %v4651_v29 }
 0xa4d   :  { %3594 = vmatprep.subr.mxu0 %v4656_v49  ;;  %3629 = vmatprep.subr.mxu1 %v4661_v50 }
 0xa4e   :  { %3595 = vmatpush3.msra.mxu0 %v4668_v51  ;;  %3630 = vmatpush3.msra.mxu1 %v4673_v52 }
 0xa4f   :  { %3596 = vmatprep.subr.mxu0 %v4678_v53  ;;  %3631 = vmatprep.subr.mxu1 %v4685_v54 }
 0xa50   :  { %3597 = vmatpush3.msra.mxu0 %v4690_v55  ;;  %3632 = vmatpush3.msra.mxu1 %v4695_v56 }
 0xa51   :  { %3598 = vmatprep.subr.mxu0 %v4702_v57  ;;  %3633 = vmatprep.subr.mxu1 %v4707_v58 }
 0xa52   :  { %3599 = vmatpush3.msra.mxu0 %v4714_v59  ;;  %3634 = vmatpush3.msra.mxu1 %v4719_v60 }
 0xa53   :  { %3600 = vmatprep.subr.mxu0 %v4726_v15  ;;  %3635 = vmatprep.subr.mxu1 %v4731_v18 }
 0xa54   :  { %3601 = vmatpush3.msra.mxu0 %v4738_v19  ;;  %3636 = vmatpush3.msra.mxu1 %v4743_v23 }
 0xa55   :  { %3602 = vmatprep.subr.mxu0 %v4750_v24  ;;  %3637 = vmatprep.subr.mxu1 %v4755_v25 }
 0xa56   :  { %3603 = vmatpush3.msra.mxu0 %v4762_v26  ;;  %3638 = vmatpush3.msra.mxu1 %v4767_v61 }
 0xa57   :  { %3604 = vmatprep.subr.mxu0 %v4774_v63  ;;  %3639 = vmatprep.subr.mxu1 %v4779_v0 }
 0xa58   :  { %3605 = vmatpush3.msra.mxu0 %v4786_v1  ;;  %3640 = vmatpush3.msra.mxu1 %v4791_v14 }
 0xa59   :  { %3606 = vmatprep.subr.mxu0 %v4798_v3  ;;  %3641 = vmatprep.subr.mxu1 %v4803_v27 }
 0xa5a   :  { %3607 = vmatpush3.msra.mxu0 %v4810_v30  ;;  %3642 = vmatpush3.msra.mxu1 %v4815_v7 }
 0xa5b   :  { %3608 = vmatprep.subr.mxu0 %v4822_v10  ;;  %3643 = vmatprep.subr.mxu1 %v4827_v11 }
 0xa5c   :  { %3609 = vmatpush3.msra.mxu0 %v4834_v2  ;;  %3644 = vmatpush3.msra.mxu1 %v4839_v12 }
 0xa5d   :  { %3610 = vmatprep.subr.mxu0 %v4846_v13  ;;  %3645 = vmatprep.subr.mxu1 %v4851_v28 }
 0xa5e   :  { %3611 = vmatpush3.msra.mxu0 %v4858_v32  ;;  %3646 = vmatpush3.msra.mxu1 %v4863_v31 }
 0xa5f   :  { %3612 = vmatprep.subr.mxu0 %v4870_v33  ;;  %3647 = vmatprep.subr.mxu1 %v4875_v34 }
 0xa60   :  { %3613 = vmatpush3.msra.mxu0 %v4882_v35  ;;  %3648 = vmatpush3.msra.mxu1 %v4887_v36 }
 0xa61   :  { %3614 = vmatprep.subr.mxu0 %v4894_v37  ;;  %3649 = vmatprep.subr.mxu1 %v4899_v62 }
 0xa62   :  { %3615 = vmatpush3.msra.mxu0 %v4906_v38  ;;  %3650 = vmatpush3.msra.mxu1 %v4911_v39 }
 0xa63   :  { %3616 = vmatprep.subr.mxu0 %v4922_v40  ;;  %3651 = vmatprep.subr.mxu1 %v4927_v41 }
 0xa64   :  { %3617 = vmatpush3.msra.mxu0 %v4934_v42  ;;  %3652 = vmatpush3.msra.mxu1 %v4939_v43  ;;  %v5270_v42 = vsub.s32 3, %v4028_v4 }
 0xa65   :  { %3618 = vmatprep.subr.mxu0 %v4946_v44  ;;  %3653 = vmatprep.subr.mxu1 %v4951_v45  ;;  %v2144_v44 = vld [vmem:[%s5183_s11] sm:$0xf] }
 0xa66   :  { %3619 = vmatpush3.msra.mxu0 %v4958_v22  ;;  %3654 = vmatpush3.msra.mxu1 %v4963_v6  ;;  %v2161_v41 = vrot.slane %v2144_v44, %v5270_v42  ;;  %v2988_v42 = vld [vmem:[#allocation10 + $0xf0] sm:$0xff] }
 0xa67   :  { %3620 = vmatprep.subr.mxu0 %v4970_v9  ;;  %3655 = vmatprep.subr.mxu1 %v4975_v17  ;;  %v4999_v17 = vld [vmem:[%s5189_s17 + $0x180] sm:$0xff] }
 0xa68   :  { %3621 = vmatpush3.msra.mxu0 %v4982_v16  ;;  %3656 = vmatpush3.msra.mxu1 %v4987_v21  ;;  %5267 = vst [vmem:[#allocation43_spill] sm:$0xff] %v4999_v17  ;;  %v5004_v9 = vld [vmem:[%s5189_s17] sm:$0xff] }
 0xa69   :  { %5268 = vst [vmem:[#allocation44_spill] sm:$0xff] %v5004_v9  ;;  %3622 = vmatprep.subr.mxu0 %v4994_v20  ;;  %3657 = vmatprep.subr.mxu1 %v4999_v17  ;;  %v5011_v21 = vld [vmem:[%s5189_s17 + $0x100] sm:$0xff]  ;;  %v2153_v17 = vrot.slane %v2144_v44, %v4038_v8 }
 0xa6a   :  { %5269 = vst [vmem:[#allocation45_spill] sm:$0xff] %v5011_v21  ;;  %3623 = vmatpush3.msra.mxu0 %v5004_v9  ;;  %3658 = vmatpush3.msra.mxu1 %v5011_v21  ;;  %v2149_v9 = vrot.slane %v2144_v44, %v4031_v5  ;;  %v5271_v21 = vsub.s32 2, %v4028_v4  ;;  %v5272_v4 = vmov 0.0  }
 0xa6c   :  { %v2157_v38 = vrot.slane %v2144_v44, %v5271_v21 }
 0xac9   :  { %v1926_v16 = vpop.f32.mrf.mxu0  ;;  %v1997_v6 = vpop.f32.mrf.mxu1 }
 0xacb   :  { %v1928_v22 = vpop.f32.mrf.mxu0  ;;  %v1999_v45 = vpop.f32.mrf.mxu1 }
 0xb0a   :  { %v2068_v20 = vpop.f32.mrf.mxu0  ;;  %v2139_v43 = vpop.f32.mrf.mxu1 }
 0xb0b   :  { %v2069_v40 = vadd.f32 %v2068_v20, %v1926_v16  ;;  %v2140_v39 = vadd.f32 %v2139_v43, %v1997_v6  ;;  %v5041_v6 = vld [vmem:[%s5190_s18 + $0x8] sm:$0xff]  ;;  %v5052_v16 = vld [vmem:[%s5190_s18] sm:$0xff]  ;;  %v3052_v43 = vld [vmem:[#allocation10 + $0x2f0] sm:$0xff] }
 0xb0c   :  { %v2070_v62 = vpop.f32.mrf.mxu0  ;;  %v2141_v37 = vpop.f32.mrf.mxu1  ;;  %2412 = vmatprep.subr.mxu0 %v5041_v6 }
 0xb0d   :  { %v2071_v36 = vadd.f32 %v2070_v62, %v1928_v22  ;;  %v2142_v35 = vadd.f32 %v2141_v37, %v1999_v45  ;;  %v5028_v31 = vadd.f32 %v2149_v9, %v2069_v40  ;;  %v5030_v8 = vadd.f32 %v2157_v38, %v2140_v39  ;;  %v5046_v9 = vld [vmem:[%s5190_s18 + $0x18] sm:$0xff]  ;;  %v2987_v45 = vld [vmem:[#allocation10 + $0xe8] sm:$0xff] }
 0xb0e   :  { %2483 = vmatprep.subr.mxu1 %v5046_v9 }
 0xb0f   :  { %v5024_v34 = vadd.f32 %v2153_v17, %v2071_v36  ;;  %v5026_v33 = vadd.f32 %v2161_v41, %v2142_v35  ;;  %v5058_v17 = vld [vmem:[%s5190_s18 + $0x10] sm:$0xff] }
 0xb11   :  { %2298 = vmatprep.mubr.f32.mxu0 %v5024_v34  ;;  %2368 = vmatprep.mubr.f32.mxu1 %v5026_v33 }
 0xb12   :  { %2299 = vmatmul.mubr.f32.vlgmr.msra.gmra.mxu0 %v5028_v31  ;;  %2369 = vmatmul.mubr.f32.vlgmr.msra.gmra.mxu1 %v5030_v8 }
 0xb13   :  { %2446 = vmatprep.mubr.f32.mxu0 %v5272_v4  ;;  %2517 = vmatprep.mubr.f32.mxu1 %v5272_v4 }
 0xb14   :  { %2413 = vmatpush1.msra.mxu0 %v5052_v16  ;;  %2484 = vmatpush1.msra.mxu1 %v5058_v17 }
 0xb15   :  { %3662 = vmatprep.subr.mxu0 %v4634_v46  ;;  %3697 = vmatprep.subr.mxu1 %v4639_v47  ;;  %v5273_v46 = vld [vmem:[#allocation21_spill] sm:$0xff]  ;;  %v5274_v47 = vld [vmem:[#allocation22_spill] sm:$0xff] }
 0xbd2   :  { %v3624_v20 = vpop.f32.mrf.mxu0  ;;  %v3659_v21 = vpop.f32.mrf.mxu1 }
 0xbd4   :  { %v3625_v22 = vpop.f32.mrf.mxu0  ;;  %v3660_v35 = vpop.f32.mrf.mxu1 }
 0xbd5   :  { %v3626_v36 = vadd.f32 %v3625_v22, %v3624_v20  ;;  %v3661_v37 = vadd.f32 %v3660_v35, %v3659_v21  ;;  %v2984_v20 = vld [vmem:[#allocation10 + $0xd0] sm:$0xff]  ;;  %v2983_v22 = vld [vmem:[#allocation10 + $0xc8] sm:$0xff] }
 0xbd6   :  { %v3048_v21 = vld [vmem:[#allocation10 + $0x2d0] sm:$0xff]  ;;  %v3047_v35 = vld [vmem:[#allocation10 + $0x2c8] sm:$0xff] }
 0xbd7   :  { %v2371_v62 = vadd.f32 %v3661_v37, %v3626_v36  ;;  %v2982_v36 = vld [vmem:[#allocation10 + $0xc0] sm:$0xff] }
 0xbd8   :  { %v3046_v37 = vld [vmem:[#allocation10 + $0x2c0] sm:$0xff] }
 0xbd9   :  { %3412 = vmatmul.mubr.msk.f32.vlgmr.msra.gmra.mxu0 %vm2378_vm7, %v2371_v62  ;;  %3413 = vmatmul.mubr.msk.f32.vlgmr.msra.gmra.mxu1 %vm2378_vm7, %v2371_v62  ;;  %v2981_v62 = vld [vmem:[#allocation10 + $0xb8] sm:$0xff] }
 0xbda   :  { %3663 = vmatpush3.msra.mxu0 %v4644_v48  ;;  %3698 = vmatpush3.msra.mxu1 %v4651_v29  ;;  %v5275_v48 = vld [vmem:[#allocation23_spill] sm:$0xff]  ;;  %v5276_v29 = vld [vmem:[#allocation24_spill] sm:$0xff] }
 0xbdb   :  { %3664 = vmatprep.subr.mxu0 %v4656_v49  ;;  %3699 = vmatprep.subr.mxu1 %v4661_v50  ;;  %v5277_v49 = vld [vmem:[#allocation25_spill] sm:$0xff]  ;;  %v5278_v50 = vld [vmem:[#allocation26_spill] sm:$0xff] }
 0xbdc   :  { %3665 = vmatpush3.msra.mxu0 %v4668_v51  ;;  %3700 = vmatpush3.msra.mxu1 %v4673_v52  ;;  %v5279_v51 = vld [vmem:[#allocation27_spill] sm:$0xff]  ;;  %v5280_v52 = vld [vmem:[#allocation28_spill] sm:$0xff] }
 0xbdd   :  { %3666 = vmatprep.subr.mxu0 %v4678_v53  ;;  %3701 = vmatprep.subr.mxu1 %v4685_v54  ;;  %v5281_v53 = vld [vmem:[#allocation29_spill] sm:$0xff]  ;;  %v5282_v54 = vld [vmem:[#allocation30_spill] sm:$0xff] }
 0xbde   :  { %3667 = vmatpush3.msra.mxu0 %v4690_v55  ;;  %3702 = vmatpush3.msra.mxu1 %v4695_v56  ;;  %v5283_v55 = vld [vmem:[#allocation31_spill] sm:$0xff]  ;;  %v5284_v56 = vld [vmem:[#allocation32_spill] sm:$0xff] }
 0xbdf   :  { %3668 = vmatprep.subr.mxu0 %v4702_v57  ;;  %3703 = vmatprep.subr.mxu1 %v4707_v58  ;;  %v5285_v57 = vld [vmem:[#allocation33_spill] sm:$0xff]  ;;  %v5286_v58 = vld [vmem:[#allocation34_spill] sm:$0xff] }
 0xbe0   :  { %3669 = vmatpush3.msra.mxu0 %v4714_v59  ;;  %3704 = vmatpush3.msra.mxu1 %v4719_v60  ;;  %v5287_v59 = vld [vmem:[#allocation35_spill] sm:$0xff]  ;;  %v5288_v60 = vld [vmem:[#allocation36_spill] sm:$0xff] }
 0xbe1   :  { %3670 = vmatprep.subr.mxu0 %v4726_v15  ;;  %3705 = vmatprep.subr.mxu1 %v4731_v18  ;;  %v5289_v15 = vld [vmem:[#allocation37_spill] sm:$0xff]  ;;  %v5290_v18 = vld [vmem:[#allocation38_spill] sm:$0xff] }
 0xbe2   :  { %3671 = vmatpush3.msra.mxu0 %v4738_v19  ;;  %3706 = vmatpush3.msra.mxu1 %v4743_v23  ;;  %v5291_v19 = vld [vmem:[#allocation39_spill] sm:$0xff]  ;;  %v5292_v23 = vld [vmem:[#allocation40_spill] sm:$0xff] }
 0xbe3   :  { %3672 = vmatprep.subr.mxu0 %v4750_v24  ;;  %3707 = vmatprep.subr.mxu1 %v4755_v25  ;;  %v5293_v24 = vld [vmem:[#allocation41_spill] sm:$0xff]  ;;  %v5294_v25 = vld [vmem:[#allocation42_spill] sm:$0xff] }
 0xbe4   :  { %3673 = vmatpush3.msra.mxu0 %v4762_v26  ;;  %3708 = vmatpush3.msra.mxu1 %v4767_v61  ;;  %v5295_v26 = vld [vmem:[#allocation43_spill] sm:$0xff]  ;;  %v5296_v61 = vld [vmem:[#allocation44_spill] sm:$0xff] }
 0xbe5   :  { %3674 = vmatprep.subr.mxu0 %v4774_v63  ;;  %3709 = vmatprep.subr.mxu1 %v4779_v0  ;;  %v5297_v63 = vld [vmem:[#allocation45_spill] sm:$0xff] }
 0xbe6   :  { %3675 = vmatpush3.msra.mxu0 %v4786_v1  ;;  %3710 = vmatpush3.msra.mxu1 %v4791_v14 }
 0xbe7   :  { %3676 = vmatprep.subr.mxu0 %v4798_v3  ;;  %3711 = vmatprep.subr.mxu1 %v4803_v27 }
 0xbe8   :  { %3677 = vmatpush3.msra.mxu0 %v4810_v30  ;;  %3712 = vmatpush3.msra.mxu1 %v4815_v7 }
 0xbe9   :  { %3678 = vmatprep.subr.mxu0 %v4822_v10  ;;  %3713 = vmatprep.subr.mxu1 %v4827_v11 }
 0xbea   :  { %3679 = vmatpush3.msra.mxu0 %v4834_v2  ;;  %3714 = vmatpush3.msra.mxu1 %v4839_v12 }
 0xbeb   :  { %3680 = vmatprep.subr.mxu0 %v4846_v13  ;;  %3715 = vmatprep.subr.mxu1 %v4851_v28  ;;  %v2989_v13 = vld [vmem:[#allocation10 + $0xf8] sm:$0xff] }
 0xbec   :  { %3681 = vmatpush3.msra.mxu0 %v4858_v32  ;;  %3716 = vmatpush3.msra.mxu1 %v5273_v46  ;;  %v3053_v28 = vld [vmem:[#allocation10 + $0x2f8] sm:$0xff] }
 0xbed   :  { %3682 = vmatprep.subr.mxu0 %v5274_v47  ;;  %3717 = vmatprep.subr.mxu1 %v5275_v48  ;;  %v3045_v46 = vld [vmem:[#allocation10 + $0x2b8] sm:$0xff]  ;;  %v2980_v47 = vld [vmem:[#allocation10 + $0xb0] sm:$0xff] }
 0xbee   :  { %3683 = vmatpush3.msra.mxu0 %v5276_v29  ;;  %3718 = vmatpush3.msra.mxu1 %v5277_v49  ;;  %v3044_v48 = vld [vmem:[#allocation10 + $0x2b0] sm:$0xff]  ;;  %v2979_v29 = vld [vmem:[#allocation10 + $0xa8] sm:$0xff] }
 0xbef   :  { %3684 = vmatprep.subr.mxu0 %v5278_v50  ;;  %3719 = vmatprep.subr.mxu1 %v5279_v51  ;;  %v3043_v49 = vld [vmem:[#allocation10 + $0x2a8] sm:$0xff]  ;;  %v2978_v50 = vld [vmem:[#allocation10 + $0xa0] sm:$0xff] }
 0xbf0   :  { %3685 = vmatpush3.msra.mxu0 %v5280_v52  ;;  %3720 = vmatpush3.msra.mxu1 %v5281_v53  ;;  %v3042_v51 = vld [vmem:[#allocation10 + $0x2a0] sm:$0xff]  ;;  %v2977_v52 = vld [vmem:[#allocation10 + $0x98] sm:$0xff] }
 0xbf1   :  { %3686 = vmatprep.subr.mxu0 %v5282_v54  ;;  %3721 = vmatprep.subr.mxu1 %v5283_v55  ;;  %v3041_v53 = vld [vmem:[#allocation10 + $0x298] sm:$0xff]  ;;  %v2976_v54 = vld [vmem:[#allocation10 + $0x90] sm:$0xff] }
 0xbf2   :  { %3687 = vmatpush3.msra.mxu0 %v5284_v56  ;;  %3722 = vmatpush3.msra.mxu1 %v5285_v57  ;;  %v3040_v55 = vld [vmem:[#allocation10 + $0x290] sm:$0xff]  ;;  %v2975_v56 = vld [vmem:[#allocation10 + $0x88] sm:$0xff] }
 0xbf3   :  { %3688 = vmatprep.subr.mxu0 %v5286_v58  ;;  %3723 = vmatprep.subr.mxu1 %v5287_v59  ;;  %v3039_v57 = vld [vmem:[#allocation10 + $0x288] sm:$0xff]  ;;  %v2974_v58 = vld [vmem:[#allocation10 + $0x80] sm:$0xff] }
 0xbf4   :  { %3689 = vmatpush3.msra.mxu0 %v5288_v60  ;;  %3724 = vmatpush3.msra.mxu1 %v5289_v15  ;;  %v3038_v59 = vld [vmem:[#allocation10 + $0x280] sm:$0xff]  ;;  %v2973_v60 = vld [vmem:[#allocation10 + $0x78] sm:$0xff] }
 0xbf5   :  { %3690 = vmatprep.subr.mxu0 %v5290_v18  ;;  %3725 = vmatprep.subr.mxu1 %v5291_v19  ;;  %v3037_v15 = vld [vmem:[#allocation10 + $0x278] sm:$0xff]  ;;  %v2972_v18 = vld [vmem:[#allocation10 + $0x70] sm:$0xff] }
 0xbf6   :  { %3691 = vmatpush3.msra.mxu0 %v5292_v23  ;;  %3726 = vmatpush3.msra.mxu1 %v5293_v24  ;;  %v3036_v19 = vld [vmem:[#allocation10 + $0x270] sm:$0xff]  ;;  %v2971_v23 = vld [vmem:[#allocation10 + $0x68] sm:$0xff] }
 0xbf7   :  { %3692 = vmatprep.subr.mxu0 %v5294_v25  ;;  %3727 = vmatprep.subr.mxu1 %v5295_v26  ;;  %v3035_v24 = vld [vmem:[#allocation10 + $0x268] sm:$0xff]  ;;  %v2970_v25 = vld [vmem:[#allocation10 + $0x60] sm:$0xff] }
 0xbf8   :  { %3693 = vmatpush3.msra.mxu0 %v5296_v61  ;;  %3728 = vmatpush3.msra.mxu1 %v5297_v63  ;;  %v3034_v26 = vld [vmem:[#allocation10 + $0x260] sm:$0xff]  ;;  %v2969_v61 = vld [vmem:[#allocation10 + $0x58] sm:$0xff] }
 0xbf9   :  { %2706 = vmatprep.subr.mxu0 %v5041_v6  ;;  %2777 = vmatprep.subr.mxu1 %v5046_v9  ;;  %v3051_v6 = vld [vmem:[#allocation10 + $0x2e8] sm:$0xff]  ;;  %v3050_v9 = vld [vmem:[#allocation10 + $0x2e0] sm:$0xff]  ;;  %v3033_v63 = vld [vmem:[#allocation10 + $0x258] sm:$0xff] }
 0xc99   :  { %v2448_v0 = vpop.f32.mrf.mxu0  ;;  %v2519_v1 = vpop.f32.mrf.mxu1 }
 0xc9a   :  { %v5131_v14 = vsub.f32 %v5028_v31, %v2448_v0  ;;  %v5134_v3 = vsub.f32 %v5030_v8, %v2519_v1  ;;  %v2968_v0 = vld [vmem:[#allocation10 + $0x50] sm:$0xff] }
 0xc9b   :  { %v2450_v27 = vpop.f32.mrf.mxu0  ;;  %v2521_v30 = vpop.f32.mrf.mxu1  ;;  %v3032_v1 = vld [vmem:[#allocation10 + $0x250] sm:$0xff] }
 0xc9c   :  { %v5137_v7 = vsub.f32 %v5024_v34, %v2450_v27  ;;  %v5140_v10 = vsub.f32 %v5026_v33, %v2521_v30  ;;  %v2528_v12 = vmul.f32 %v5131_v14, %v5131_v14  ;;  %v2530_v8 = vmul.f32 %v5134_v3, %v5134_v3  ;;  %v2967_v27 = vld [vmem:[#allocation10 + $0x48] sm:$0xff] }
 0xc9d   :  { %v3031_v30 = vld [vmem:[#allocation10 + $0x248] sm:$0xff] }
 0xc9e   :  { %v2529_v11 = vmul.f32 %v5137_v7, %v5137_v7  ;;  %v2531_v2 = vmul.f32 %v5140_v10, %v5140_v10 }
 0xca0   :  { %2596 = vmatprep.mubr.f32.mxu0 %v2529_v11  ;;  %2666 = vmatprep.mubr.f32.mxu1 %v2531_v2  ;;  %v2966_v11 = vld [vmem:[#allocation10 + $0x40] sm:$0xff] }
 0xca1   :  { %2597 = vmatmul.mubr.f32.vlgmr.msra.gmra.mxu0 %v2528_v12  ;;  %2667 = vmatmul.mubr.f32.vlgmr.msra.gmra.mxu1 %v2530_v8  ;;  %v3030_v2 = vld [vmem:[#allocation10 + $0x240] sm:$0xff]  ;;  %v2965_v12 = vld [vmem:[#allocation10 + $0x38] sm:$0xff] }
 0xca2   :  { %2707 = vmatpush1.msra.mxu0 %v5052_v16  ;;  %2778 = vmatpush1.msra.mxu1 %v5058_v17  ;;  %v2985_v16 = vld [vmem:[#allocation10 + $0xd8] sm:$0xff] }
 0xca3   :  { %2740 = vmatprep.mubr.f32.mxu0 %v5272_v4  ;;  %2811 = vmatprep.mubr.f32.mxu1 %v5272_v4  ;;  %v2986_v4 = vld [vmem:[#allocation10 + $0xe0] sm:$0xff]  ;;  %v3049_v17 = vld [vmem:[#allocation10 + $0x2d8] sm:$0xff] }
 0xca4   :  { %3086 = vmatprep.subr.mxu0 %v2989_v13  ;;  %3157 = vmatprep.subr.mxu1 %v3053_v28  ;;  %v3029_v8 = vld [vmem:[#allocation10 + $0x238] sm:$0xff]  ;;  %v2964_v13 = vld [vmem:[#allocation10 + $0x30] sm:$0xff] }
 0xca5   :  { %v3028_v28 = vld [vmem:[#allocation10 + $0x230] sm:$0xff] }
 0xd61   :  { %v3694_v32 = vpop.f32.mrf.mxu0  ;;  %v3729_v31 = vpop.f32.mrf.mxu1 }
 0xd63   :  { %v3695_v33 = vpop.f32.mrf.mxu0  ;;  %v3730_v34 = vpop.f32.mrf.mxu1 }
 0xd64   :  { %v3696_v38 = vadd.f32 %v3695_v33, %v3694_v32  ;;  %v3731_v40 = vadd.f32 %v3730_v34, %v3729_v31  ;;  %v2963_v32 = vld [vmem:[#allocation10 + $0x28] sm:$0xff]  ;;  %v2962_v33 = vld [vmem:[#allocation10 + $0x20] sm:$0xff] }
 0xd65   :  { %v3027_v31 = vld [vmem:[#allocation10 + $0x228] sm:$0xff]  ;;  %v3026_v34 = vld [vmem:[#allocation10 + $0x220] sm:$0xff] }
 0xd66   :  { %v2599_v39 = vadd.f32 1e-05, %v3696_v38  ;;  %v2961_v38 = vld [vmem:[#allocation10 + $0x18] sm:$0xff] }
 0xd68   :  { %v2669_v41 = vadd.f32 %v3731_v40, %v2599_v39  ;;  %v3025_v39 = vld [vmem:[#allocation10 + $0x218] sm:$0xff]  ;;  %v2960_v40 = vld [vmem:[#allocation10 + $0x10] sm:$0xff] }
 0xd6a   :  { %3747 = vrsqrt.f32 %v2669_v41  ;;  %v3024_v41 = vld [vmem:[#allocation10 + $0x210] sm:$0xff] }
 0xd77   :  { %v3748_v44 = vpop.eup %3747 }
 0xd78   :  { %3414 = vmatmul.mubr.msk.f32.vlgmr.msra.gmra.mxu0 %vm2378_vm7, %v3748_v44  ;;  %3415 = vmatmul.mubr.msk.f32.vlgmr.msra.gmra.mxu1 %vm2378_vm7, %v3748_v44  ;;  %v2958_v44 = vld [vmem:[#allocation10] sm:$0xff] }
 0xd79   :  { %3087 = vmatpush1.msra.mxu0 %v2988_v42  ;;  %3158 = vmatpush1.msra.mxu1 %v3052_v43  ;;  %v2959_v42 = vld [vmem:[#allocation10 + $0x8] sm:$0xff] }
 0xd7a   :  { %3088 = vmatprep.subr.mxu0 %v2987_v45  ;;  %3159 = vmatprep.subr.mxu1 %v3051_v6  ;;  %v3023_v43 = vld [vmem:[#allocation10 + $0x208] sm:$0xff]  ;;  %v3022_v45 = vld [vmem:[#allocation10 + $0x200] sm:$0xff]  ;;  %v3021_v6 = vld [vmem:[#allocation10 + $0x1f8] sm:$0xff] }
 0xd7b   :  { %3089 = vmatpush1.msra.mxu0 %v2986_v4  ;;  %3160 = vmatpush1.msra.mxu1 %v3050_v9  ;;  %v3085_v4 = vld [vmem:[#allocation10 + $0x3f8] sm:$0xff]  ;;  %v3020_v9 = vld [vmem:[#allocation10 + $0x1f0] sm:$0xff] }
 0xd7c   :  { %3090 = vmatprep.subr.mxu0 %v2985_v16  ;;  %3161 = vmatprep.subr.mxu1 %v3049_v17  ;;  %v3084_v16 = vld [vmem:[#allocation10 + $0x3f0] sm:$0xff]  ;;  %v3019_v17 = vld [vmem:[#allocation10 + $0x1e8] sm:$0xff] }
 0xd7d   :  { %3091 = vmatpush1.msra.mxu0 %v2984_v20  ;;  %3162 = vmatpush1.msra.mxu1 %v3048_v21  ;;  %v3083_v20 = vld [vmem:[#allocation10 + $0x3e8] sm:$0xff]  ;;  %v3018_v21 = vld [vmem:[#allocation10 + $0x1e0] sm:$0xff] }
 0xd7e   :  { %3092 = vmatprep.subr.mxu0 %v2983_v22  ;;  %3163 = vmatprep.subr.mxu1 %v3047_v35  ;;  %v3082_v22 = vld [vmem:[#allocation10 + $0x3e0] sm:$0xff]  ;;  %v3017_v35 = vld [vmem:[#allocation10 + $0x1d8] sm:$0xff] }
 0xd7f   :  { %3093 = vmatpush1.msra.mxu0 %v2982_v36  ;;  %3164 = vmatpush1.msra.mxu1 %v3046_v37  ;;  %v3081_v36 = vld [vmem:[#allocation10 + $0x3d8] sm:$0xff]  ;;  %v3016_v37 = vld [vmem:[#allocation10 + $0x1d0] sm:$0xff] }
 0xd80   :  { %3094 = vmatprep.subr.mxu0 %v2981_v62  ;;  %3165 = vmatprep.subr.mxu1 %v3045_v46  ;;  %v3080_v62 = vld [vmem:[#allocation10 + $0x3d0] sm:$0xff]  ;;  %v3015_v46 = vld [vmem:[#allocation10 + $0x1c8] sm:$0xff] }
 0xd81   :  { %3095 = vmatpush1.msra.mxu0 %v2980_v47  ;;  %3166 = vmatpush1.msra.mxu1 %v3044_v48  ;;  %v3079_v47 = vld [vmem:[#allocation10 + $0x3c8] sm:$0xff]  ;;  %v3014_v48 = vld [vmem:[#allocation10 + $0x1c0] sm:$0xff] }
 0xd82   :  { %3096 = vmatprep.subr.mxu0 %v2979_v29  ;;  %3167 = vmatprep.subr.mxu1 %v3043_v49  ;;  %v3078_v29 = vld [vmem:[#allocation10 + $0x3c0] sm:$0xff]  ;;  %v3013_v49 = vld [vmem:[#allocation10 + $0x1b8] sm:$0xff] }
 0xd83   :  { %3097 = vmatpush1.msra.mxu0 %v2978_v50  ;;  %3168 = vmatpush1.msra.mxu1 %v3042_v51  ;;  %v3077_v50 = vld [vmem:[#allocation10 + $0x3b8] sm:$0xff]  ;;  %v3012_v51 = vld [vmem:[#allocation10 + $0x1b0] sm:$0xff] }
 0xd84   :  { %3098 = vmatprep.subr.mxu0 %v2977_v52  ;;  %3169 = vmatprep.subr.mxu1 %v3041_v53  ;;  %v3076_v52 = vld [vmem:[#allocation10 + $0x3b0] sm:$0xff]  ;;  %v3011_v53 = vld [vmem:[#allocation10 + $0x1a8] sm:$0xff] }
 0xd85   :  { %3099 = vmatpush1.msra.mxu0 %v2976_v54  ;;  %3170 = vmatpush1.msra.mxu1 %v3040_v55  ;;  %v3075_v54 = vld [vmem:[#allocation10 + $0x3a8] sm:$0xff]  ;;  %v3010_v55 = vld [vmem:[#allocation10 + $0x1a0] sm:$0xff] }
 0xd86   :  { %3100 = vmatprep.subr.mxu0 %v2975_v56  ;;  %3171 = vmatprep.subr.mxu1 %v3039_v57  ;;  %v3074_v56 = vld [vmem:[#allocation10 + $0x3a0] sm:$0xff]  ;;  %v3009_v57 = vld [vmem:[#allocation10 + $0x198] sm:$0xff] }
 0xd87   :  { %3101 = vmatpush1.msra.mxu0 %v2974_v58  ;;  %3172 = vmatpush1.msra.mxu1 %v3038_v59  ;;  %v3073_v58 = vld [vmem:[#allocation10 + $0x398] sm:$0xff]  ;;  %v3008_v59 = vld [vmem:[#allocation10 + $0x190] sm:$0xff] }
 0xd88   :  { %3102 = vmatprep.subr.mxu0 %v2973_v60  ;;  %3173 = vmatprep.subr.mxu1 %v3037_v15  ;;  %v3072_v60 = vld [vmem:[#allocation10 + $0x390] sm:$0xff]  ;;  %v3007_v15 = vld [vmem:[#allocation10 + $0x188] sm:$0xff] }
 0xd89   :  { %3103 = vmatpush1.msra.mxu0 %v2972_v18  ;;  %3174 = vmatpush1.msra.mxu1 %v3036_v19  ;;  %v3071_v18 = vld [vmem:[#allocation10 + $0x388] sm:$0xff]  ;;  %v3006_v19 = vld [vmem:[#allocation10 + $0x180] sm:$0xff] }
 0xd8a   :  { %3104 = vmatprep.subr.mxu0 %v2971_v23  ;;  %3175 = vmatprep.subr.mxu1 %v3035_v24  ;;  %v3070_v23 = vld [vmem:[#allocation10 + $0x380] sm:$0xff]  ;;  %v3005_v24 = vld [vmem:[#allocation10 + $0x178] sm:$0xff] }
 0xd8b   :  { %3105 = vmatpush1.msra.mxu0 %v2970_v25  ;;  %3176 = vmatpush1.msra.mxu1 %v3034_v26  ;;  %v3069_v25 = vld [vmem:[#allocation10 + $0x378] sm:$0xff]  ;;  %v3004_v26 = vld [vmem:[#allocation10 + $0x170] sm:$0xff] }
 0xd8c   :  { %3106 = vmatprep.subr.mxu0 %v2969_v61  ;;  %3177 = vmatprep.subr.mxu1 %v3033_v63  ;;  %v3068_v61 = vld [vmem:[#allocation10 + $0x370] sm:$0xff]  ;;  %v3003_v63 = vld [vmem:[#allocation10 + $0x168] sm:$0xff] }
 0xd8d   :  { %3107 = vmatpush1.msra.mxu0 %v2968_v0  ;;  %3178 = vmatpush1.msra.mxu1 %v3032_v1  ;;  %v3067_v0 = vld [vmem:[#allocation10 + $0x368] sm:$0xff]  ;;  %v3002_v1 = vld [vmem:[#allocation10 + $0x160] sm:$0xff] }
 0xd8e   :  { %3108 = vmatprep.subr.mxu0 %v2967_v27  ;;  %3179 = vmatprep.subr.mxu1 %v3031_v30  ;;  %v3066_v27 = vld [vmem:[#allocation10 + $0x360] sm:$0xff]  ;;  %v3001_v30 = vld [vmem:[#allocation10 + $0x158] sm:$0xff] }
 0xd8f   :  { %3109 = vmatpush1.msra.mxu0 %v2966_v11  ;;  %3180 = vmatpush1.msra.mxu1 %v3030_v2  ;;  %v3065_v11 = vld [vmem:[#allocation10 + $0x358] sm:$0xff]  ;;  %v3000_v2 = vld [vmem:[#allocation10 + $0x150] sm:$0xff] }
 0xd90   :  { %3110 = vmatprep.subr.mxu0 %v2965_v12  ;;  %3181 = vmatprep.subr.mxu1 %v3029_v8  ;;  %v3064_v12 = vld [vmem:[#allocation10 + $0x350] sm:$0xff]  ;;  %v2999_v8 = vld [vmem:[#allocation10 + $0x148] sm:$0xff] }
 0xd91   :  { %3111 = vmatpush1.msra.mxu0 %v2964_v13  ;;  %3182 = vmatpush1.msra.mxu1 %v3028_v28  ;;  %v3063_v13 = vld [vmem:[#allocation10 + $0x348] sm:$0xff]  ;;  %v2998_v28 = vld [vmem:[#allocation10 + $0x140] sm:$0xff] }
 0xd92   :  { %3112 = vmatprep.subr.mxu0 %v2963_v32  ;;  %3183 = vmatprep.subr.mxu1 %v3027_v31  ;;  %v3062_v32 = vld [vmem:[#allocation10 + $0x340] sm:$0xff]  ;;  %v2997_v31 = vld [vmem:[#allocation10 + $0x138] sm:$0xff] }
 0xd93   :  { %3113 = vmatpush1.msra.mxu0 %v2962_v33  ;;  %3184 = vmatpush1.msra.mxu1 %v3026_v34  ;;  %v3061_v33 = vld [vmem:[#allocation10 + $0x338] sm:$0xff]  ;;  %v2996_v34 = vld [vmem:[#allocation10 + $0x130] sm:$0xff] }
 0xd94   :  { %3114 = vmatprep.subr.mxu0 %v2961_v38  ;;  %3185 = vmatprep.subr.mxu1 %v3025_v39  ;;  %v3060_v38 = vld [vmem:[#allocation10 + $0x330] sm:$0xff]  ;;  %v2995_v39 = vld [vmem:[#allocation10 + $0x128] sm:$0xff] }
 0xd95   :  { %3115 = vmatpush1.msra.mxu0 %v2960_v40  ;;  %3186 = vmatpush1.msra.mxu1 %v3024_v41  ;;  %v3059_v40 = vld [vmem:[#allocation10 + $0x328] sm:$0xff]  ;;  %v2994_v41 = vld [vmem:[#allocation10 + $0x120] sm:$0xff] }
 0xd96   :  { %3116 = vmatprep.subr.mxu0 %v2959_v42  ;;  %3187 = vmatprep.subr.mxu1 %v3023_v43  ;;  %v3058_v42 = vld [vmem:[#allocation10 + $0x320] sm:$0xff]  ;;  %v2993_v43 = vld [vmem:[#allocation10 + $0x118] sm:$0xff] }
 0xd97   :  { %3117 = vmatpush1.msra.mxu0 %v2958_v44  ;;  %3188 = vmatpush1.msra.mxu1 %v3022_v45  ;;  %v3057_v44 = vld [vmem:[#allocation10 + $0x318] sm:$0xff]  ;;  %v2992_v45 = vld [vmem:[#allocation10 + $0x110] sm:$0xff] }
 0xd98   :  { %3118 = vmatprep.subr.mxu0 %v3021_v6  ;;  %3189 = vmatprep.subr.mxu1 %v3085_v4  ;;  %v3056_v6 = vld [vmem:[#allocation10 + $0x310] sm:$0xff]  ;;  %v2991_v4 = vld [vmem:[#allocation10 + $0x108] sm:$0xff] }
 0xd99   :  { %3119 = vmatpush2.msra.mxu0 %v3020_v9  ;;  %3190 = vmatpush2.msra.mxu1 %v3084_v16  ;;  %v3055_v9 = vld [vmem:[#allocation10 + $0x308] sm:$0xff]  ;;  %v2990_v16 = vld [vmem:[#allocation10 + $0x100] sm:$0xff] }
 0xd9a   :  { %3120 = vmatprep.subr.mxu0 %v3019_v17  ;;  %3191 = vmatprep.subr.mxu1 %v3083_v20  ;;  %v3054_v17 = vld [vmem:[#allocation10 + $0x300] sm:$0xff]  ;;  %v2857_v20 = vld [vmem:[#allocation9 + $0xf8] sm:$0xff] }
 0xd9b   :  { %3121 = vmatpush2.msra.mxu0 %v3018_v21  ;;  %3192 = vmatpush2.msra.mxu1 %v3082_v22  ;;  %v2921_v21 = vld [vmem:[#allocation9 + $0x2f8] sm:$0xff] }
 0xd9c   :  { %3122 = vmatprep.subr.mxu0 %v3017_v35  ;;  %3193 = vmatprep.subr.mxu1 %v3081_v36 }
 0xd9d   :  { %3123 = vmatpush2.msra.mxu0 %v3016_v37  ;;  %3194 = vmatpush2.msra.mxu1 %v3080_v62 }
 0xd9e   :  { %3124 = vmatprep.subr.mxu0 %v3015_v46  ;;  %3195 = vmatprep.subr.mxu1 %v3079_v47 }
 0xd9f   :  { %3125 = vmatpush2.msra.mxu0 %v3014_v48  ;;  %3196 = vmatpush2.msra.mxu1 %v3078_v29 }
 0xda0   :  { %3126 = vmatprep.subr.mxu0 %v3013_v49  ;;  %3197 = vmatprep.subr.mxu1 %v3077_v50 }
 0xda1   :  { %3127 = vmatpush2.msra.mxu0 %v3012_v51  ;;  %3198 = vmatpush2.msra.mxu1 %v3076_v52  ;;  %v2856_v52 = vld [vmem:[#allocation9 + $0xf0] sm:$0xff] }
 0xda2   :  { %3128 = vmatprep.subr.mxu0 %v3011_v53  ;;  %3199 = vmatprep.subr.mxu1 %v3075_v54  ;;  %v2920_v53 = vld [vmem:[#allocation9 + $0x2f0] sm:$0xff]  ;;  %v2855_v54 = vld [vmem:[#allocation9 + $0xe8] sm:$0xff] }
 0xda3   :  { %3129 = vmatpush2.msra.mxu0 %v3010_v55  ;;  %3200 = vmatpush2.msra.mxu1 %v3074_v56  ;;  %v5299_v56 = vld [vmem:[#allocation20_spill] sm:$0xff] }
 0xda4   :  { %3130 = vmatprep.subr.mxu0 %v3009_v57  ;;  %3201 = vmatprep.subr.mxu1 %v3073_v58  ;;  %v2854_v57 = vld [vmem:[#allocation9 + $0xe0] sm:$0xff]  ;;  %v2853_v58 = vld [vmem:[#allocation9 + $0xd8] sm:$0xff] }
 0xda5   :  { %3131 = vmatpush2.msra.mxu0 %v3008_v59  ;;  %3202 = vmatpush2.msra.mxu1 %v3072_v60  ;;  %v2917_v59 = vld [vmem:[#allocation9 + $0x2d8] sm:$0xff]  ;;  %v2852_v60 = vld [vmem:[#allocation9 + $0xd0] sm:$0xff] }
 0xda6   :  { %3132 = vmatprep.subr.mxu0 %v3007_v15  ;;  %3203 = vmatprep.subr.mxu1 %v3071_v18  ;;  %v2916_v15 = vld [vmem:[#allocation9 + $0x2d0] sm:$0xff]  ;;  %v2851_v18 = vld [vmem:[#allocation9 + $0xc8] sm:$0xff] }
 0xda7   :  { %3133 = vmatpush2.msra.mxu0 %v3006_v19  ;;  %3204 = vmatpush2.msra.mxu1 %v3070_v23  ;;  %v2915_v19 = vld [vmem:[#allocation9 + $0x2c8] sm:$0xff]  ;;  %v2850_v23 = vld [vmem:[#allocation9 + $0xc0] sm:$0xff] }
 0xda8   :  { %3134 = vmatprep.subr.mxu0 %v3005_v24  ;;  %3205 = vmatprep.subr.mxu1 %v3069_v25  ;;  %v2914_v24 = vld [vmem:[#allocation9 + $0x2c0] sm:$0xff]  ;;  %v2849_v25 = vld [vmem:[#allocation9 + $0xb8] sm:$0xff] }
 0xda9   :  { %3135 = vmatpush2.msra.mxu0 %v3004_v26  ;;  %3206 = vmatpush2.msra.mxu1 %v3068_v61  ;;  %v2913_v26 = vld [vmem:[#allocation9 + $0x2b8] sm:$0xff]  ;;  %v2848_v61 = vld [vmem:[#allocation9 + $0xb0] sm:$0xff] }
 0xdaa   :  { %3136 = vmatprep.subr.mxu0 %v3003_v63  ;;  %3207 = vmatprep.subr.mxu1 %v3067_v0  ;;  %v2912_v63 = vld [vmem:[#allocation9 + $0x2b0] sm:$0xff]  ;;  %v2847_v0 = vld [vmem:[#allocation9 + $0xa8] sm:$0xff] }
 0xdab   :  { %3137 = vmatpush2.msra.mxu0 %v3002_v1  ;;  %3208 = vmatpush2.msra.mxu1 %v3066_v27  ;;  %v2911_v1 = vld [vmem:[#allocation9 + $0x2a8] sm:$0xff]  ;;  %v2846_v27 = vld [vmem:[#allocation9 + $0xa0] sm:$0xff] }
 0xdac   :  { %3138 = vmatprep.subr.mxu0 %v3001_v30  ;;  %3209 = vmatprep.subr.mxu1 %v3065_v11  ;;  %v2910_v30 = vld [vmem:[#allocation9 + $0x2a0] sm:$0xff]  ;;  %v2845_v11 = vld [vmem:[#allocation9 + $0x98] sm:$0xff] }
 0xdad   :  { %3139 = vmatpush2.msra.mxu0 %v3000_v2  ;;  %3210 = vmatpush2.msra.mxu1 %v3064_v12  ;;  %v2909_v2 = vld [vmem:[#allocation9 + $0x298] sm:$0xff]  ;;  %v2844_v12 = vld [vmem:[#allocation9 + $0x90] sm:$0xff] }
 0xdae   :  { %3140 = vmatprep.subr.mxu0 %v2999_v8  ;;  %3211 = vmatprep.subr.mxu1 %v3063_v13  ;;  %v2908_v8 = vld [vmem:[#allocation9 + $0x290] sm:$0xff]  ;;  %v2843_v13 = vld [vmem:[#allocation9 + $0x88] sm:$0xff] }
 0xdaf   :  { %3141 = vmatpush2.msra.mxu0 %v2998_v28  ;;  %3212 = vmatpush2.msra.mxu1 %v3062_v32  ;;  %v2907_v28 = vld [vmem:[#allocation9 + $0x288] sm:$0xff]  ;;  %v2842_v32 = vld [vmem:[#allocation9 + $0x80] sm:$0xff] }
 0xdb0   :  { %3142 = vmatprep.subr.mxu0 %v2997_v31  ;;  %3213 = vmatprep.subr.mxu1 %v3061_v33  ;;  %v2906_v31 = vld [vmem:[#allocation9 + $0x280] sm:$0xff]  ;;  %v2841_v33 = vld [vmem:[#allocation9 + $0x78] sm:$0xff] }
 0xdb1   :  { %3143 = vmatpush2.msra.mxu0 %v2996_v34  ;;  %3214 = vmatpush2.msra.mxu1 %v3060_v38  ;;  %v2905_v34 = vld [vmem:[#allocation9 + $0x278] sm:$0xff]  ;;  %v2840_v38 = vld [vmem:[#allocation9 + $0x70] sm:$0xff] }
 0xdb2   :  { %3144 = vmatprep.subr.mxu0 %v2995_v39  ;;  %3215 = vmatprep.subr.mxu1 %v3059_v40  ;;  %v2904_v39 = vld [vmem:[#allocation9 + $0x270] sm:$0xff]  ;;  %v2839_v40 = vld [vmem:[#allocation9 + $0x68] sm:$0xff] }
 0xdb3   :  { %3145 = vmatpush2.msra.mxu0 %v2994_v41  ;;  %3216 = vmatpush2.msra.mxu1 %v3058_v42  ;;  %v2903_v41 = vld [vmem:[#allocation9 + $0x268] sm:$0xff]  ;;  %v2838_v42 = vld [vmem:[#allocation9 + $0x60] sm:$0xff] }
 0xdb4   :  { %3146 = vmatprep.subr.mxu0 %v2993_v43  ;;  %3217 = vmatprep.subr.mxu1 %v3057_v44  ;;  %v2902_v43 = vld [vmem:[#allocation9 + $0x260] sm:$0xff]  ;;  %v2837_v44 = vld [vmem:[#allocation9 + $0x58] sm:$0xff] }
 0xdb5   :  { %3147 = vmatpush2.msra.mxu0 %v2992_v45  ;;  %3218 = vmatpush2.msra.mxu1 %v3056_v6  ;;  %v2901_v45 = vld [vmem:[#allocation9 + $0x258] sm:$0xff]  ;;  %v2836_v6 = vld [vmem:[#allocation9 + $0x50] sm:$0xff] }
 0xdb6   :  { %3148 = vmatprep.subr.mxu0 %v2991_v4  ;;  %3219 = vmatprep.subr.mxu1 %v3055_v9  ;;  %v2900_v4 = vld [vmem:[#allocation9 + $0x250] sm:$0xff]  ;;  %v2835_v9 = vld [vmem:[#allocation9 + $0x48] sm:$0xff] }
 0xdb7   :  { %3149 = vmatpush2.msra.mxu0 %v2990_v16  ;;  %3220 = vmatpush2.msra.mxu1 %v3054_v17  ;;  %v2899_v16 = vld [vmem:[#allocation9 + $0x248] sm:$0xff]  ;;  %v2834_v17 = vld [vmem:[#allocation9 + $0x40] sm:$0xff] }
 0xdb8   :  { %3228 = vmatprep.subr.mxu0 %v2857_v20  ;;  %3299 = vmatprep.subr.mxu1 %v2921_v21  ;;  %v2898_v20 = vld [vmem:[#allocation9 + $0x240] sm:$0xff]  ;;  %v2833_v21 = vld [vmem:[#allocation9 + $0x38] sm:$0xff] }
 0xe38   :  { %v2742_v22 = vpop.f32.mrf.mxu0  ;;  %v2813_v35 = vpop.f32.mrf.mxu1 }
 0xe39   :  { %v2818_v36 = vmul.f32 %v2742_v22, %v5131_v14  ;;  %v2820_v37 = vmul.f32 %v2813_v35, %v5134_v3  ;;  %v5298_v14 = vld [vmem:[#allocation19_spill] sm:$0xff]  ;;  %v2919_v3 = vld [vmem:[#allocation9 + $0x2e8] sm:$0xff]  ;;  %v2832_v35 = vld [vmem:[#allocation9 + $0x30] sm:$0xff] }
 0xe3a   :  { %v2744_v62 = vpop.f32.mrf.mxu0  ;;  %v2815_v46 = vpop.f32.mrf.mxu1  ;;  %v2823_v55 = vmax.f32 %v5298_v14, 0.0  ;;  %v2897_v22 = vld [vmem:[#allocation9 + $0x238] sm:$0xff] }
 0xe3b   :  { %v2819_v47 = vmul.f32 %v2744_v62, %v5137_v7  ;;  %v2821_v48 = vmul.f32 %v2815_v46, %v5140_v10  ;;  %v2954_v50 = vmax.f32 %v2818_v36, 0.0  ;;  %v2956_v51 = vmax.f32 %v2820_v37, 0.0  ;;  %v2918_v10 = vld [vmem:[#allocation9 + $0x2e0] sm:$0xff]  ;;  %v2896_v36 = vld [vmem:[#allocation9 + $0x230] sm:$0xff]  ;;  %v2831_v37 = vld [vmem:[#allocation9 + $0x28] sm:$0xff] }
 0xe3c   :  { %v2825_v7 = vmax.f32 %v5299_v56, 0.0  ;;  %v2895_v62 = vld [vmem:[#allocation9 + $0x228] sm:$0xff]  ;;  %v2830_v46 = vld [vmem:[#allocation9 + $0x20] sm:$0xff]  ;;  %v2889_v14 = vld [vmem:[#allocation9 + $0x1f8] sm:$0xff] }
 0xe3d   :  { %v2955_v29 = vmax.f32 %v2819_v47, 0.0  ;;  %v2957_v49 = vmax.f32 %v2821_v48, 0.0  ;;  %v2894_v47 = vld [vmem:[#allocation9 + $0x220] sm:$0xff]  ;;  %v2829_v48 = vld [vmem:[#allocation9 + $0x18] sm:$0xff]  ;;  %v2952_v56 = vld [vmem:[#allocation9 + $0x3f0] sm:$0xff] }
 0xe3f   :  { %3150 = vmatprep.mubr.f32.mxu0 %v2955_v29  ;;  %3221 = vmatprep.mubr.f32.mxu1 %v2957_v49  ;;  %v2893_v29 = vld [vmem:[#allocation9 + $0x218] sm:$0xff]  ;;  %v2828_v49 = vld [vmem:[#allocation9 + $0x10] sm:$0xff] }
 0xe40   :  { %3151 = vmatmul.mubr.f32.vlgmr.msra.gmra.mxu0 %v2954_v50  ;;  %3222 = vmatmul.mubr.f32.vlgmr.msra.gmra.mxu1 %v2956_v51  ;;  %v2892_v50 = vld [vmem:[#allocation9 + $0x210] sm:$0xff]  ;;  %v2827_v51 = vld [vmem:[#allocation9 + $0x8] sm:$0xff] }
 0xe41   :  { %3229 = vmatpush1.msra.mxu0 %v2856_v52  ;;  %3300 = vmatpush1.msra.mxu1 %v2920_v53  ;;  %v2891_v52 = vld [vmem:[#allocation9 + $0x208] sm:$0xff]  ;;  %v2826_v53 = vld [vmem:[#allocation9] sm:$0xff] }
 0xe42   :  { %3230 = vmatprep.subr.mxu0 %v2855_v54  ;;  %3292 = vmatprep.mubr.f32.mxu0 %v2823_v55  ;;  %v2890_v54 = vld [vmem:[#allocation9 + $0x200] sm:$0xff]  ;;  %v2953_v55 = vld [vmem:[#allocation9 + $0x3f8] sm:$0xff] }
 0xe43   :  { %3301 = vmatprep.subr.mxu1 %v2919_v3  ;;  %3363 = vmatprep.mubr.f32.mxu1 %v2825_v7  ;;  %v2888_v3 = vld [vmem:[#allocation9 + $0x1f0] sm:$0xff]  ;;  %v2887_v7 = vld [vmem:[#allocation9 + $0x1e8] sm:$0xff] }
 0xe44   :  { %3231 = vmatpush1.msra.mxu0 %v2854_v57  ;;  %3302 = vmatpush1.msra.mxu1 %v2918_v10  ;;  %v2951_v57 = vld [vmem:[#allocation9 + $0x3e8] sm:$0xff]  ;;  %v2886_v10 = vld [vmem:[#allocation9 + $0x1e0] sm:$0xff] }
 0xe45   :  { %3232 = vmatprep.subr.mxu0 %v2853_v58  ;;  %3303 = vmatprep.subr.mxu1 %v2917_v59  ;;  %v2950_v58 = vld [vmem:[#allocation9 + $0x3e0] sm:$0xff]  ;;  %v2885_v59 = vld [vmem:[#allocation9 + $0x1d8] sm:$0xff] }
 0xe46   :  { %3233 = vmatpush1.msra.mxu0 %v2852_v60  ;;  %3304 = vmatpush1.msra.mxu1 %v2916_v15  ;;  %v2949_v60 = vld [vmem:[#allocation9 + $0x3d8] sm:$0xff]  ;;  %v2884_v15 = vld [vmem:[#allocation9 + $0x1d0] sm:$0xff] }
 0xe47   :  { %3234 = vmatprep.subr.mxu0 %v2851_v18  ;;  %3305 = vmatprep.subr.mxu1 %v2915_v19  ;;  %v2948_v18 = vld [vmem:[#allocation9 + $0x3d0] sm:$0xff]  ;;  %v2883_v19 = vld [vmem:[#allocation9 + $0x1c8] sm:$0xff] }
 0xe48   :  { %3235 = vmatpush1.msra.mxu0 %v2850_v23  ;;  %3306 = vmatpush1.msra.mxu1 %v2914_v24  ;;  %v2947_v23 = vld [vmem:[#allocation9 + $0x3c8] sm:$0xff]  ;;  %v2882_v24 = vld [vmem:[#allocation9 + $0x1c0] sm:$0xff] }
 0xe49   :  { %3236 = vmatprep.subr.mxu0 %v2849_v25  ;;  %3307 = vmatprep.subr.mxu1 %v2913_v26  ;;  %v2946_v25 = vld [vmem:[#allocation9 + $0x3c0] sm:$0xff]  ;;  %v2881_v26 = vld [vmem:[#allocation9 + $0x1b8] sm:$0xff] }
 0xe4a   :  { %3237 = vmatpush1.msra.mxu0 %v2848_v61  ;;  %3308 = vmatpush1.msra.mxu1 %v2912_v63  ;;  %v2945_v61 = vld [vmem:[#allocation9 + $0x3b8] sm:$0xff]  ;;  %v2880_v63 = vld [vmem:[#allocation9 + $0x1b0] sm:$0xff] }
 0xe4b   :  { %3238 = vmatprep.subr.mxu0 %v2847_v0  ;;  %3309 = vmatprep.subr.mxu1 %v2911_v1  ;;  %v2944_v0 = vld [vmem:[#allocation9 + $0x3b0] sm:$0xff]  ;;  %v2879_v1 = vld [vmem:[#allocation9 + $0x1a8] sm:$0xff] }
 0xe4c   :  { %3239 = vmatpush1.msra.mxu0 %v2846_v27  ;;  %3310 = vmatpush1.msra.mxu1 %v2910_v30  ;;  %v2943_v27 = vld [vmem:[#allocation9 + $0x3a8] sm:$0xff]  ;;  %v2878_v30 = vld [vmem:[#allocation9 + $0x1a0] sm:$0xff] }
 0xe4d   :  { %3240 = vmatprep.subr.mxu0 %v2845_v11  ;;  %3311 = vmatprep.subr.mxu1 %v2909_v2  ;;  %v2942_v11 = vld [vmem:[#allocation9 + $0x3a0] sm:$0xff]  ;;  %v2877_v2 = vld [vmem:[#allocation9 + $0x198] sm:$0xff] }
 0xe4e   :  { %3241 = vmatpush1.msra.mxu0 %v2844_v12  ;;  %3312 = vmatpush1.msra.mxu1 %v2908_v8  ;;  %v2941_v12 = vld [vmem:[#allocation9 + $0x398] sm:$0xff]  ;;  %v2876_v8 = vld [vmem:[#allocation9 + $0x190] sm:$0xff] }
 0xe4f   :  { %3242 = vmatprep.subr.mxu0 %v2843_v13  ;;  %3313 = vmatprep.subr.mxu1 %v2907_v28  ;;  %v2940_v13 = vld [vmem:[#allocation9 + $0x390] sm:$0xff]  ;;  %v2875_v28 = vld [vmem:[#allocation9 + $0x188] sm:$0xff] }
 0xe50   :  { %3243 = vmatpush1.msra.mxu0 %v2842_v32  ;;  %3314 = vmatpush1.msra.mxu1 %v2906_v31  ;;  %v2939_v32 = vld [vmem:[#allocation9 + $0x388] sm:$0xff]  ;;  %v2874_v31 = vld [vmem:[#allocation9 + $0x180] sm:$0xff] }
 0xe51   :  { %3244 = vmatprep.subr.mxu0 %v2841_v33  ;;  %3315 = vmatprep.subr.mxu1 %v2905_v34  ;;  %v2938_v33 = vld [vmem:[#allocation9 + $0x380] sm:$0xff]  ;;  %v2873_v34 = vld [vmem:[#allocation9 + $0x178] sm:$0xff] }
 0xe52   :  { %3245 = vmatpush1.msra.mxu0 %v2840_v38  ;;  %3316 = vmatpush1.msra.mxu1 %v2904_v39  ;;  %v2937_v38 = vld [vmem:[#allocation9 + $0x378] sm:$0xff]  ;;  %v2872_v39 = vld [vmem:[#allocation9 + $0x170] sm:$0xff] }
 0xe53   :  { %3246 = vmatprep.subr.mxu0 %v2839_v40  ;;  %3317 = vmatprep.subr.mxu1 %v2903_v41  ;;  %v2936_v40 = vld [vmem:[#allocation9 + $0x370] sm:$0xff]  ;;  %v2871_v41 = vld [vmem:[#allocation9 + $0x168] sm:$0xff] }
 0xe54   :  { %3247 = vmatpush1.msra.mxu0 %v2838_v42  ;;  %3318 = vmatpush1.msra.mxu1 %v2902_v43  ;;  %v2935_v42 = vld [vmem:[#allocation9 + $0x368] sm:$0xff]  ;;  %v2870_v43 = vld [vmem:[#allocation9 + $0x160] sm:$0xff] }
 0xe55   :  { %3248 = vmatprep.subr.mxu0 %v2837_v44  ;;  %3319 = vmatprep.subr.mxu1 %v2901_v45  ;;  %v2934_v44 = vld [vmem:[#allocation9 + $0x360] sm:$0xff]  ;;  %v2869_v45 = vld [vmem:[#allocation9 + $0x158] sm:$0xff] }
 0xe56   :  { %3249 = vmatpush1.msra.mxu0 %v2836_v6  ;;  %3320 = vmatpush1.msra.mxu1 %v2900_v4  ;;  %v2933_v6 = vld [vmem:[#allocation9 + $0x358] sm:$0xff]  ;;  %v2868_v4 = vld [vmem:[#allocation9 + $0x150] sm:$0xff] }
 0xe57   :  { %3250 = vmatprep.subr.mxu0 %v2835_v9  ;;  %3321 = vmatprep.subr.mxu1 %v2899_v16  ;;  %v2932_v9 = vld [vmem:[#allocation9 + $0x350] sm:$0xff]  ;;  %v2867_v16 = vld [vmem:[#allocation9 + $0x148] sm:$0xff] }
 0xe58   :  { %3251 = vmatpush1.msra.mxu0 %v2834_v17  ;;  %3322 = vmatpush1.msra.mxu1 %v2898_v20  ;;  %v2931_v17 = vld [vmem:[#allocation9 + $0x348] sm:$0xff]  ;;  %v2866_v20 = vld [vmem:[#allocation9 + $0x140] sm:$0xff] }
 0xe59   :  { %3252 = vmatprep.subr.mxu0 %v2833_v21  ;;  %3323 = vmatprep.subr.mxu1 %v2897_v22  ;;  %v2930_v21 = vld [vmem:[#allocation9 + $0x340] sm:$0xff]  ;;  %v2865_v22 = vld [vmem:[#allocation9 + $0x138] sm:$0xff] }
 0xe5a   :  { %3253 = vmatpush1.msra.mxu0 %v2832_v35  ;;  %3324 = vmatpush1.msra.mxu1 %v2896_v36  ;;  %v2929_v35 = vld [vmem:[#allocation9 + $0x338] sm:$0xff]  ;;  %v2864_v36 = vld [vmem:[#allocation9 + $0x130] sm:$0xff] }
 0xe5b   :  { %3254 = vmatprep.subr.mxu0 %v2831_v37  ;;  %3325 = vmatprep.subr.mxu1 %v2895_v62  ;;  %v2928_v37 = vld [vmem:[#allocation9 + $0x330] sm:$0xff]  ;;  %v2863_v62 = vld [vmem:[#allocation9 + $0x128] sm:$0xff] }
 0xe5c   :  { %3255 = vmatpush1.msra.mxu0 %v2830_v46  ;;  %3326 = vmatpush1.msra.mxu1 %v2894_v47  ;;  %v2927_v46 = vld [vmem:[#allocation9 + $0x328] sm:$0xff]  ;;  %v2862_v47 = vld [vmem:[#allocation9 + $0x120] sm:$0xff] }
 0xe5d   :  { %3256 = vmatprep.subr.mxu0 %v2829_v48  ;;  %3327 = vmatprep.subr.mxu1 %v2893_v29  ;;  %v2926_v48 = vld [vmem:[#allocation9 + $0x320] sm:$0xff]  ;;  %v2861_v29 = vld [vmem:[#allocation9 + $0x118] sm:$0xff] }
 0xe5e   :  { %3257 = vmatpush1.msra.mxu0 %v2828_v49  ;;  %3328 = vmatpush1.msra.mxu1 %v2892_v50  ;;  %v2925_v49 = vld [vmem:[#allocation9 + $0x318] sm:$0xff]  ;;  %v2860_v50 = vld [vmem:[#allocation9 + $0x110] sm:$0xff] }
 0xe5f   :  { %3258 = vmatprep.subr.mxu0 %v2827_v51  ;;  %3329 = vmatprep.subr.mxu1 %v2891_v52  ;;  %v2924_v51 = vld [vmem:[#allocation9 + $0x310] sm:$0xff]  ;;  %v2859_v52 = vld [vmem:[#allocation9 + $0x108] sm:$0xff] }
 0xe60   :  { %3259 = vmatpush1.msra.mxu0 %v2826_v53  ;;  %3330 = vmatpush1.msra.mxu1 %v2890_v54  ;;  %v2923_v53 = vld [vmem:[#allocation9 + $0x308] sm:$0xff]  ;;  %v2858_v54 = vld [vmem:[#allocation9 + $0x100] sm:$0xff] }
 0xe61   :  { %3260 = vmatprep.subr.mxu0 %v2889_v14  ;;  %3331 = vmatprep.subr.mxu1 %v2953_v55  ;;  %v2922_v14 = vld [vmem:[#allocation9 + $0x300] sm:$0xff]  ;;  %v5300_v55 = vld [vmem:[#allocation17_spill] sm:$0xff] }
 0xe62   :  { %3261 = vmatpush2.msra.mxu0 %v2888_v3  ;;  %3332 = vmatpush2.msra.mxu1 %v2952_v56  ;;  %v2822_v3 = vmax.f32 %v5300_v55, 0.0  ;;  %v5301_v56 = vld [vmem:[#allocation18_spill] sm:$0xff] }
 0xe63   :  { %3262 = vmatprep.subr.mxu0 %v2887_v7  ;;  %3333 = vmatprep.subr.mxu1 %v2951_v57  ;;  %v2824_v7 = vmax.f32 %v5301_v56, 0.0 }
 0xe64   :  { %3263 = vmatpush2.msra.mxu0 %v2886_v10  ;;  %3334 = vmatpush2.msra.mxu1 %v2950_v58 }
 0xe65   :  { %3264 = vmatprep.subr.mxu0 %v2885_v59  ;;  %3335 = vmatprep.subr.mxu1 %v2949_v60  ;;  %v3370_v60 = vld [vmem:[%s5186_s14] sm:$0x3] }
 0xe66   :  { %3265 = vmatpush2.msra.mxu0 %v2884_v15  ;;  %3336 = vmatpush2.msra.mxu1 %v2948_v18 }
 0xe67   :  { %3266 = vmatprep.subr.mxu0 %v2883_v19  ;;  %3337 = vmatprep.subr.mxu1 %v2947_v23 }
 0xe68   :  { %3267 = vmatpush2.msra.mxu0 %v2882_v24  ;;  %3338 = vmatpush2.msra.mxu1 %v2946_v25  ;;  %v3375_v25 = vrot.slane %v3370_v60, %v4031_v5 }
 0xe69   :  { %3268 = vmatprep.subr.mxu0 %v2881_v26  ;;  %3339 = vmatprep.subr.mxu1 %v2945_v61 }
 0xe6a   :  { %3269 = vmatpush2.msra.mxu0 %v2880_v63  ;;  %3340 = vmatpush2.msra.mxu1 %v2944_v0  ;;  %v5302_v0 = vld [vmem:[#allocation16_spill] sm:$0xff] }
 0xe6b   :  { %3270 = vmatprep.subr.mxu0 %v2879_v1  ;;  %3341 = vmatprep.subr.mxu1 %v2943_v27  ;;  %v3379_v1 = vrot.slane %v3370_v60, %v5302_v0 }
 0xe6c   :  { %3271 = vmatpush2.msra.mxu0 %v2878_v30  ;;  %3342 = vmatpush2.msra.mxu1 %v2942_v11 }
 0xe6d   :  { %3272 = vmatprep.subr.mxu0 %v2877_v2  ;;  %3343 = vmatprep.subr.mxu1 %v2941_v12 }
 0xe6e   :  { %3273 = vmatpush2.msra.mxu0 %v2876_v8  ;;  %3344 = vmatpush2.msra.mxu1 %v2940_v13 }
 0xe6f   :  { %3274 = vmatprep.subr.mxu0 %v2875_v28  ;;  %3345 = vmatprep.subr.mxu1 %v2939_v32 }
 0xe70   :  { %3275 = vmatpush2.msra.mxu0 %v2874_v31  ;;  %3346 = vmatpush2.msra.mxu1 %v2938_v33 }
 0xe71   :  { %3276 = vmatprep.subr.mxu0 %v2873_v34  ;;  %3347 = vmatprep.subr.mxu1 %v2937_v38 }
 0xe72   :  { %3277 = vmatpush2.msra.mxu0 %v2872_v39  ;;  %3348 = vmatpush2.msra.mxu1 %v2936_v40 }
 0xe73   :  { %3278 = vmatprep.subr.mxu0 %v2871_v41  ;;  %3349 = vmatprep.subr.mxu1 %v2935_v42 }
 0xe74   :  { %3279 = vmatpush2.msra.mxu0 %v2870_v43  ;;  %3350 = vmatpush2.msra.mxu1 %v2934_v44 }
 0xe75   :  { %3280 = vmatprep.subr.mxu0 %v2869_v45  ;;  %3351 = vmatprep.subr.mxu1 %v2933_v6 }
 0xe76   :  { %3281 = vmatpush2.msra.mxu0 %v2868_v4  ;;  %3352 = vmatpush2.msra.mxu1 %v2932_v9 }
 0xe77   :  { %3282 = vmatprep.subr.mxu0 %v2867_v16  ;;  %3353 = vmatprep.subr.mxu1 %v2931_v17 }
 0xe78   :  { %3283 = vmatpush2.msra.mxu0 %v2866_v20  ;;  %3354 = vmatpush2.msra.mxu1 %v2930_v21 }
 0xe79   :  { %3284 = vmatprep.subr.mxu0 %v2865_v22  ;;  %3355 = vmatprep.subr.mxu1 %v2929_v35 }
 0xe7a   :  { %3285 = vmatpush2.msra.mxu0 %v2864_v36  ;;  %3356 = vmatpush2.msra.mxu1 %v2928_v37 }
 0xe7b   :  { %3286 = vmatprep.subr.mxu0 %v2863_v62  ;;  %3357 = vmatprep.subr.mxu1 %v2927_v46 }
 0xe7c   :  { %3287 = vmatpush2.msra.mxu0 %v2862_v47  ;;  %3358 = vmatpush2.msra.mxu1 %v2926_v48 }
 0xe7d   :  { %3288 = vmatprep.subr.mxu0 %v2861_v29  ;;  %3359 = vmatprep.subr.mxu1 %v2925_v49 }
 0xe7e   :  { %3289 = vmatpush2.msra.mxu0 %v2860_v50  ;;  %3360 = vmatpush2.msra.mxu1 %v2924_v51 }
 0xe7f   :  { %3290 = vmatprep.subr.mxu0 %v2859_v52  ;;  %3361 = vmatprep.subr.mxu1 %v2923_v53 }
 0xe80   :  { %3291 = vmatpush2.msra.mxu0 %v2858_v54  ;;  %3362 = vmatpush2.msra.mxu1 %v2922_v14 }
 0xe81   :  { %3293 = vmatmul.mubr.f32.vlgmr.msra.gmra.mxu0 %v2822_v3  ;;  %3364 = vmatmul.mubr.f32.vlgmr.msra.gmra.mxu1 %v2824_v7 }
 0xf00   :  { %v3152_v57 = vpop.f32.mrf.mxu0  ;;  %v3223_v10 = vpop.f32.mrf.mxu1 }
 0xf01   :  { %v3224_v15 = vadd.f32 %v3223_v10, %v3152_v57 }
 0xf02   :  { %v3154_v58 = vpop.f32.mrf.mxu0  ;;  %v3225_v59 = vpop.f32.mrf.mxu1 }
 0xf03   :  { %v3226_v23 = vadd.f32 %v3225_v59, %v3154_v58 }
 0xf41   :  { %v3294_v18 = vpop.f32.mrf.mxu0  ;;  %v3365_v19 = vpop.f32.mrf.mxu1 }
 0xf42   :  { %v3295_v24 = vadd.f32 %v3294_v18, %v3224_v15 }
 0xf43   :  { %v3296_v26 = vpop.f32.mrf.mxu0  ;;  %v3367_v27 = vpop.f32.mrf.mxu1 }
 0xf44   :  { %v3366_v61 = vadd.f32 %v3365_v19, %v3295_v24  ;;  %v3297_v63 = vadd.f32 %v3296_v26, %v3226_v23 }
 0xf46   :  { %v3382_v30 = vadd.f32 %v3375_v25, %v3366_v61  ;;  %v3368_v11 = vadd.f32 %v3367_v27, %v3297_v63 }
 0xf48   :  { %v3383_v2 = vadd.f32 %v3379_v1, %v3368_v11  ;;  %3749 = vtanh.f32 %v3382_v30 }
 0xf4a   :  { %3751 = vtanh.f32 %v3383_v2 }
 0xf55   :  { %v3750_v12 = vpop.eup %3749 }
 0xf57   :  { %v3752_v8 = vpop.eup %3751 }
 0xf58   :  { %v3388_v13 = vcombine.low %v3750_v12, %v3752_v8 }
 0xf5a   :  { %3416 = vst.sshfl [vmem:[%s5191_s19] sm:$0x33 pattern:$0x76325410] %v3388_v13 }
 0xf5b   :  { %3402 = vsyncpa [#allocation3], 1 }
 0xf5c   :  { %3403 = vsyncpa [#allocation5], 1 }
 0xf5d   :  { %3404 = vsyncpa [#allocation8], 1 }
 0xf5e   :  { %3405 = vsyncpa [#allocation11], 1 }

</bundles_post_ra>
